<compile_context>
chip_gen: v6e
topology: v6e:2x2x1
jax: 0.10.0
libtpu: 0.0.40
codegen_flags: <defaults>
</compile_context>

<pallas_src>
import functools
import math

import jax
import jax.numpy as jnp
from jax import lax
from jax.experimental import pallas as pl
from jax.experimental.pallas import tpu as pltpu


# ----------------------------- in-kernel helpers -----------------------------

def _layer_norm(x, gamma, beta, eps=1e-5):
    mean = jnp.mean(x, axis=-1, keepdims=True)
    var = jnp.mean((x - mean) ** 2, axis=-1, keepdims=True)
    return (x - mean) * lax.rsqrt(var + eps) * gamma + beta


def _attention(q_in, k_in, v_in, w_ref, wo_ref, bq, bk, bv, bo,
               l, nhead, ngroups):
    """nn.MultiheadAttention forward (eval, no masks).

    q_in/k_in/v_in: (ngroups*L, E); every block of L rows is one independent
    attention group.  w_ref: (NL, 3, E, E) bf16 (q weights pre-scaled by
    1/sqrt(hd)), wo_ref: (NL, E, E) bf16, biases: (1, E) f32 (bq pre-scaled).
    """
    bf16 = jnp.bfloat16
    R, E = q_in.shape
    hd = E // nhead
    L = R // ngroups

    # fused-over-heads projections (one wide matmul each, bf16 -> f32 acc)
    q = jnp.dot(q_in.astype(bf16), w_ref[l, 0],
                preferred_element_type=jnp.float32) + bq
    k = jnp.dot(k_in.astype(bf16), w_ref[l, 1],
                preferred_element_type=jnp.float32) + bk
    v = jnp.dot(v_in.astype(bf16), w_ref[l, 2],
                preferred_element_type=jnp.float32) + bv

    def to_heads(t):
        # (R, E) -> (nhead*ngroups, L, hd), head-major, via static lane slices
        # + leading-axis concat (no transposes).
        tb = t.reshape(ngroups, L, E)
        return jnp.concatenate(
            [tb[:, :, h * hd:(h + 1) * hd] for h in range(nhead)], axis=0)

    qh = to_heads(q).astype(bf16)
    kh = to_heads(k).astype(bf16)
    vh = to_heads(v).astype(bf16)

    # single batched score / value einsums over all (head, group) pairs
    s = jnp.einsum('gqd,gkd->gqk', qh, kh,
                   preferred_element_type=jnp.float32)   # scale folded into q
    s = s - jnp.max(s, axis=-1, keepdims=True)
    p = jnp.exp(s)                                        # f32 on the EUP
    p = p * pl.reciprocal(jnp.sum(p, axis=-1, keepdims=True), approx=True)
    o = jnp.einsum('gqk,gkd->gqd', p.astype(bf16), vh,
                   preferred_element_type=jnp.float32)    # (nhead*ngroups,L,hd)

    # reassemble heads on the lane axis (PyTorch concat order), one out-proj
    o_cat = jnp.concatenate(
        [o[h * ngroups:(h + 1) * ngroups] for h in range(nhead)],
        axis=-1).reshape(R, E)
    return jnp.dot(o_cat.astype(bf16), wo_ref[l],
                   preferred_element_type=jnp.float32) + bo


# --------------------------------- kernel ------------------------------------

def _transformer_kernel(nhead, n_layers, seq_len,
                        tgt_ref, mem_ref, pos_ref,
                        sa_w_ref, ca_w_ref, sa_wo_ref, ca_wo_ref,
                        w1_ref, w2_ref, b1_ref, vec_ref, fin_ref,
                        out_ref, x_sc):
    eps = 1e-5
    bf16 = jnp.bfloat16
    L = seq_len

    tgt0 = tgt_ref[...]            # (L, E) initial tgt == query_pos
    mem0 = mem_ref[...]            # (L, E) original memory, reused every layer
    pos = pos_ref[...]
    qpos = tgt0

    # memory half of the fused self-attention input: written once per grid step
    x_sc[L:2 * L, :] = mem0

    tgt = tgt0
    for l in range(n_layers):      # static unroll over decoder layers
        vv = vec_ref[l]            # (17, E) per-layer bias / LayerNorm slab
        sa_bq, sa_bk, sa_bv, sa_bo = vv[0:1], vv[1:2], vv[2:3], vv[3:4]
        ca_bq, ca_bk, ca_bv, ca_bo = vv[4:5], vv[5:6], vv[6:7], vv[7:8]
        b2 = vv[8:9]
        g_tgt, b_tgt = vv[9:10], vv[10:11]
        g_mem, b_mem = vv[11:12], vv[12:13]
        g2, b2n = vv[13:14], vv[14:15]
        g3, b3n = vv[15:16], vv[16:17]

        # --- fused self-attention over [tgt ; memory] (shared sa weights) ---
        x_sc[0:L, :] = tgt                              # only tgt half rewritten
        x = x_sc[...].astype(bf16)                      # (2L, E)
        x2 = _attention(x, x, x, sa_w_ref, sa_wo_ref,
                        sa_bq, sa_bk, sa_bv, sa_bo, l, nhead, 2)
        tgt_n = _layer_norm(tgt + x2[:L], g_tgt, b_tgt, eps)    # norm_tgt
        mem_n = _layer_norm(mem0 + x2[L:], g_mem, b_mem, eps)   # norm_memory

        # --- cross-attn: q = tgt + query_pos, k = mem + pos, v = mem ---
        t2 = _attention(tgt_n + qpos, mem_n + pos, mem_n,
                        ca_w_ref, ca_wo_ref, ca_bq, ca_bk, ca_bv, ca_bo,
                        l, nhead, 1)
        tgt = _layer_norm(tgt_n + t2, g2, b2n, eps)              # norm2

        # --- feed-forward: linear1 -> relu -> linear2 ---
        h = jnp.maximum(
            jnp.dot(tgt.astype(bf16), w1_ref[l],
                    preferred_element_type=jnp.float32) + b1_ref[l], 0.0)
        t2 = jnp.dot(h.astype(bf16), w2_ref[l],
                     preferred_element_type=jnp.float32) + b2
        tgt = _layer_norm(tgt + t2, g3, b3n, eps)                # norm3

    # final decoder LayerNorm
    out_ref[...] = _layer_norm(tgt, fin_ref[0:1], fin_ref[1:2],
                               eps).astype(out_ref.dtype)


# ------------------------- host-side parameter packing ------------------------

def _pack_params(params, *, d_model, nhead):
    """torch-convention stacked params -> kernel layout: (in,out) bf16 weights,
    softmax scale folded into the Q projection, one (NL,17,E) f32 bias/LN slab."""
    E = d_model
    hd = E // nhead
    scale = 1.0 / math.sqrt(hd)
    bf16 = jnp.bfloat16

    def qkv_w(w):                       # (NL, 3E, E) torch (out,in)
        wq = jnp.swapaxes(w[:, :E, :], 1, 2) * scale
        wk = jnp.swapaxes(w[:, E:2 * E, :], 1, 2)
        wv = jnp.swapaxes(w[:, 2 * E:, :], 1, 2)
        return jnp.stack([wq, wk, wv], axis=1).astype(bf16)   # (NL,3,E,E)

    def qkv_b(b):                       # (NL, 1, 3E)
        b = b[:, 0, :]
        return b[:, :E] * scale, b[:, E:2 * E], b[:, 2 * E:]

    sa_w, ca_w = qkv_w(params['sa_w']), qkv_w(params['ca_w'])
    sa_wo = jnp.swapaxes(params['sa_ow'], 1, 2).astype(bf16)
    ca_wo = jnp.swapaxes(params['ca_ow'], 1, 2).astype(bf16)
    w1 = jnp.swapaxes(params['w1'], 1, 2).astype(bf16)        # (NL, E, FF)
    w2 = jnp.swapaxes(params['w2'], 1, 2).astype(bf16)        # (NL, FF, E)
    b1 = params['b1'].astype(jnp.float32)                     # (NL, 1, FF)

    sa_bq, sa_bk, sa_bv = qkv_b(params['sa_b'])
    ca_bq, ca_bk, ca_bv = qkv_b(params['ca_b'])
    r = lambda x: x.reshape(x.shape[0], E)
    vec = jnp.stack([
        sa_bq, sa_bk, sa_bv, r(params['sa_ob']),
        ca_bq, ca_bk, ca_bv, r(params['ca_ob']),
        r(params['b2']),
        r(params['g_tgt']), r(params['b_tgt']),
        r(params['g_mem']), r(params['b_mem']),
        r(params['g2']), r(params['b2n']),
        r(params['g3']), r(params['b3n']),
    ], axis=1).astype(jnp.float32)                            # (NL, 17, E)

    fin = jnp.concatenate([params['g_f'], params['b_f']], axis=0)  # (2, E)

    return [sa_w, ca_w, sa_wo, ca_wo, w1, w2, b1, vec, fin]


# --------------------------------- wrapper -----------------------------------

def transformer_forward(src, query_embed, pos_embed, params, *,
                        d_model, nhead, n_dec_layer, seq_len):
    B = src.shape[0]
    E, L = d_model, seq_len

    # same reshapes as Transformer.forward, batch folded into the row dim
    mem0 = src.reshape(B * L, E).astype(jnp.float32)
    tgt0 = query_embed.reshape(B * L, E).astype(jnp.float32)
    pos = jnp.broadcast_to(pos_embed.astype(jnp.float32),
                           (B, L, E)).reshape(B * L, E)

    packed = _pack_params(params, d_model=E, nhead=nhead)
    kernel = functools.partial(_transformer_kernel, nhead, n_dec_layer, L)

    row_spec = pl.BlockSpec((L, E), lambda b: (b, 0))

    def full_spec(a):
        r = a.ndim
        return pl.BlockSpec(a.shape, lambda b, r=r: (0,) * r)

    # TODO(synk): key_padding / attention masks are None in the reference
    # forward path and are therefore not plumbed into the kernel.
    out = pl.pallas_call(
        kernel,
        out_shape=jax.ShapeDtypeStruct((B * L, E), jnp.float32),
        grid=(B,),
        in_specs=[row_spec, row_spec, row_spec] + [full_spec(a) for a in packed],
        out_specs=row_spec,
        scratch_shapes=[pltpu.VMEM((2 * L, E), jnp.float32)],
        compiler_params=pltpu.CompilerParams(
            dimension_semantics=("parallel",),
            vmem_limit_bytes=32 * 1024 * 1024),
    )(tgt0, mem0, pos, *packed)
    return out.reshape(B, L, E)


# ----------------------------- parameter setup --------------------------------

def init_params(key, d_model, nhead, n_dec_layer, dim_feedforward):
    E, FF, NL = d_model, dim_feedforward, n_dec_layer

    def xavier(k, shape):
        fan_out, fan_in = shape[-2], shape[-1]
        lim = math.sqrt(6.0 / (fan_in + fan_out))
        return jax.random.uniform(k, shape, jnp.float32, -lim, lim)

    ks = jax.random.split(key, 6)
    ones = lambda s: jnp.ones(s, jnp.float32)
    zeros = lambda s: jnp.zeros(s, jnp.float32)
    return {
        # self-attn (same weights applied to tgt and memory within a layer)
        'sa_w': xavier(ks[0], (NL, 3 * E, E)), 'sa_b': zeros((NL, 1, 3 * E)),
        'sa_ow': xavier(ks[1], (NL, E, E)), 'sa_ob': zeros((NL, 1, E)),
        # cross-attn
        'ca_w': xavier(ks[2], (NL, 3 * E, E)), 'ca_b': zeros((NL, 1, 3 * E)),
        'ca_ow': xavier(ks[3], (NL, E, E)), 'ca_ob': zeros((NL, 1, E)),
        # feed-forward
        'w1': xavier(ks[4], (NL, FF, E)), 'b1': zeros((NL, 1, FF)),
        'w2': xavier(ks[5], (NL, E, FF)), 'b2': zeros((NL, 1, E)),
        # layer norms (per layer)
        'g_tgt': ones((NL, 1, E)), 'b_tgt': zeros((NL, 1, E)),
        'g_mem': ones((NL, 1, E)), 'b_mem': zeros((NL, 1, E)),
        'g2': ones((NL, 1, E)), 'b2n': zeros((NL, 1, E)),
        'g3': ones((NL, 1, E)), 'b3n': zeros((NL, 1, E)),
        # final decoder norm
        'g_f': ones((1, E)), 'b_f': zeros((1, E)),
    }


# ----------------------------------- main -------------------------------------

if __name__ == "__main__":
    d_model, nhead, n_dec_layer, dim_feedforward, seq_len = 32, 4, 2, 64, 8
    B = 2

    key = jax.random.PRNGKey(0)
    k_src, k_qe, k_pos, k_par = jax.random.split(key, 4)
    src = jax.random.normal(k_src, (B, seq_len, d_model), jnp.float32)
    query_embed = jax.random.normal(k_qe, (B, seq_len, d_model), jnp.float32)
    pos_embed = jax.random.normal(k_pos, (B, seq_len, d_model), jnp.float32)

    params = init_params(k_par, d_model, nhead, n_dec_layer, dim_feedforward)

    hs = transformer_forward(src, query_embed, pos_embed, params,
                             d_model=d_model, nhead=nhead,
                             n_dec_layer=n_dec_layer, seq_len=seq_len)
    jax.block_until_ready(hs)
    assert hs.shape == (B, seq_len, d_model)
    print("KERNEL_OK")
</pallas_src>

<mosaic_0001>
module attributes {stable_mosaic.version = 11 : i64} {
  func.func @_transformer_kernel(%arg0: i32, %arg1: memref<8x32xf32, #tpu.memory_space<vmem>>, %arg2: memref<8x32xf32, #tpu.memory_space<vmem>>, %arg3: memref<8x32xf32, #tpu.memory_space<vmem>>, %arg4: memref<2x3x32x32xbf16, #tpu.memory_space<vmem>>, %arg5: memref<2x3x32x32xbf16, #tpu.memory_space<vmem>>, %arg6: memref<2x32x32xbf16, #tpu.memory_space<vmem>>, %arg7: memref<2x32x32xbf16, #tpu.memory_space<vmem>>, %arg8: memref<2x32x64xbf16, #tpu.memory_space<vmem>>, %arg9: memref<2x64x32xbf16, #tpu.memory_space<vmem>>, %arg10: memref<2x1x64xf32, #tpu.memory_space<vmem>>, %arg11: memref<2x17x32xf32, #tpu.memory_space<vmem>>, %arg12: memref<2x32xf32, #tpu.memory_space<vmem>>, %arg13: memref<8x32xf32, #tpu.memory_space<vmem>>, %arg14: memref<16x32xf32, #tpu.memory_space<vmem>>) attributes {dimension_semantics = [#tpu.dimension_semantics<parallel>], iteration_bounds = array<i64: 2>, scalar_prefetch = 0 : i64, scratch_operands = 1 : i64, tpu.core_type = #tpu.core_type<tc>, window_params = [{transform_indices = @transform_0, window_bounds = array<i64: 8, 32>}, {transform_indices = @transform_1, window_bounds = array<i64: 8, 32>}, {transform_indices = @transform_2, window_bounds = array<i64: 8, 32>}, {pipeline_mode = #tpu.pipeline_mode<synchronous>, transform_indices = @transform_3, window_bounds = array<i64: 2, 3, 32, 32>}, {pipeline_mode = #tpu.pipeline_mode<synchronous>, transform_indices = @transform_4, window_bounds = array<i64: 2, 3, 32, 32>}, {pipeline_mode = #tpu.pipeline_mode<synchronous>, transform_indices = @transform_5, window_bounds = array<i64: 2, 32, 32>}, {pipeline_mode = #tpu.pipeline_mode<synchronous>, transform_indices = @transform_6, window_bounds = array<i64: 2, 32, 32>}, {pipeline_mode = #tpu.pipeline_mode<synchronous>, transform_indices = @transform_7, window_bounds = array<i64: 2, 32, 64>}, {pipeline_mode = #tpu.pipeline_mode<synchronous>, transform_indices = @transform_8, window_bounds = array<i64: 2, 64, 32>}, {pipeline_mode = #tpu.pipeline_mode<synchronous>, transform_indices = @transform_9, window_bounds = array<i64: 2, 1, 64>}, {pipeline_mode = #tpu.pipeline_mode<synchronous>, transform_indices = @transform_10, window_bounds = array<i64: 2, 17, 32>}, {pipeline_mode = #tpu.pipeline_mode<synchronous>, transform_indices = @transform_11, window_bounds = array<i64: 2, 32>}, {transform_indices = @transform_12, window_bounds = array<i64: 8, 32>}]} {
    %c0 = arith.constant 0 : index
    %c0_0 = arith.constant 0 : index
    %0 = vector.load %arg1[%c0, %c0_0] : memref<8x32xf32, #tpu.memory_space<vmem>>, vector<8x32xf32>
    %c0_1 = arith.constant 0 : index
    %c0_2 = arith.constant 0 : index
    %1 = vector.load %arg2[%c0_1, %c0_2] : memref<8x32xf32, #tpu.memory_space<vmem>>, vector<8x32xf32>
    %c0_3 = arith.constant 0 : index
    %c0_4 = arith.constant 0 : index
    %2 = vector.load %arg3[%c0_3, %c0_4] : memref<8x32xf32, #tpu.memory_space<vmem>>, vector<8x32xf32>
    %c8 = arith.constant 8 : index
    %c0_5 = arith.constant 0 : index
    %3 = vector.load %arg14[%c8, %c0_5] : memref<16x32xf32, #tpu.memory_space<vmem>>, vector<8x32xf32>
    tpu.vector_store %arg14[%c8, %c0_5], %1 {strides = array<i32>} : memref<16x32xf32, #tpu.memory_space<vmem>>, vector<8x32xf32>,
    %c0_6 = arith.constant 0 : index
    %c0_7 = arith.constant 0 : index
    %c0_8 = arith.constant 0 : index
    %4 = vector.load %arg11[%c0_6, %c0_7, %c0_8] : memref<2x17x32xf32, #tpu.memory_space<vmem>>, vector<1x17x32xf32>
    %5 = vector.shape_cast %4 : vector<1x17x32xf32> to vector<17x32xf32>
    %6 = vector.extract_strided_slice %5 {offsets = [0, 0], sizes = [1, 32], strides = [1, 1]} : vector<17x32xf32> to vector<1x32xf32>
    %7 = vector.extract_strided_slice %5 {offsets = [1, 0], sizes = [1, 32], strides = [1, 1]} : vector<17x32xf32> to vector<1x32xf32>
    %8 = vector.extract_strided_slice %5 {offsets = [2, 0], sizes = [1, 32], strides = [1, 1]} : vector<17x32xf32> to vector<1x32xf32>
    %9 = vector.extract_strided_slice %5 {offsets = [3, 0], sizes = [1, 32], strides = [1, 1]} : vector<17x32xf32> to vector<1x32xf32>
    %10 = vector.extract_strided_slice %5 {offsets = [4, 0], sizes = [1, 32], strides = [1, 1]} : vector<17x32xf32> to vector<1x32xf32>
    %11 = vector.extract_strided_slice %5 {offsets = [5, 0], sizes = [1, 32], strides = [1, 1]} : vector<17x32xf32> to vector<1x32xf32>
    %12 = vector.extract_strided_slice %5 {offsets = [6, 0], sizes = [1, 32], strides = [1, 1]} : vector<17x32xf32> to vector<1x32xf32>
    %13 = vector.extract_strided_slice %5 {offsets = [7, 0], sizes = [1, 32], strides = [1, 1]} : vector<17x32xf32> to vector<1x32xf32>
    %14 = vector.extract_strided_slice %5 {offsets = [8, 0], sizes = [1, 32], strides = [1, 1]} : vector<17x32xf32> to vector<1x32xf32>
    %15 = vector.extract_strided_slice %5 {offsets = [9, 0], sizes = [1, 32], strides = [1, 1]} : vector<17x32xf32> to vector<1x32xf32>
    %16 = vector.extract_strided_slice %5 {offsets = [10, 0], sizes = [1, 32], strides = [1, 1]} : vector<17x32xf32> to vector<1x32xf32>
    %17 = vector.extract_strided_slice %5 {offsets = [11, 0], sizes = [1, 32], strides = [1, 1]} : vector<17x32xf32> to vector<1x32xf32>
    %18 = vector.extract_strided_slice %5 {offsets = [12, 0], sizes = [1, 32], strides = [1, 1]} : vector<17x32xf32> to vector<1x32xf32>
    %19 = vector.extract_strided_slice %5 {offsets = [13, 0], sizes = [1, 32], strides = [1, 1]} : vector<17x32xf32> to vector<1x32xf32>
    %20 = vector.extract_strided_slice %5 {offsets = [14, 0], sizes = [1, 32], strides = [1, 1]} : vector<17x32xf32> to vector<1x32xf32>
    %21 = vector.extract_strided_slice %5 {offsets = [15, 0], sizes = [1, 32], strides = [1, 1]} : vector<17x32xf32> to vector<1x32xf32>
    %22 = vector.extract_strided_slice %5 {offsets = [16, 0], sizes = [1, 32], strides = [1, 1]} : vector<17x32xf32> to vector<1x32xf32>
    %c0_9 = arith.constant 0 : index
    %c0_10 = arith.constant 0 : index
    %23 = vector.load %arg14[%c0_9, %c0_10] : memref<16x32xf32, #tpu.memory_space<vmem>>, vector<8x32xf32>
    tpu.vector_store %arg14[%c0_9, %c0_10], %0 {strides = array<i32>} : memref<16x32xf32, #tpu.memory_space<vmem>>, vector<8x32xf32>,
    %c0_11 = arith.constant 0 : index
    %c0_12 = arith.constant 0 : index
    %24 = vector.load %arg14[%c0_11, %c0_12] : memref<16x32xf32, #tpu.memory_space<vmem>>, vector<16x32xf32>
    %25 = arith.truncf %24 : vector<16x32xf32> to vector<16x32xbf16>
    %c0_13 = arith.constant 0 : index
    %c0_14 = arith.constant 0 : index
    %c0_15 = arith.constant 0 : index
    %c0_16 = arith.constant 0 : index
    %26 = vector.load %arg4[%c0_13, %c0_14, %c0_15, %c0_16] : memref<2x3x32x32xbf16, #tpu.memory_space<vmem>>, vector<1x1x32x32xbf16>
    %27 = vector.shape_cast %26 : vector<1x1x32x32xbf16> to vector<32x32xbf16>
    %cst = arith.constant dense<0.000000e+00> : vector<16x32xf32>
    %28 = tpu.matmul %25, %27, %cst {dimension_numbers = #tpu.dot_dimension_numbers<[1], [0], [0], [1], [0, 0, 1, 1], [], []>} : vector<16x32xbf16>, vector<32x32xbf16>, vector<16x32xf32> -> vector<16x32xf32>
    %29 = vector.broadcast %6 : vector<1x32xf32> to vector<16x32xf32>
    %30 = arith.addf %28, %29 : vector<16x32xf32>
    %c0_17 = arith.constant 0 : index
    %c1 = arith.constant 1 : index
    %c0_18 = arith.constant 0 : index
    %c0_19 = arith.constant 0 : index
    %31 = vector.load %arg4[%c0_17, %c1, %c0_18, %c0_19] : memref<2x3x32x32xbf16, #tpu.memory_space<vmem>>, vector<1x1x32x32xbf16>
    %32 = vector.shape_cast %31 : vector<1x1x32x32xbf16> to vector<32x32xbf16>
    %cst_20 = arith.constant dense<0.000000e+00> : vector<16x32xf32>
    %33 = tpu.matmul %25, %32, %cst_20 {dimension_numbers = #tpu.dot_dimension_numbers<[1], [0], [0], [1], [0, 0, 1, 1], [], []>} : vector<16x32xbf16>, vector<32x32xbf16>, vector<16x32xf32> -> vector<16x32xf32>
    %34 = vector.broadcast %7 : vector<1x32xf32> to vector<16x32xf32>
    %35 = arith.addf %33, %34 : vector<16x32xf32>
    %c0_21 = arith.constant 0 : index
    %c2 = arith.constant 2 : index
    %c0_22 = arith.constant 0 : index
    %c0_23 = arith.constant 0 : index
    %36 = vector.load %arg4[%c0_21, %c2, %c0_22, %c0_23] : memref<2x3x32x32xbf16, #tpu.memory_space<vmem>>, vector<1x1x32x32xbf16>
    %37 = vector.shape_cast %36 : vector<1x1x32x32xbf16> to vector<32x32xbf16>
    %cst_24 = arith.constant dense<0.000000e+00> : vector<16x32xf32>
    %38 = tpu.matmul %25, %37, %cst_24 {dimension_numbers = #tpu.dot_dimension_numbers<[1], [0], [0], [1], [0, 0, 1, 1], [], []>} : vector<16x32xbf16>, vector<32x32xbf16>, vector<16x32xf32> -> vector<16x32xf32>
    %39 = vector.broadcast %8 : vector<1x32xf32> to vector<16x32xf32>
    %40 = arith.addf %38, %39 : vector<16x32xf32>
    %41 = vector.shape_cast %30 : vector<16x32xf32> to vector<2x8x32xf32>
    %42 = vector.extract_strided_slice %41 {offsets = [0, 0, 0], sizes = [2, 8, 8], strides = [1, 1, 1]} : vector<2x8x32xf32> to vector<2x8x8xf32>
    %43 = vector.extract_strided_slice %41 {offsets = [0, 0, 8], sizes = [2, 8, 8], strides = [1, 1, 1]} : vector<2x8x32xf32> to vector<2x8x8xf32>
    %44 = vector.extract_strided_slice %41 {offsets = [0, 0, 16], sizes = [2, 8, 8], strides = [1, 1, 1]} : vector<2x8x32xf32> to vector<2x8x8xf32>
    %45 = vector.extract_strided_slice %41 {offsets = [0, 0, 24], sizes = [2, 8, 8], strides = [1, 1, 1]} : vector<2x8x32xf32> to vector<2x8x8xf32>
    %46 = tpu.concatenate %42, %43, %44, %45 in 0 : vector<2x8x8xf32>, vector<2x8x8xf32>, vector<2x8x8xf32>, vector<2x8x8xf32> -> vector<8x8x8xf32>
    %47 = arith.truncf %46 : vector<8x8x8xf32> to vector<8x8x8xbf16>
    %48 = vector.shape_cast %35 : vector<16x32xf32> to vector<2x8x32xf32>
    %49 = vector.extract_strided_slice %48 {offsets = [0, 0, 0], sizes = [2, 8, 8], strides = [1, 1, 1]} : vector<2x8x32xf32> to vector<2x8x8xf32>
    %50 = vector.extract_strided_slice %48 {offsets = [0, 0, 8], sizes = [2, 8, 8], strides = [1, 1, 1]} : vector<2x8x32xf32> to vector<2x8x8xf32>
    %51 = vector.extract_strided_slice %48 {offsets = [0, 0, 16], sizes = [2, 8, 8], strides = [1, 1, 1]} : vector<2x8x32xf32> to vector<2x8x8xf32>
    %52 = vector.extract_strided_slice %48 {offsets = [0, 0, 24], sizes = [2, 8, 8], strides = [1, 1, 1]} : vector<2x8x32xf32> to vector<2x8x8xf32>
    %53 = tpu.concatenate %49, %50, %51, %52 in 0 : vector<2x8x8xf32>, vector<2x8x8xf32>, vector<2x8x8xf32>, vector<2x8x8xf32> -> vector<8x8x8xf32>
    %54 = arith.truncf %53 : vector<8x8x8xf32> to vector<8x8x8xbf16>
    %55 = vector.shape_cast %40 : vector<16x32xf32> to vector<2x8x32xf32>
    %56 = vector.extract_strided_slice %55 {offsets = [0, 0, 0], sizes = [2, 8, 8], strides = [1, 1, 1]} : vector<2x8x32xf32> to vector<2x8x8xf32>
    %57 = vector.extract_strided_slice %55 {offsets = [0, 0, 8], sizes = [2, 8, 8], strides = [1, 1, 1]} : vector<2x8x32xf32> to vector<2x8x8xf32>
    %58 = vector.extract_strided_slice %55 {offsets = [0, 0, 16], sizes = [2, 8, 8], strides = [1, 1, 1]} : vector<2x8x32xf32> to vector<2x8x8xf32>
    %59 = vector.extract_strided_slice %55 {offsets = [0, 0, 24], sizes = [2, 8, 8], strides = [1, 1, 1]} : vector<2x8x32xf32> to vector<2x8x8xf32>
    %60 = tpu.concatenate %56, %57, %58, %59 in 0 : vector<2x8x8xf32>, vector<2x8x8xf32>, vector<2x8x8xf32>, vector<2x8x8xf32> -> vector<8x8x8xf32>
    %61 = arith.truncf %60 : vector<8x8x8xf32> to vector<8x8x8xbf16>
    "tpu.trace_start"() <{level = 10 : i32, message = "gqd,gkd->gqk"}> : () -> ()
    %cst_25 = arith.constant dense<0.000000e+00> : vector<8x8x8xf32>
    %62 = tpu.matmul %47, %54, %cst_25 {dimension_numbers = #tpu.dot_dimension_numbers<[2], [2], [1], [1], [0, 0, 0, 1, 1, 1], [0], [0]>} : vector<8x8x8xbf16>, vector<8x8x8xbf16>, vector<8x8x8xf32> -> vector<8x8x8xf32>
    "tpu.trace_stop"() : () -> ()
    %cst_26 = arith.constant dense<0xFF800000> : vector<8x8xf32>
    %63 = vector.multi_reduction <maximumf>, %62, %cst_26 [2] : vector<8x8x8xf32> to vector<8x8xf32>
    %64 = vector.shape_cast %63 : vector<8x8xf32> to vector<8x8x1xf32>
    %65 = vector.broadcast %64 : vector<8x8x1xf32> to vector<8x8x8xf32>
    %66 = arith.subf %62, %65 : vector<8x8x8xf32>
    %67 = math.exp %66 : vector<8x8x8xf32>
    %cst_27 = arith.constant dense<0.000000e+00> : vector<8x8xf32>
    %68 = vector.multi_reduction <add>, %67, %cst_27 [2] : vector<8x8x8xf32> to vector<8x8xf32>
    %69 = vector.shape_cast %68 : vector<8x8xf32> to vector<8x8x1xf32>
    %70 = tpu.reciprocal %69 {approx = true} : vector<8x8x1xf32> -> vector<8x8x1xf32>
    %71 = vector.broadcast %70 : vector<8x8x1xf32> to vector<8x8x8xf32>
    %72 = arith.mulf %67, %71 : vector<8x8x8xf32>
    %73 = arith.truncf %72 : vector<8x8x8xf32> to vector<8x8x8xbf16>
    "tpu.trace_start"() <{level = 10 : i32, message = "gqk,gkd->gqd"}> : () -> ()
    %cst_28 = arith.constant dense<0.000000e+00> : vector<8x8x8xf32>
    %74 = tpu.matmul %73, %61, %cst_28 {dimension_numbers = #tpu.dot_dimension_numbers<[2], [1], [1], [2], [0, 0, 0, 1, 1, 2], [0], [0]>} : vector<8x8x8xbf16>, vector<8x8x8xbf16>, vector<8x8x8xf32> -> vector<8x8x8xf32>
    "tpu.trace_stop"() : () -> ()
    %75 = vector.extract_strided_slice %74 {offsets = [0, 0, 0], sizes = [2, 8, 8], strides = [1, 1, 1]} : vector<8x8x8xf32> to vector<2x8x8xf32>
    %76 = vector.extract_strided_slice %74 {offsets = [2, 0, 0], sizes = [2, 8, 8], strides = [1, 1, 1]} : vector<8x8x8xf32> to vector<2x8x8xf32>
    %77 = vector.extract_strided_slice %74 {offsets = [4, 0, 0], sizes = [2, 8, 8], strides = [1, 1, 1]} : vector<8x8x8xf32> to vector<2x8x8xf32>
    %78 = vector.extract_strided_slice %74 {offsets = [6, 0, 0], sizes = [2, 8, 8], strides = [1, 1, 1]} : vector<8x8x8xf32> to vector<2x8x8xf32>
    %79 = tpu.concatenate %75, %76, %77, %78 in 2 : vector<2x8x8xf32>, vector<2x8x8xf32>, vector<2x8x8xf32>, vector<2x8x8xf32> -> vector<2x8x32xf32>
    %80 = vector.shape_cast %79 : vector<2x8x32xf32> to vector<16x32xf32>
    %81 = arith.truncf %80 : vector<16x32xf32> to vector<16x32xbf16>
    %c0_29 = arith.constant 0 : index
    %c0_30 = arith.constant 0 : index
    %c0_31 = arith.constant 0 : index
    %82 = vector.load %arg6[%c0_29, %c0_30, %c0_31] : memref<2x32x32xbf16, #tpu.memory_space<vmem>>, vector<1x32x32xbf16>
    %83 = vector.shape_cast %82 : vector<1x32x32xbf16> to vector<32x32xbf16>
    %cst_32 = arith.constant dense<0.000000e+00> : vector<16x32xf32>
    %84 = tpu.matmul %81, %83, %cst_32 {dimension_numbers = #tpu.dot_dimension_numbers<[1], [0], [0], [1], [0, 0, 1, 1], [], []>} : vector<16x32xbf16>, vector<32x32xbf16>, vector<16x32xf32> -> vector<16x32xf32>
    %85 = vector.broadcast %9 : vector<1x32xf32> to vector<16x32xf32>
    %86 = arith.addf %84, %85 : vector<16x32xf32>
    %87 = vector.extract_strided_slice %86 {offsets = [0, 0], sizes = [8, 32], strides = [1, 1]} : vector<16x32xf32> to vector<8x32xf32>
    %88 = arith.addf %0, %87 : vector<8x32xf32>
    %cst_33 = arith.constant dense<0.000000e+00> : vector<8xf32>
    %89 = vector.multi_reduction <add>, %88, %cst_33 [1] : vector<8x32xf32> to vector<8xf32>
    %90 = vector.shape_cast %89 : vector<8xf32> to vector<8x1xf32>
    %cst_34 = arith.constant 3.200000e+01 : f32
    %91 = vector.broadcast %cst_34 : f32 to vector<8x1xf32>
    %92 = arith.divf %90, %91 : vector<8x1xf32>
    %93 = vector.broadcast %92 : vector<8x1xf32> to vector<8x32xf32>
    %94 = arith.subf %88, %93 : vector<8x32xf32>
    %95 = arith.mulf %94, %94 : vector<8x32xf32>
    %cst_35 = arith.constant dense<0.000000e+00> : vector<8xf32>
    %96 = vector.multi_reduction <add>, %95, %cst_35 [1] : vector<8x32xf32> to vector<8xf32>
    %97 = vector.shape_cast %96 : vector<8xf32> to vector<8x1xf32>
    %cst_36 = arith.constant 3.200000e+01 : f32
    %98 = vector.broadcast %cst_36 : f32 to vector<8x1xf32>
    %99 = arith.divf %97, %98 : vector<8x1xf32>
    %100 = vector.broadcast %92 : vector<8x1xf32> to vector<8x32xf32>
    %101 = arith.subf %88, %100 : vector<8x32xf32>
    %cst_37 = arith.constant 9.99999974E-6 : f32
    %102 = vector.broadcast %cst_37 : f32 to vector<8x1xf32>
    %103 = arith.addf %99, %102 : vector<8x1xf32>
    %104 = math.rsqrt %103 : vector<8x1xf32>
    %105 = vector.broadcast %104 : vector<8x1xf32> to vector<8x32xf32>
    %106 = arith.mulf %101, %105 : vector<8x32xf32>
    %107 = vector.broadcast %15 : vector<1x32xf32> to vector<8x32xf32>
    %108 = arith.mulf %106, %107 : vector<8x32xf32>
    %109 = vector.broadcast %16 : vector<1x32xf32> to vector<8x32xf32>
    %110 = arith.addf %108, %109 : vector<8x32xf32>
    %111 = vector.extract_strided_slice %86 {offsets = [8, 0], sizes = [8, 32], strides = [1, 1]} : vector<16x32xf32> to vector<8x32xf32>
    %112 = arith.addf %1, %111 : vector<8x32xf32>
    %cst_38 = arith.constant dense<0.000000e+00> : vector<8xf32>
    %113 = vector.multi_reduction <add>, %112, %cst_38 [1] : vector<8x32xf32> to vector<8xf32>
    %114 = vector.shape_cast %113 : vector<8xf32> to vector<8x1xf32>
    %cst_39 = arith.constant 3.200000e+01 : f32
    %115 = vector.broadcast %cst_39 : f32 to vector<8x1xf32>
    %116 = arith.divf %114, %115 : vector<8x1xf32>
    %117 = vector.broadcast %116 : vector<8x1xf32> to vector<8x32xf32>
    %118 = arith.subf %112, %117 : vector<8x32xf32>
    %119 = arith.mulf %118, %118 : vector<8x32xf32>
    %cst_40 = arith.constant dense<0.000000e+00> : vector<8xf32>
    %120 = vector.multi_reduction <add>, %119, %cst_40 [1] : vector<8x32xf32> to vector<8xf32>
    %121 = vector.shape_cast %120 : vector<8xf32> to vector<8x1xf32>
    %cst_41 = arith.constant 3.200000e+01 : f32
    %122 = vector.broadcast %cst_41 : f32 to vector<8x1xf32>
    %123 = arith.divf %121, %122 : vector<8x1xf32>
    %124 = vector.broadcast %116 : vector<8x1xf32> to vector<8x32xf32>
    %125 = arith.subf %112, %124 : vector<8x32xf32>
    %cst_42 = arith.constant 9.99999974E-6 : f32
    %126 = vector.broadcast %cst_42 : f32 to vector<8x1xf32>
    %127 = arith.addf %123, %126 : vector<8x1xf32>
    %128 = math.rsqrt %127 : vector<8x1xf32>
    %129 = vector.broadcast %128 : vector<8x1xf32> to vector<8x32xf32>
    %130 = arith.mulf %125, %129 : vector<8x32xf32>
    %131 = vector.broadcast %17 : vector<1x32xf32> to vector<8x32xf32>
    %132 = arith.mulf %130, %131 : vector<8x32xf32>
    %133 = vector.broadcast %18 : vector<1x32xf32> to vector<8x32xf32>
    %134 = arith.addf %132, %133 : vector<8x32xf32>
    %135 = arith.addf %110, %0 : vector<8x32xf32>
    %136 = arith.addf %134, %2 : vector<8x32xf32>
    %137 = arith.truncf %135 : vector<8x32xf32> to vector<8x32xbf16>
    %c0_43 = arith.constant 0 : index
    %c0_44 = arith.constant 0 : index
    %c0_45 = arith.constant 0 : index
    %c0_46 = arith.constant 0 : index
    %138 = vector.load %arg5[%c0_43, %c0_44, %c0_45, %c0_46] : memref<2x3x32x32xbf16, #tpu.memory_space<vmem>>, vector<1x1x32x32xbf16>
    %139 = vector.shape_cast %138 : vector<1x1x32x32xbf16> to vector<32x32xbf16>
    %cst_47 = arith.constant dense<0.000000e+00> : vector<8x32xf32>
    %140 = tpu.matmul %137, %139, %cst_47 {dimension_numbers = #tpu.dot_dimension_numbers<[1], [0], [0], [1], [0, 0, 1, 1], [], []>} : vector<8x32xbf16>, vector<32x32xbf16>, vector<8x32xf32> -> vector<8x32xf32>
    %141 = vector.broadcast %10 : vector<1x32xf32> to vector<8x32xf32>
    %142 = arith.addf %140, %141 : vector<8x32xf32>
    %143 = arith.truncf %136 : vector<8x32xf32> to vector<8x32xbf16>
    %c0_48 = arith.constant 0 : index
    %c1_49 = arith.constant 1 : index
    %c0_50 = arith.constant 0 : index
    %c0_51 = arith.constant 0 : index
    %144 = vector.load %arg5[%c0_48, %c1_49, %c0_50, %c0_51] : memref<2x3x32x32xbf16, #tpu.memory_space<vmem>>, vector<1x1x32x32xbf16>
    %145 = vector.shape_cast %144 : vector<1x1x32x32xbf16> to vector<32x32xbf16>
    %cst_52 = arith.constant dense<0.000000e+00> : vector<8x32xf32>
    %146 = tpu.matmul %143, %145, %cst_52 {dimension_numbers = #tpu.dot_dimension_numbers<[1], [0], [0], [1], [0, 0, 1, 1], [], []>} : vector<8x32xbf16>, vector<32x32xbf16>, vector<8x32xf32> -> vector<8x32xf32>
    %147 = vector.broadcast %11 : vector<1x32xf32> to vector<8x32xf32>
    %148 = arith.addf %146, %147 : vector<8x32xf32>
    %149 = arith.truncf %134 : vector<8x32xf32> to vector<8x32xbf16>
    %c0_53 = arith.constant 0 : index
    %c2_54 = arith.constant 2 : index
    %c0_55 = arith.constant 0 : index
    %c0_56 = arith.constant 0 : index
    %150 = vector.load %arg5[%c0_53, %c2_54, %c0_55, %c0_56] : memref<2x3x32x32xbf16, #tpu.memory_space<vmem>>, vector<1x1x32x32xbf16>
    %151 = vector.shape_cast %150 : vector<1x1x32x32xbf16> to vector<32x32xbf16>
    %cst_57 = arith.constant dense<0.000000e+00> : vector<8x32xf32>
    %152 = tpu.matmul %149, %151, %cst_57 {dimension_numbers = #tpu.dot_dimension_numbers<[1], [0], [0], [1], [0, 0, 1, 1], [], []>} : vector<8x32xbf16>, vector<32x32xbf16>, vector<8x32xf32> -> vector<8x32xf32>
    %153 = vector.broadcast %12 : vector<1x32xf32> to vector<8x32xf32>
    %154 = arith.addf %152, %153 : vector<8x32xf32>
    %155 = vector.shape_cast %142 : vector<8x32xf32> to vector<1x8x32xf32>
    %156 = vector.extract_strided_slice %155 {offsets = [0, 0, 0], sizes = [1, 8, 8], strides = [1, 1, 1]} : vector<1x8x32xf32> to vector<1x8x8xf32>
    %157 = vector.extract_strided_slice %155 {offsets = [0, 0, 8], sizes = [1, 8, 8], strides = [1, 1, 1]} : vector<1x8x32xf32> to vector<1x8x8xf32>
    %158 = vector.extract_strided_slice %155 {offsets = [0, 0, 16], sizes = [1, 8, 8], strides = [1, 1, 1]} : vector<1x8x32xf32> to vector<1x8x8xf32>
    %159 = vector.extract_strided_slice %155 {offsets = [0, 0, 24], sizes = [1, 8, 8], strides = [1, 1, 1]} : vector<1x8x32xf32> to vector<1x8x8xf32>
    %160 = tpu.concatenate %156, %157, %158, %159 in 0 : vector<1x8x8xf32>, vector<1x8x8xf32>, vector<1x8x8xf32>, vector<1x8x8xf32> -> vector<4x8x8xf32>
    %161 = arith.truncf %160 : vector<4x8x8xf32> to vector<4x8x8xbf16>
    %162 = vector.shape_cast %148 : vector<8x32xf32> to vector<1x8x32xf32>
    %163 = vector.extract_strided_slice %162 {offsets = [0, 0, 0], sizes = [1, 8, 8], strides = [1, 1, 1]} : vector<1x8x32xf32> to vector<1x8x8xf32>
    %164 = vector.extract_strided_slice %162 {offsets = [0, 0, 8], sizes = [1, 8, 8], strides = [1, 1, 1]} : vector<1x8x32xf32> to vector<1x8x8xf32>
    %165 = vector.extract_strided_slice %162 {offsets = [0, 0, 16], sizes = [1, 8, 8], strides = [1, 1, 1]} : vector<1x8x32xf32> to vector<1x8x8xf32>
    %166 = vector.extract_strided_slice %162 {offsets = [0, 0, 24], sizes = [1, 8, 8], strides = [1, 1, 1]} : vector<1x8x32xf32> to vector<1x8x8xf32>
    %167 = tpu.concatenate %163, %164, %165, %166 in 0 : vector<1x8x8xf32>, vector<1x8x8xf32>, vector<1x8x8xf32>, vector<1x8x8xf32> -> vector<4x8x8xf32>
    %168 = arith.truncf %167 : vector<4x8x8xf32> to vector<4x8x8xbf16>
    %169 = vector.shape_cast %154 : vector<8x32xf32> to vector<1x8x32xf32>
    %170 = vector.extract_strided_slice %169 {offsets = [0, 0, 0], sizes = [1, 8, 8], strides = [1, 1, 1]} : vector<1x8x32xf32> to vector<1x8x8xf32>
    %171 = vector.extract_strided_slice %169 {offsets = [0, 0, 8], sizes = [1, 8, 8], strides = [1, 1, 1]} : vector<1x8x32xf32> to vector<1x8x8xf32>
    %172 = vector.extract_strided_slice %169 {offsets = [0, 0, 16], sizes = [1, 8, 8], strides = [1, 1, 1]} : vector<1x8x32xf32> to vector<1x8x8xf32>
    %173 = vector.extract_strided_slice %169 {offsets = [0, 0, 24], sizes = [1, 8, 8], strides = [1, 1, 1]} : vector<1x8x32xf32> to vector<1x8x8xf32>
    %174 = tpu.concatenate %170, %171, %172, %173 in 0 : vector<1x8x8xf32>, vector<1x8x8xf32>, vector<1x8x8xf32>, vector<1x8x8xf32> -> vector<4x8x8xf32>
    %175 = arith.truncf %174 : vector<4x8x8xf32> to vector<4x8x8xbf16>
    "tpu.trace_start"() <{level = 10 : i32, message = "gqd,gkd->gqk"}> : () -> ()
    %cst_58 = arith.constant dense<0.000000e+00> : vector<4x8x8xf32>
    %176 = tpu.matmul %161, %168, %cst_58 {dimension_numbers = #tpu.dot_dimension_numbers<[2], [2], [1], [1], [0, 0, 0, 1, 1, 1], [0], [0]>} : vector<4x8x8xbf16>, vector<4x8x8xbf16>, vector<4x8x8xf32> -> vector<4x8x8xf32>
    "tpu.trace_stop"() : () -> ()
    %cst_59 = arith.constant dense<0xFF800000> : vector<4x8xf32>
    %177 = vector.multi_reduction <maximumf>, %176, %cst_59 [2] : vector<4x8x8xf32> to vector<4x8xf32>
    %178 = vector.shape_cast %177 : vector<4x8xf32> to vector<4x8x1xf32>
    %179 = vector.broadcast %178 : vector<4x8x1xf32> to vector<4x8x8xf32>
    %180 = arith.subf %176, %179 : vector<4x8x8xf32>
    %181 = math.exp %180 : vector<4x8x8xf32>
    %cst_60 = arith.constant dense<0.000000e+00> : vector<4x8xf32>
    %182 = vector.multi_reduction <add>, %181, %cst_60 [2] : vector<4x8x8xf32> to vector<4x8xf32>
    %183 = vector.shape_cast %182 : vector<4x8xf32> to vector<4x8x1xf32>
    %184 = tpu.reciprocal %183 {approx = true} : vector<4x8x1xf32> -> vector<4x8x1xf32>
    %185 = vector.broadcast %184 : vector<4x8x1xf32> to vector<4x8x8xf32>
    %186 = arith.mulf %181, %185 : vector<4x8x8xf32>
    %187 = arith.truncf %186 : vector<4x8x8xf32> to vector<4x8x8xbf16>
    "tpu.trace_start"() <{level = 10 : i32, message = "gqk,gkd->gqd"}> : () -> ()
    %cst_61 = arith.constant dense<0.000000e+00> : vector<4x8x8xf32>
    %188 = tpu.matmul %187, %175, %cst_61 {dimension_numbers = #tpu.dot_dimension_numbers<[2], [1], [1], [2], [0, 0, 0, 1, 1, 2], [0], [0]>} : vector<4x8x8xbf16>, vector<4x8x8xbf16>, vector<4x8x8xf32> -> vector<4x8x8xf32>
    "tpu.trace_stop"() : () -> ()
    %189 = vector.extract_strided_slice %188 {offsets = [0, 0, 0], sizes = [1, 8, 8], strides = [1, 1, 1]} : vector<4x8x8xf32> to vector<1x8x8xf32>
    %190 = vector.extract_strided_slice %188 {offsets = [1, 0, 0], sizes = [1, 8, 8], strides = [1, 1, 1]} : vector<4x8x8xf32> to vector<1x8x8xf32>
    %191 = vector.extract_strided_slice %188 {offsets = [2, 0, 0], sizes = [1, 8, 8], strides = [1, 1, 1]} : vector<4x8x8xf32> to vector<1x8x8xf32>
    %192 = vector.extract_strided_slice %188 {offsets = [3, 0, 0], sizes = [1, 8, 8], strides = [1, 1, 1]} : vector<4x8x8xf32> to vector<1x8x8xf32>
    %193 = tpu.concatenate %189, %190, %191, %192 in 2 : vector<1x8x8xf32>, vector<1x8x8xf32>, vector<1x8x8xf32>, vector<1x8x8xf32> -> vector<1x8x32xf32>
    %194 = vector.shape_cast %193 : vector<1x8x32xf32> to vector<8x32xf32>
    %195 = arith.truncf %194 : vector<8x32xf32> to vector<8x32xbf16>
    %c0_62 = arith.constant 0 : index
    %c0_63 = arith.constant 0 : index
    %c0_64 = arith.constant 0 : index
    %196 = vector.load %arg7[%c0_62, %c0_63, %c0_64] : memref<2x32x32xbf16, #tpu.memory_space<vmem>>, vector<1x32x32xbf16>
    %197 = vector.shape_cast %196 : vector<1x32x32xbf16> to vector<32x32xbf16>
    %cst_65 = arith.constant dense<0.000000e+00> : vector<8x32xf32>
    %198 = tpu.matmul %195, %197, %cst_65 {dimension_numbers = #tpu.dot_dimension_numbers<[1], [0], [0], [1], [0, 0, 1, 1], [], []>} : vector<8x32xbf16>, vector<32x32xbf16>, vector<8x32xf32> -> vector<8x32xf32>
    %199 = vector.broadcast %13 : vector<1x32xf32> to vector<8x32xf32>
    %200 = arith.addf %198, %199 : vector<8x32xf32>
    %201 = arith.addf %110, %200 : vector<8x32xf32>
    %cst_66 = arith.constant dense<0.000000e+00> : vector<8xf32>
    %202 = vector.multi_reduction <add>, %201, %cst_66 [1] : vector<8x32xf32> to vector<8xf32>
    %203 = vector.shape_cast %202 : vector<8xf32> to vector<8x1xf32>
    %cst_67 = arith.constant 3.200000e+01 : f32
    %204 = vector.broadcast %cst_67 : f32 to vector<8x1xf32>
    %205 = arith.divf %203, %204 : vector<8x1xf32>
    %206 = vector.broadcast %205 : vector<8x1xf32> to vector<8x32xf32>
    %207 = arith.subf %201, %206 : vector<8x32xf32>
    %208 = arith.mulf %207, %207 : vector<8x32xf32>
    %cst_68 = arith.constant dense<0.000000e+00> : vector<8xf32>
    %209 = vector.multi_reduction <add>, %208, %cst_68 [1] : vector<8x32xf32> to vector<8xf32>
    %210 = vector.shape_cast %209 : vector<8xf32> to vector<8x1xf32>
    %cst_69 = arith.constant 3.200000e+01 : f32
    %211 = vector.broadcast %cst_69 : f32 to vector<8x1xf32>
    %212 = arith.divf %210, %211 : vector<8x1xf32>
    %213 = vector.broadcast %205 : vector<8x1xf32> to vector<8x32xf32>
    %214 = arith.subf %201, %213 : vector<8x32xf32>
    %cst_70 = arith.constant 9.99999974E-6 : f32
    %215 = vector.broadcast %cst_70 : f32 to vector<8x1xf32>
    %216 = arith.addf %212, %215 : vector<8x1xf32>
    %217 = math.rsqrt %216 : vector<8x1xf32>
    %218 = vector.broadcast %217 : vector<8x1xf32> to vector<8x32xf32>
    %219 = arith.mulf %214, %218 : vector<8x32xf32>
    %220 = vector.broadcast %19 : vector<1x32xf32> to vector<8x32xf32>
    %221 = arith.mulf %219, %220 : vector<8x32xf32>
    %222 = vector.broadcast %20 : vector<1x32xf32> to vector<8x32xf32>
    %223 = arith.addf %221, %222 : vector<8x32xf32>
    %224 = arith.truncf %223 : vector<8x32xf32> to vector<8x32xbf16>
    %c0_71 = arith.constant 0 : index
    %c0_72 = arith.constant 0 : index
    %c0_73 = arith.constant 0 : index
    %225 = vector.load %arg8[%c0_71, %c0_72, %c0_73] : memref<2x32x64xbf16, #tpu.memory_space<vmem>>, vector<1x32x64xbf16>
    %226 = vector.shape_cast %225 : vector<1x32x64xbf16> to vector<32x64xbf16>
    %cst_74 = arith.constant dense<0.000000e+00> : vector<8x64xf32>
    %227 = tpu.matmul %224, %226, %cst_74 {dimension_numbers = #tpu.dot_dimension_numbers<[1], [0], [0], [1], [0, 0, 1, 1], [], []>} : vector<8x32xbf16>, vector<32x64xbf16>, vector<8x64xf32> -> vector<8x64xf32>
    %c0_75 = arith.constant 0 : index
    %c0_76 = arith.constant 0 : index
    %c0_77 = arith.constant 0 : index
    %228 = vector.load %arg10[%c0_75, %c0_76, %c0_77] : memref<2x1x64xf32, #tpu.memory_space<vmem>>, vector<1x1x64xf32>
    %229 = vector.shape_cast %228 : vector<1x1x64xf32> to vector<1x64xf32>
    %230 = vector.broadcast %229 : vector<1x64xf32> to vector<8x64xf32>
    %231 = arith.addf %227, %230 : vector<8x64xf32>
    %cst_78 = arith.constant 0.000000e+00 : f32
    %232 = vector.broadcast %cst_78 : f32 to vector<8x64xf32>
    %233 = arith.maximumf %231, %232 : vector<8x64xf32>
    %234 = arith.truncf %233 : vector<8x64xf32> to vector<8x64xbf16>
    %c0_79 = arith.constant 0 : index
    %c0_80 = arith.constant 0 : index
    %c0_81 = arith.constant 0 : index
    %235 = vector.load %arg9[%c0_79, %c0_80, %c0_81] : memref<2x64x32xbf16, #tpu.memory_space<vmem>>, vector<1x64x32xbf16>
    %236 = vector.shape_cast %235 : vector<1x64x32xbf16> to vector<64x32xbf16>
    %cst_82 = arith.constant dense<0.000000e+00> : vector<8x32xf32>
    %237 = tpu.matmul %234, %236, %cst_82 {dimension_numbers = #tpu.dot_dimension_numbers<[1], [0], [0], [1], [0, 0, 1, 1], [], []>} : vector<8x64xbf16>, vector<64x32xbf16>, vector<8x32xf32> -> vector<8x32xf32>
    %238 = vector.broadcast %14 : vector<1x32xf32> to vector<8x32xf32>
    %239 = arith.addf %237, %238 : vector<8x32xf32>
    %240 = arith.addf %223, %239 : vector<8x32xf32>
    %cst_83 = arith.constant dense<0.000000e+00> : vector<8xf32>
    %241 = vector.multi_reduction <add>, %240, %cst_83 [1] : vector<8x32xf32> to vector<8xf32>
    %242 = vector.shape_cast %241 : vector<8xf32> to vector<8x1xf32>
    %cst_84 = arith.constant 3.200000e+01 : f32
    %243 = vector.broadcast %cst_84 : f32 to vector<8x1xf32>
    %244 = arith.divf %242, %243 : vector<8x1xf32>
    %245 = vector.broadcast %244 : vector<8x1xf32> to vector<8x32xf32>
    %246 = arith.subf %240, %245 : vector<8x32xf32>
    %247 = arith.mulf %246, %246 : vector<8x32xf32>
    %cst_85 = arith.constant dense<0.000000e+00> : vector<8xf32>
    %248 = vector.multi_reduction <add>, %247, %cst_85 [1] : vector<8x32xf32> to vector<8xf32>
    %249 = vector.shape_cast %248 : vector<8xf32> to vector<8x1xf32>
    %cst_86 = arith.constant 3.200000e+01 : f32
    %250 = vector.broadcast %cst_86 : f32 to vector<8x1xf32>
    %251 = arith.divf %249, %250 : vector<8x1xf32>
    %252 = vector.broadcast %244 : vector<8x1xf32> to vector<8x32xf32>
    %253 = arith.subf %240, %252 : vector<8x32xf32>
    %cst_87 = arith.constant 9.99999974E-6 : f32
    %254 = vector.broadcast %cst_87 : f32 to vector<8x1xf32>
    %255 = arith.addf %251, %254 : vector<8x1xf32>
    %256 = math.rsqrt %255 : vector<8x1xf32>
    %257 = vector.broadcast %256 : vector<8x1xf32> to vector<8x32xf32>
    %258 = arith.mulf %253, %257 : vector<8x32xf32>
    %259 = vector.broadcast %21 : vector<1x32xf32> to vector<8x32xf32>
    %260 = arith.mulf %258, %259 : vector<8x32xf32>
    %261 = vector.broadcast %22 : vector<1x32xf32> to vector<8x32xf32>
    %262 = arith.addf %260, %261 : vector<8x32xf32>
    %c1_88 = arith.constant 1 : index
    %c0_89 = arith.constant 0 : index
    %c0_90 = arith.constant 0 : index
    %263 = vector.load %arg11[%c1_88, %c0_89, %c0_90] : memref<2x17x32xf32, #tpu.memory_space<vmem>>, vector<1x17x32xf32>
    %264 = vector.shape_cast %263 : vector<1x17x32xf32> to vector<17x32xf32>
    %265 = vector.extract_strided_slice %264 {offsets = [0, 0], sizes = [1, 32], strides = [1, 1]} : vector<17x32xf32> to vector<1x32xf32>
    %266 = vector.extract_strided_slice %264 {offsets = [1, 0], sizes = [1, 32], strides = [1, 1]} : vector<17x32xf32> to vector<1x32xf32>
    %267 = vector.extract_strided_slice %264 {offsets = [2, 0], sizes = [1, 32], strides = [1, 1]} : vector<17x32xf32> to vector<1x32xf32>
    %268 = vector.extract_strided_slice %264 {offsets = [3, 0], sizes = [1, 32], strides = [1, 1]} : vector<17x32xf32> to vector<1x32xf32>
    %269 = vector.extract_strided_slice %264 {offsets = [4, 0], sizes = [1, 32], strides = [1, 1]} : vector<17x32xf32> to vector<1x32xf32>
    %270 = vector.extract_strided_slice %264 {offsets = [5, 0], sizes = [1, 32], strides = [1, 1]} : vector<17x32xf32> to vector<1x32xf32>
    %271 = vector.extract_strided_slice %264 {offsets = [6, 0], sizes = [1, 32], strides = [1, 1]} : vector<17x32xf32> to vector<1x32xf32>
    %272 = vector.extract_strided_slice %264 {offsets = [7, 0], sizes = [1, 32], strides = [1, 1]} : vector<17x32xf32> to vector<1x32xf32>
    %273 = vector.extract_strided_slice %264 {offsets = [8, 0], sizes = [1, 32], strides = [1, 1]} : vector<17x32xf32> to vector<1x32xf32>
    %274 = vector.extract_strided_slice %264 {offsets = [9, 0], sizes = [1, 32], strides = [1, 1]} : vector<17x32xf32> to vector<1x32xf32>
    %275 = vector.extract_strided_slice %264 {offsets = [10, 0], sizes = [1, 32], strides = [1, 1]} : vector<17x32xf32> to vector<1x32xf32>
    %276 = vector.extract_strided_slice %264 {offsets = [11, 0], sizes = [1, 32], strides = [1, 1]} : vector<17x32xf32> to vector<1x32xf32>
    %277 = vector.extract_strided_slice %264 {offsets = [12, 0], sizes = [1, 32], strides = [1, 1]} : vector<17x32xf32> to vector<1x32xf32>
    %278 = vector.extract_strided_slice %264 {offsets = [13, 0], sizes = [1, 32], strides = [1, 1]} : vector<17x32xf32> to vector<1x32xf32>
    %279 = vector.extract_strided_slice %264 {offsets = [14, 0], sizes = [1, 32], strides = [1, 1]} : vector<17x32xf32> to vector<1x32xf32>
    %280 = vector.extract_strided_slice %264 {offsets = [15, 0], sizes = [1, 32], strides = [1, 1]} : vector<17x32xf32> to vector<1x32xf32>
    %281 = vector.extract_strided_slice %264 {offsets = [16, 0], sizes = [1, 32], strides = [1, 1]} : vector<17x32xf32> to vector<1x32xf32>
    %c0_91 = arith.constant 0 : index
    %c0_92 = arith.constant 0 : index
    %282 = vector.load %arg14[%c0_91, %c0_92] : memref<16x32xf32, #tpu.memory_space<vmem>>, vector<8x32xf32>
    tpu.vector_store %arg14[%c0_91, %c0_92], %262 {strides = array<i32>} : memref<16x32xf32, #tpu.memory_space<vmem>>, vector<8x32xf32>,
    %c0_93 = arith.constant 0 : index
    %c0_94 = arith.constant 0 : index
    %283 = vector.load %arg14[%c0_93, %c0_94] : memref<16x32xf32, #tpu.memory_space<vmem>>, vector<16x32xf32>
    %284 = arith.truncf %283 : vector<16x32xf32> to vector<16x32xbf16>
    %c1_95 = arith.constant 1 : index
    %c0_96 = arith.constant 0 : index
    %c0_97 = arith.constant 0 : index
    %c0_98 = arith.constant 0 : index
    %285 = vector.load %arg4[%c1_95, %c0_96, %c0_97, %c0_98] : memref<2x3x32x32xbf16, #tpu.memory_space<vmem>>, vector<1x1x32x32xbf16>
    %286 = vector.shape_cast %285 : vector<1x1x32x32xbf16> to vector<32x32xbf16>
    %cst_99 = arith.constant dense<0.000000e+00> : vector<16x32xf32>
    %287 = tpu.matmul %284, %286, %cst_99 {dimension_numbers = #tpu.dot_dimension_numbers<[1], [0], [0], [1], [0, 0, 1, 1], [], []>} : vector<16x32xbf16>, vector<32x32xbf16>, vector<16x32xf32> -> vector<16x32xf32>
    %288 = vector.broadcast %265 : vector<1x32xf32> to vector<16x32xf32>
    %289 = arith.addf %287, %288 : vector<16x32xf32>
    %c1_100 = arith.constant 1 : index
    %c1_101 = arith.constant 1 : index
    %c0_102 = arith.constant 0 : index
    %c0_103 = arith.constant 0 : index
    %290 = vector.load %arg4[%c1_100, %c1_101, %c0_102, %c0_103] : memref<2x3x32x32xbf16, #tpu.memory_space<vmem>>, vector<1x1x32x32xbf16>
    %291 = vector.shape_cast %290 : vector<1x1x32x32xbf16> to vector<32x32xbf16>
    %cst_104 = arith.constant dense<0.000000e+00> : vector<16x32xf32>
    %292 = tpu.matmul %284, %291, %cst_104 {dimension_numbers = #tpu.dot_dimension_numbers<[1], [0], [0], [1], [0, 0, 1, 1], [], []>} : vector<16x32xbf16>, vector<32x32xbf16>, vector<16x32xf32> -> vector<16x32xf32>
    %293 = vector.broadcast %266 : vector<1x32xf32> to vector<16x32xf32>
    %294 = arith.addf %292, %293 : vector<16x32xf32>
    %c1_105 = arith.constant 1 : index
    %c2_106 = arith.constant 2 : index
    %c0_107 = arith.constant 0 : index
    %c0_108 = arith.constant 0 : index
    %295 = vector.load %arg4[%c1_105, %c2_106, %c0_107, %c0_108] : memref<2x3x32x32xbf16, #tpu.memory_space<vmem>>, vector<1x1x32x32xbf16>
    %296 = vector.shape_cast %295 : vector<1x1x32x32xbf16> to vector<32x32xbf16>
    %cst_109 = arith.constant dense<0.000000e+00> : vector<16x32xf32>
    %297 = tpu.matmul %284, %296, %cst_109 {dimension_numbers = #tpu.dot_dimension_numbers<[1], [0], [0], [1], [0, 0, 1, 1], [], []>} : vector<16x32xbf16>, vector<32x32xbf16>, vector<16x32xf32> -> vector<16x32xf32>
    %298 = vector.broadcast %267 : vector<1x32xf32> to vector<16x32xf32>
    %299 = arith.addf %297, %298 : vector<16x32xf32>
    %300 = vector.shape_cast %289 : vector<16x32xf32> to vector<2x8x32xf32>
    %301 = vector.extract_strided_slice %300 {offsets = [0, 0, 0], sizes = [2, 8, 8], strides = [1, 1, 1]} : vector<2x8x32xf32> to vector<2x8x8xf32>
    %302 = vector.extract_strided_slice %300 {offsets = [0, 0, 8], sizes = [2, 8, 8], strides = [1, 1, 1]} : vector<2x8x32xf32> to vector<2x8x8xf32>
    %303 = vector.extract_strided_slice %300 {offsets = [0, 0, 16], sizes = [2, 8, 8], strides = [1, 1, 1]} : vector<2x8x32xf32> to vector<2x8x8xf32>
    %304 = vector.extract_strided_slice %300 {offsets = [0, 0, 24], sizes = [2, 8, 8], strides = [1, 1, 1]} : vector<2x8x32xf32> to vector<2x8x8xf32>
    %305 = tpu.concatenate %301, %302, %303, %304 in 0 : vector<2x8x8xf32>, vector<2x8x8xf32>, vector<2x8x8xf32>, vector<2x8x8xf32> -> vector<8x8x8xf32>
    %306 = arith.truncf %305 : vector<8x8x8xf32> to vector<8x8x8xbf16>
    %307 = vector.shape_cast %294 : vector<16x32xf32> to vector<2x8x32xf32>
    %308 = vector.extract_strided_slice %307 {offsets = [0, 0, 0], sizes = [2, 8, 8], strides = [1, 1, 1]} : vector<2x8x32xf32> to vector<2x8x8xf32>
    %309 = vector.extract_strided_slice %307 {offsets = [0, 0, 8], sizes = [2, 8, 8], strides = [1, 1, 1]} : vector<2x8x32xf32> to vector<2x8x8xf32>
    %310 = vector.extract_strided_slice %307 {offsets = [0, 0, 16], sizes = [2, 8, 8], strides = [1, 1, 1]} : vector<2x8x32xf32> to vector<2x8x8xf32>
    %311 = vector.extract_strided_slice %307 {offsets = [0, 0, 24], sizes = [2, 8, 8], strides = [1, 1, 1]} : vector<2x8x32xf32> to vector<2x8x8xf32>
    %312 = tpu.concatenate %308, %309, %310, %311 in 0 : vector<2x8x8xf32>, vector<2x8x8xf32>, vector<2x8x8xf32>, vector<2x8x8xf32> -> vector<8x8x8xf32>
    %313 = arith.truncf %312 : vector<8x8x8xf32> to vector<8x8x8xbf16>
    %314 = vector.shape_cast %299 : vector<16x32xf32> to vector<2x8x32xf32>
    %315 = vector.extract_strided_slice %314 {offsets = [0, 0, 0], sizes = [2, 8, 8], strides = [1, 1, 1]} : vector<2x8x32xf32> to vector<2x8x8xf32>
    %316 = vector.extract_strided_slice %314 {offsets = [0, 0, 8], sizes = [2, 8, 8], strides = [1, 1, 1]} : vector<2x8x32xf32> to vector<2x8x8xf32>
    %317 = vector.extract_strided_slice %314 {offsets = [0, 0, 16], sizes = [2, 8, 8], strides = [1, 1, 1]} : vector<2x8x32xf32> to vector<2x8x8xf32>
    %318 = vector.extract_strided_slice %314 {offsets = [0, 0, 24], sizes = [2, 8, 8], strides = [1, 1, 1]} : vector<2x8x32xf32> to vector<2x8x8xf32>
    %319 = tpu.concatenate %315, %316, %317, %318 in 0 : vector<2x8x8xf32>, vector<2x8x8xf32>, vector<2x8x8xf32>, vector<2x8x8xf32> -> vector<8x8x8xf32>
    %320 = arith.truncf %319 : vector<8x8x8xf32> to vector<8x8x8xbf16>
    "tpu.trace_start"() <{level = 10 : i32, message = "gqd,gkd->gqk"}> : () -> ()
    %cst_110 = arith.constant dense<0.000000e+00> : vector<8x8x8xf32>
    %321 = tpu.matmul %306, %313, %cst_110 {dimension_numbers = #tpu.dot_dimension_numbers<[2], [2], [1], [1], [0, 0, 0, 1, 1, 1], [0], [0]>} : vector<8x8x8xbf16>, vector<8x8x8xbf16>, vector<8x8x8xf32> -> vector<8x8x8xf32>
    "tpu.trace_stop"() : () -> ()
    %cst_111 = arith.constant dense<0xFF800000> : vector<8x8xf32>
    %322 = vector.multi_reduction <maximumf>, %321, %cst_111 [2] : vector<8x8x8xf32> to vector<8x8xf32>
    %323 = vector.shape_cast %322 : vector<8x8xf32> to vector<8x8x1xf32>
    %324 = vector.broadcast %323 : vector<8x8x1xf32> to vector<8x8x8xf32>
    %325 = arith.subf %321, %324 : vector<8x8x8xf32>
    %326 = math.exp %325 : vector<8x8x8xf32>
    %cst_112 = arith.constant dense<0.000000e+00> : vector<8x8xf32>
    %327 = vector.multi_reduction <add>, %326, %cst_112 [2] : vector<8x8x8xf32> to vector<8x8xf32>
    %328 = vector.shape_cast %327 : vector<8x8xf32> to vector<8x8x1xf32>
    %329 = tpu.reciprocal %328 {approx = true} : vector<8x8x1xf32> -> vector<8x8x1xf32>
    %330 = vector.broadcast %329 : vector<8x8x1xf32> to vector<8x8x8xf32>
    %331 = arith.mulf %326, %330 : vector<8x8x8xf32>
    %332 = arith.truncf %331 : vector<8x8x8xf32> to vector<8x8x8xbf16>
    "tpu.trace_start"() <{level = 10 : i32, message = "gqk,gkd->gqd"}> : () -> ()
    %cst_113 = arith.constant dense<0.000000e+00> : vector<8x8x8xf32>
    %333 = tpu.matmul %332, %320, %cst_113 {dimension_numbers = #tpu.dot_dimension_numbers<[2], [1], [1], [2], [0, 0, 0, 1, 1, 2], [0], [0]>} : vector<8x8x8xbf16>, vector<8x8x8xbf16>, vector<8x8x8xf32> -> vector<8x8x8xf32>
    "tpu.trace_stop"() : () -> ()
    %334 = vector.extract_strided_slice %333 {offsets = [0, 0, 0], sizes = [2, 8, 8], strides = [1, 1, 1]} : vector<8x8x8xf32> to vector<2x8x8xf32>
    %335 = vector.extract_strided_slice %333 {offsets = [2, 0, 0], sizes = [2, 8, 8], strides = [1, 1, 1]} : vector<8x8x8xf32> to vector<2x8x8xf32>
    %336 = vector.extract_strided_slice %333 {offsets = [4, 0, 0], sizes = [2, 8, 8], strides = [1, 1, 1]} : vector<8x8x8xf32> to vector<2x8x8xf32>
    %337 = vector.extract_strided_slice %333 {offsets = [6, 0, 0], sizes = [2, 8, 8], strides = [1, 1, 1]} : vector<8x8x8xf32> to vector<2x8x8xf32>
    %338 = tpu.concatenate %334, %335, %336, %337 in 2 : vector<2x8x8xf32>, vector<2x8x8xf32>, vector<2x8x8xf32>, vector<2x8x8xf32> -> vector<2x8x32xf32>
    %339 = vector.shape_cast %338 : vector<2x8x32xf32> to vector<16x32xf32>
    %340 = arith.truncf %339 : vector<16x32xf32> to vector<16x32xbf16>
    %c1_114 = arith.constant 1 : index
    %c0_115 = arith.constant 0 : index
    %c0_116 = arith.constant 0 : index
    %341 = vector.load %arg6[%c1_114, %c0_115, %c0_116] : memref<2x32x32xbf16, #tpu.memory_space<vmem>>, vector<1x32x32xbf16>
    %342 = vector.shape_cast %341 : vector<1x32x32xbf16> to vector<32x32xbf16>
    %cst_117 = arith.constant dense<0.000000e+00> : vector<16x32xf32>
    %343 = tpu.matmul %340, %342, %cst_117 {dimension_numbers = #tpu.dot_dimension_numbers<[1], [0], [0], [1], [0, 0, 1, 1], [], []>} : vector<16x32xbf16>, vector<32x32xbf16>, vector<16x32xf32> -> vector<16x32xf32>
    %344 = vector.broadcast %268 : vector<1x32xf32> to vector<16x32xf32>
    %345 = arith.addf %343, %344 : vector<16x32xf32>
    %346 = vector.extract_strided_slice %345 {offsets = [0, 0], sizes = [8, 32], strides = [1, 1]} : vector<16x32xf32> to vector<8x32xf32>
    %347 = arith.addf %262, %346 : vector<8x32xf32>
    %cst_118 = arith.constant dense<0.000000e+00> : vector<8xf32>
    %348 = vector.multi_reduction <add>, %347, %cst_118 [1] : vector<8x32xf32> to vector<8xf32>
    %349 = vector.shape_cast %348 : vector<8xf32> to vector<8x1xf32>
    %cst_119 = arith.constant 3.200000e+01 : f32
    %350 = vector.broadcast %cst_119 : f32 to vector<8x1xf32>
    %351 = arith.divf %349, %350 : vector<8x1xf32>
    %352 = vector.broadcast %351 : vector<8x1xf32> to vector<8x32xf32>
    %353 = arith.subf %347, %352 : vector<8x32xf32>
    %354 = arith.mulf %353, %353 : vector<8x32xf32>
    %cst_120 = arith.constant dense<0.000000e+00> : vector<8xf32>
    %355 = vector.multi_reduction <add>, %354, %cst_120 [1] : vector<8x32xf32> to vector<8xf32>
    %356 = vector.shape_cast %355 : vector<8xf32> to vector<8x1xf32>
    %cst_121 = arith.constant 3.200000e+01 : f32
    %357 = vector.broadcast %cst_121 : f32 to vector<8x1xf32>
    %358 = arith.divf %356, %357 : vector<8x1xf32>
    %359 = vector.broadcast %351 : vector<8x1xf32> to vector<8x32xf32>
    %360 = arith.subf %347, %359 : vector<8x32xf32>
    %cst_122 = arith.constant 9.99999974E-6 : f32
    %361 = vector.broadcast %cst_122 : f32 to vector<8x1xf32>
    %362 = arith.addf %358, %361 : vector<8x1xf32>
    %363 = math.rsqrt %362 : vector<8x1xf32>
    %364 = vector.broadcast %363 : vector<8x1xf32> to vector<8x32xf32>
    %365 = arith.mulf %360, %364 : vector<8x32xf32>
    %366 = vector.broadcast %274 : vector<1x32xf32> to vector<8x32xf32>
    %367 = arith.mulf %365, %366 : vector<8x32xf32>
    %368 = vector.broadcast %275 : vector<1x32xf32> to vector<8x32xf32>
    %369 = arith.addf %367, %368 : vector<8x32xf32>
    %370 = vector.extract_strided_slice %345 {offsets = [8, 0], sizes = [8, 32], strides = [1, 1]} : vector<16x32xf32> to vector<8x32xf32>
    %371 = arith.addf %1, %370 : vector<8x32xf32>
    %cst_123 = arith.constant dense<0.000000e+00> : vector<8xf32>
    %372 = vector.multi_reduction <add>, %371, %cst_123 [1] : vector<8x32xf32> to vector<8xf32>
    %373 = vector.shape_cast %372 : vector<8xf32> to vector<8x1xf32>
    %cst_124 = arith.constant 3.200000e+01 : f32
    %374 = vector.broadcast %cst_124 : f32 to vector<8x1xf32>
    %375 = arith.divf %373, %374 : vector<8x1xf32>
    %376 = vector.broadcast %375 : vector<8x1xf32> to vector<8x32xf32>
    %377 = arith.subf %371, %376 : vector<8x32xf32>
    %378 = arith.mulf %377, %377 : vector<8x32xf32>
    %cst_125 = arith.constant dense<0.000000e+00> : vector<8xf32>
    %379 = vector.multi_reduction <add>, %378, %cst_125 [1] : vector<8x32xf32> to vector<8xf32>
    %380 = vector.shape_cast %379 : vector<8xf32> to vector<8x1xf32>
    %cst_126 = arith.constant 3.200000e+01 : f32
    %381 = vector.broadcast %cst_126 : f32 to vector<8x1xf32>
    %382 = arith.divf %380, %381 : vector<8x1xf32>
    %383 = vector.broadcast %375 : vector<8x1xf32> to vector<8x32xf32>
    %384 = arith.subf %371, %383 : vector<8x32xf32>
    %cst_127 = arith.constant 9.99999974E-6 : f32
    %385 = vector.broadcast %cst_127 : f32 to vector<8x1xf32>
    %386 = arith.addf %382, %385 : vector<8x1xf32>
    %387 = math.rsqrt %386 : vector<8x1xf32>
    %388 = vector.broadcast %387 : vector<8x1xf32> to vector<8x32xf32>
    %389 = arith.mulf %384, %388 : vector<8x32xf32>
    %390 = vector.broadcast %276 : vector<1x32xf32> to vector<8x32xf32>
    %391 = arith.mulf %389, %390 : vector<8x32xf32>
    %392 = vector.broadcast %277 : vector<1x32xf32> to vector<8x32xf32>
    %393 = arith.addf %391, %392 : vector<8x32xf32>
    %394 = arith.addf %369, %0 : vector<8x32xf32>
    %395 = arith.addf %393, %2 : vector<8x32xf32>
    %396 = arith.truncf %394 : vector<8x32xf32> to vector<8x32xbf16>
    %c1_128 = arith.constant 1 : index
    %c0_129 = arith.constant 0 : index
    %c0_130 = arith.constant 0 : index
    %c0_131 = arith.constant 0 : index
    %397 = vector.load %arg5[%c1_128, %c0_129, %c0_130, %c0_131] : memref<2x3x32x32xbf16, #tpu.memory_space<vmem>>, vector<1x1x32x32xbf16>
    %398 = vector.shape_cast %397 : vector<1x1x32x32xbf16> to vector<32x32xbf16>
    %cst_132 = arith.constant dense<0.000000e+00> : vector<8x32xf32>
    %399 = tpu.matmul %396, %398, %cst_132 {dimension_numbers = #tpu.dot_dimension_numbers<[1], [0], [0], [1], [0, 0, 1, 1], [], []>} : vector<8x32xbf16>, vector<32x32xbf16>, vector<8x32xf32> -> vector<8x32xf32>
    %400 = vector.broadcast %269 : vector<1x32xf32> to vector<8x32xf32>
    %401 = arith.addf %399, %400 : vector<8x32xf32>
    %402 = arith.truncf %395 : vector<8x32xf32> to vector<8x32xbf16>
    %c1_133 = arith.constant 1 : index
    %c1_134 = arith.constant 1 : index
    %c0_135 = arith.constant 0 : index
    %c0_136 = arith.constant 0 : index
    %403 = vector.load %arg5[%c1_133, %c1_134, %c0_135, %c0_136] : memref<2x3x32x32xbf16, #tpu.memory_space<vmem>>, vector<1x1x32x32xbf16>
    %404 = vector.shape_cast %403 : vector<1x1x32x32xbf16> to vector<32x32xbf16>
    %cst_137 = arith.constant dense<0.000000e+00> : vector<8x32xf32>
    %405 = tpu.matmul %402, %404, %cst_137 {dimension_numbers = #tpu.dot_dimension_numbers<[1], [0], [0], [1], [0, 0, 1, 1], [], []>} : vector<8x32xbf16>, vector<32x32xbf16>, vector<8x32xf32> -> vector<8x32xf32>
    %406 = vector.broadcast %270 : vector<1x32xf32> to vector<8x32xf32>
    %407 = arith.addf %405, %406 : vector<8x32xf32>
    %408 = arith.truncf %393 : vector<8x32xf32> to vector<8x32xbf16>
    %c1_138 = arith.constant 1 : index
    %c2_139 = arith.constant 2 : index
    %c0_140 = arith.constant 0 : index
    %c0_141 = arith.constant 0 : index
    %409 = vector.load %arg5[%c1_138, %c2_139, %c0_140, %c0_141] : memref<2x3x32x32xbf16, #tpu.memory_space<vmem>>, vector<1x1x32x32xbf16>
    %410 = vector.shape_cast %409 : vector<1x1x32x32xbf16> to vector<32x32xbf16>
    %cst_142 = arith.constant dense<0.000000e+00> : vector<8x32xf32>
    %411 = tpu.matmul %408, %410, %cst_142 {dimension_numbers = #tpu.dot_dimension_numbers<[1], [0], [0], [1], [0, 0, 1, 1], [], []>} : vector<8x32xbf16>, vector<32x32xbf16>, vector<8x32xf32> -> vector<8x32xf32>
    %412 = vector.broadcast %271 : vector<1x32xf32> to vector<8x32xf32>
    %413 = arith.addf %411, %412 : vector<8x32xf32>
    %414 = vector.shape_cast %401 : vector<8x32xf32> to vector<1x8x32xf32>
    %415 = vector.extract_strided_slice %414 {offsets = [0, 0, 0], sizes = [1, 8, 8], strides = [1, 1, 1]} : vector<1x8x32xf32> to vector<1x8x8xf32>
    %416 = vector.extract_strided_slice %414 {offsets = [0, 0, 8], sizes = [1, 8, 8], strides = [1, 1, 1]} : vector<1x8x32xf32> to vector<1x8x8xf32>
    %417 = vector.extract_strided_slice %414 {offsets = [0, 0, 16], sizes = [1, 8, 8], strides = [1, 1, 1]} : vector<1x8x32xf32> to vector<1x8x8xf32>
    %418 = vector.extract_strided_slice %414 {offsets = [0, 0, 24], sizes = [1, 8, 8], strides = [1, 1, 1]} : vector<1x8x32xf32> to vector<1x8x8xf32>
    %419 = tpu.concatenate %415, %416, %417, %418 in 0 : vector<1x8x8xf32>, vector<1x8x8xf32>, vector<1x8x8xf32>, vector<1x8x8xf32> -> vector<4x8x8xf32>
    %420 = arith.truncf %419 : vector<4x8x8xf32> to vector<4x8x8xbf16>
    %421 = vector.shape_cast %407 : vector<8x32xf32> to vector<1x8x32xf32>
    %422 = vector.extract_strided_slice %421 {offsets = [0, 0, 0], sizes = [1, 8, 8], strides = [1, 1, 1]} : vector<1x8x32xf32> to vector<1x8x8xf32>
    %423 = vector.extract_strided_slice %421 {offsets = [0, 0, 8], sizes = [1, 8, 8], strides = [1, 1, 1]} : vector<1x8x32xf32> to vector<1x8x8xf32>
    %424 = vector.extract_strided_slice %421 {offsets = [0, 0, 16], sizes = [1, 8, 8], strides = [1, 1, 1]} : vector<1x8x32xf32> to vector<1x8x8xf32>
    %425 = vector.extract_strided_slice %421 {offsets = [0, 0, 24], sizes = [1, 8, 8], strides = [1, 1, 1]} : vector<1x8x32xf32> to vector<1x8x8xf32>
    %426 = tpu.concatenate %422, %423, %424, %425 in 0 : vector<1x8x8xf32>, vector<1x8x8xf32>, vector<1x8x8xf32>, vector<1x8x8xf32> -> vector<4x8x8xf32>
    %427 = arith.truncf %426 : vector<4x8x8xf32> to vector<4x8x8xbf16>
    %428 = vector.shape_cast %413 : vector<8x32xf32> to vector<1x8x32xf32>
    %429 = vector.extract_strided_slice %428 {offsets = [0, 0, 0], sizes = [1, 8, 8], strides = [1, 1, 1]} : vector<1x8x32xf32> to vector<1x8x8xf32>
    %430 = vector.extract_strided_slice %428 {offsets = [0, 0, 8], sizes = [1, 8, 8], strides = [1, 1, 1]} : vector<1x8x32xf32> to vector<1x8x8xf32>
    %431 = vector.extract_strided_slice %428 {offsets = [0, 0, 16], sizes = [1, 8, 8], strides = [1, 1, 1]} : vector<1x8x32xf32> to vector<1x8x8xf32>
    %432 = vector.extract_strided_slice %428 {offsets = [0, 0, 24], sizes = [1, 8, 8], strides = [1, 1, 1]} : vector<1x8x32xf32> to vector<1x8x8xf32>
    %433 = tpu.concatenate %429, %430, %431, %432 in 0 : vector<1x8x8xf32>, vector<1x8x8xf32>, vector<1x8x8xf32>, vector<1x8x8xf32> -> vector<4x8x8xf32>
    %434 = arith.truncf %433 : vector<4x8x8xf32> to vector<4x8x8xbf16>
    "tpu.trace_start"() <{level = 10 : i32, message = "gqd,gkd->gqk"}> : () -> ()
    %cst_143 = arith.constant dense<0.000000e+00> : vector<4x8x8xf32>
    %435 = tpu.matmul %420, %427, %cst_143 {dimension_numbers = #tpu.dot_dimension_numbers<[2], [2], [1], [1], [0, 0, 0, 1, 1, 1], [0], [0]>} : vector<4x8x8xbf16>, vector<4x8x8xbf16>, vector<4x8x8xf32> -> vector<4x8x8xf32>
    "tpu.trace_stop"() : () -> ()
    %cst_144 = arith.constant dense<0xFF800000> : vector<4x8xf32>
    %436 = vector.multi_reduction <maximumf>, %435, %cst_144 [2] : vector<4x8x8xf32> to vector<4x8xf32>
    %437 = vector.shape_cast %436 : vector<4x8xf32> to vector<4x8x1xf32>
    %438 = vector.broadcast %437 : vector<4x8x1xf32> to vector<4x8x8xf32>
    %439 = arith.subf %435, %438 : vector<4x8x8xf32>
    %440 = math.exp %439 : vector<4x8x8xf32>
    %cst_145 = arith.constant dense<0.000000e+00> : vector<4x8xf32>
    %441 = vector.multi_reduction <add>, %440, %cst_145 [2] : vector<4x8x8xf32> to vector<4x8xf32>
    %442 = vector.shape_cast %441 : vector<4x8xf32> to vector<4x8x1xf32>
    %443 = tpu.reciprocal %442 {approx = true} : vector<4x8x1xf32> -> vector<4x8x1xf32>
    %444 = vector.broadcast %443 : vector<4x8x1xf32> to vector<4x8x8xf32>
    %445 = arith.mulf %440, %444 : vector<4x8x8xf32>
    %446 = arith.truncf %445 : vector<4x8x8xf32> to vector<4x8x8xbf16>
    "tpu.trace_start"() <{level = 10 : i32, message = "gqk,gkd->gqd"}> : () -> ()
    %cst_146 = arith.constant dense<0.000000e+00> : vector<4x8x8xf32>
    %447 = tpu.matmul %446, %434, %cst_146 {dimension_numbers = #tpu.dot_dimension_numbers<[2], [1], [1], [2], [0, 0, 0, 1, 1, 2], [0], [0]>} : vector<4x8x8xbf16>, vector<4x8x8xbf16>, vector<4x8x8xf32> -> vector<4x8x8xf32>
    "tpu.trace_stop"() : () -> ()
    %448 = vector.extract_strided_slice %447 {offsets = [0, 0, 0], sizes = [1, 8, 8], strides = [1, 1, 1]} : vector<4x8x8xf32> to vector<1x8x8xf32>
    %449 = vector.extract_strided_slice %447 {offsets = [1, 0, 0], sizes = [1, 8, 8], strides = [1, 1, 1]} : vector<4x8x8xf32> to vector<1x8x8xf32>
    %450 = vector.extract_strided_slice %447 {offsets = [2, 0, 0], sizes = [1, 8, 8], strides = [1, 1, 1]} : vector<4x8x8xf32> to vector<1x8x8xf32>
    %451 = vector.extract_strided_slice %447 {offsets = [3, 0, 0], sizes = [1, 8, 8], strides = [1, 1, 1]} : vector<4x8x8xf32> to vector<1x8x8xf32>
    %452 = tpu.concatenate %448, %449, %450, %451 in 2 : vector<1x8x8xf32>, vector<1x8x8xf32>, vector<1x8x8xf32>, vector<1x8x8xf32> -> vector<1x8x32xf32>
    %453 = vector.shape_cast %452 : vector<1x8x32xf32> to vector<8x32xf32>
    %454 = arith.truncf %453 : vector<8x32xf32> to vector<8x32xbf16>
    %c1_147 = arith.constant 1 : index
    %c0_148 = arith.constant 0 : index
    %c0_149 = arith.constant 0 : index
    %455 = vector.load %arg7[%c1_147, %c0_148, %c0_149] : memref<2x32x32xbf16, #tpu.memory_space<vmem>>, vector<1x32x32xbf16>
    %456 = vector.shape_cast %455 : vector<1x32x32xbf16> to vector<32x32xbf16>
    %cst_150 = arith.constant dense<0.000000e+00> : vector<8x32xf32>
    %457 = tpu.matmul %454, %456, %cst_150 {dimension_numbers = #tpu.dot_dimension_numbers<[1], [0], [0], [1], [0, 0, 1, 1], [], []>} : vector<8x32xbf16>, vector<32x32xbf16>, vector<8x32xf32> -> vector<8x32xf32>
    %458 = vector.broadcast %272 : vector<1x32xf32> to vector<8x32xf32>
    %459 = arith.addf %457, %458 : vector<8x32xf32>
    %460 = arith.addf %369, %459 : vector<8x32xf32>
    %cst_151 = arith.constant dense<0.000000e+00> : vector<8xf32>
    %461 = vector.multi_reduction <add>, %460, %cst_151 [1] : vector<8x32xf32> to vector<8xf32>
    %462 = vector.shape_cast %461 : vector<8xf32> to vector<8x1xf32>
    %cst_152 = arith.constant 3.200000e+01 : f32
    %463 = vector.broadcast %cst_152 : f32 to vector<8x1xf32>
    %464 = arith.divf %462, %463 : vector<8x1xf32>
    %465 = vector.broadcast %464 : vector<8x1xf32> to vector<8x32xf32>
    %466 = arith.subf %460, %465 : vector<8x32xf32>
    %467 = arith.mulf %466, %466 : vector<8x32xf32>
    %cst_153 = arith.constant dense<0.000000e+00> : vector<8xf32>
    %468 = vector.multi_reduction <add>, %467, %cst_153 [1] : vector<8x32xf32> to vector<8xf32>
    %469 = vector.shape_cast %468 : vector<8xf32> to vector<8x1xf32>
    %cst_154 = arith.constant 3.200000e+01 : f32
    %470 = vector.broadcast %cst_154 : f32 to vector<8x1xf32>
    %471 = arith.divf %469, %470 : vector<8x1xf32>
    %472 = vector.broadcast %464 : vector<8x1xf32> to vector<8x32xf32>
    %473 = arith.subf %460, %472 : vector<8x32xf32>
    %cst_155 = arith.constant 9.99999974E-6 : f32
    %474 = vector.broadcast %cst_155 : f32 to vector<8x1xf32>
    %475 = arith.addf %471, %474 : vector<8x1xf32>
    %476 = math.rsqrt %475 : vector<8x1xf32>
    %477 = vector.broadcast %476 : vector<8x1xf32> to vector<8x32xf32>
    %478 = arith.mulf %473, %477 : vector<8x32xf32>
    %479 = vector.broadcast %278 : vector<1x32xf32> to vector<8x32xf32>
    %480 = arith.mulf %478, %479 : vector<8x32xf32>
    %481 = vector.broadcast %279 : vector<1x32xf32> to vector<8x32xf32>
    %482 = arith.addf %480, %481 : vector<8x32xf32>
    %483 = arith.truncf %482 : vector<8x32xf32> to vector<8x32xbf16>
    %c1_156 = arith.constant 1 : index
    %c0_157 = arith.constant 0 : index
    %c0_158 = arith.constant 0 : index
    %484 = vector.load %arg8[%c1_156, %c0_157, %c0_158] : memref<2x32x64xbf16, #tpu.memory_space<vmem>>, vector<1x32x64xbf16>
    %485 = vector.shape_cast %484 : vector<1x32x64xbf16> to vector<32x64xbf16>
    %cst_159 = arith.constant dense<0.000000e+00> : vector<8x64xf32>
    %486 = tpu.matmul %483, %485, %cst_159 {dimension_numbers = #tpu.dot_dimension_numbers<[1], [0], [0], [1], [0, 0, 1, 1], [], []>} : vector<8x32xbf16>, vector<32x64xbf16>, vector<8x64xf32> -> vector<8x64xf32>
    %c1_160 = arith.constant 1 : index
    %c0_161 = arith.constant 0 : index
    %c0_162 = arith.constant 0 : index
    %487 = vector.load %arg10[%c1_160, %c0_161, %c0_162] : memref<2x1x64xf32, #tpu.memory_space<vmem>>, vector<1x1x64xf32>
    %488 = vector.shape_cast %487 : vector<1x1x64xf32> to vector<1x64xf32>
    %489 = vector.broadcast %488 : vector<1x64xf32> to vector<8x64xf32>
    %490 = arith.addf %486, %489 : vector<8x64xf32>
    %cst_163 = arith.constant 0.000000e+00 : f32
    %491 = vector.broadcast %cst_163 : f32 to vector<8x64xf32>
    %492 = arith.maximumf %490, %491 : vector<8x64xf32>
    %493 = arith.truncf %492 : vector<8x64xf32> to vector<8x64xbf16>
    %c1_164 = arith.constant 1 : index
    %c0_165 = arith.constant 0 : index
    %c0_166 = arith.constant 0 : index
    %494 = vector.load %arg9[%c1_164, %c0_165, %c0_166] : memref<2x64x32xbf16, #tpu.memory_space<vmem>>, vector<1x64x32xbf16>
    %495 = vector.shape_cast %494 : vector<1x64x32xbf16> to vector<64x32xbf16>
    %cst_167 = arith.constant dense<0.000000e+00> : vector<8x32xf32>
    %496 = tpu.matmul %493, %495, %cst_167 {dimension_numbers = #tpu.dot_dimension_numbers<[1], [0], [0], [1], [0, 0, 1, 1], [], []>} : vector<8x64xbf16>, vector<64x32xbf16>, vector<8x32xf32> -> vector<8x32xf32>
    %497 = vector.broadcast %273 : vector<1x32xf32> to vector<8x32xf32>
    %498 = arith.addf %496, %497 : vector<8x32xf32>
    %499 = arith.addf %482, %498 : vector<8x32xf32>
    %cst_168 = arith.constant dense<0.000000e+00> : vector<8xf32>
    %500 = vector.multi_reduction <add>, %499, %cst_168 [1] : vector<8x32xf32> to vector<8xf32>
    %501 = vector.shape_cast %500 : vector<8xf32> to vector<8x1xf32>
    %cst_169 = arith.constant 3.200000e+01 : f32
    %502 = vector.broadcast %cst_169 : f32 to vector<8x1xf32>
    %503 = arith.divf %501, %502 : vector<8x1xf32>
    %504 = vector.broadcast %503 : vector<8x1xf32> to vector<8x32xf32>
    %505 = arith.subf %499, %504 : vector<8x32xf32>
    %506 = arith.mulf %505, %505 : vector<8x32xf32>
    %cst_170 = arith.constant dense<0.000000e+00> : vector<8xf32>
    %507 = vector.multi_reduction <add>, %506, %cst_170 [1] : vector<8x32xf32> to vector<8xf32>
    %508 = vector.shape_cast %507 : vector<8xf32> to vector<8x1xf32>
    %cst_171 = arith.constant 3.200000e+01 : f32
    %509 = vector.broadcast %cst_171 : f32 to vector<8x1xf32>
    %510 = arith.divf %508, %509 : vector<8x1xf32>
    %511 = vector.broadcast %503 : vector<8x1xf32> to vector<8x32xf32>
    %512 = arith.subf %499, %511 : vector<8x32xf32>
    %cst_172 = arith.constant 9.99999974E-6 : f32
    %513 = vector.broadcast %cst_172 : f32 to vector<8x1xf32>
    %514 = arith.addf %510, %513 : vector<8x1xf32>
    %515 = math.rsqrt %514 : vector<8x1xf32>
    %516 = vector.broadcast %515 : vector<8x1xf32> to vector<8x32xf32>
    %517 = arith.mulf %512, %516 : vector<8x32xf32>
    %518 = vector.broadcast %280 : vector<1x32xf32> to vector<8x32xf32>
    %519 = arith.mulf %517, %518 : vector<8x32xf32>
    %520 = vector.broadcast %281 : vector<1x32xf32> to vector<8x32xf32>
    %521 = arith.addf %519, %520 : vector<8x32xf32>
    %c0_173 = arith.constant 0 : index
    %c0_174 = arith.constant 0 : index
    %522 = vector.load %arg12[%c0_173, %c0_174] : memref<2x32xf32, #tpu.memory_space<vmem>>, vector<1x32xf32>
    %c1_175 = arith.constant 1 : index
    %c0_176 = arith.constant 0 : index
    %523 = vector.load %arg12[%c1_175, %c0_176] : memref<2x32xf32, #tpu.memory_space<vmem>>, vector<1x32xf32>
    %cst_177 = arith.constant dense<0.000000e+00> : vector<8xf32>
    %524 = vector.multi_reduction <add>, %521, %cst_177 [1] : vector<8x32xf32> to vector<8xf32>
    %525 = vector.shape_cast %524 : vector<8xf32> to vector<8x1xf32>
    %cst_178 = arith.constant 3.200000e+01 : f32
    %526 = vector.broadcast %cst_178 : f32 to vector<8x1xf32>
    %527 = arith.divf %525, %526 : vector<8x1xf32>
    %528 = vector.broadcast %527 : vector<8x1xf32> to vector<8x32xf32>
    %529 = arith.subf %521, %528 : vector<8x32xf32>
    %530 = arith.mulf %529, %529 : vector<8x32xf32>
    %cst_179 = arith.constant dense<0.000000e+00> : vector<8xf32>
    %531 = vector.multi_reduction <add>, %530, %cst_179 [1] : vector<8x32xf32> to vector<8xf32>
    %532 = vector.shape_cast %531 : vector<8xf32> to vector<8x1xf32>
    %cst_180 = arith.constant 3.200000e+01 : f32
    %533 = vector.broadcast %cst_180 : f32 to vector<8x1xf32>
    %534 = arith.divf %532, %533 : vector<8x1xf32>
    %535 = vector.broadcast %527 : vector<8x1xf32> to vector<8x32xf32>
    %536 = arith.subf %521, %535 : vector<8x32xf32>
    %cst_181 = arith.constant 9.99999974E-6 : f32
    %537 = vector.broadcast %cst_181 : f32 to vector<8x1xf32>
    %538 = arith.addf %534, %537 : vector<8x1xf32>
    %539 = math.rsqrt %538 : vector<8x1xf32>
    %540 = vector.broadcast %539 : vector<8x1xf32> to vector<8x32xf32>
    %541 = arith.mulf %536, %540 : vector<8x32xf32>
    %542 = vector.broadcast %522 : vector<1x32xf32> to vector<8x32xf32>
    %543 = arith.mulf %541, %542 : vector<8x32xf32>
    %544 = vector.broadcast %523 : vector<1x32xf32> to vector<8x32xf32>
    %545 = arith.addf %543, %544 : vector<8x32xf32>
    %c0_182 = arith.constant 0 : index
    %c0_183 = arith.constant 0 : index
    %546 = vector.load %arg13[%c0_182, %c0_183] : memref<8x32xf32, #tpu.memory_space<vmem>>, vector<8x32xf32>
    tpu.vector_store %arg13[%c0_182, %c0_183], %545 {strides = array<i32>} : memref<8x32xf32, #tpu.memory_space<vmem>>, vector<8x32xf32>,
    return
  }
  func.func @transform_0(%arg0: i32) -> (i32, i32) {
    %c0_i32 = arith.constant 0 : i32
    %c0_i32_0 = arith.constant 0 : i32
    return %arg0, %c0_i32 : i32, i32
  }
  func.func @transform_1(%arg0: i32) -> (i32, i32) {
    %c0_i32 = arith.constant 0 : i32
    %c0_i32_0 = arith.constant 0 : i32
    return %arg0, %c0_i32 : i32, i32
  }
  func.func @transform_2(%arg0: i32) -> (i32, i32) {
    %c0_i32 = arith.constant 0 : i32
    %c0_i32_0 = arith.constant 0 : i32
    return %arg0, %c0_i32 : i32, i32
  }
  func.func @transform_3(%arg0: i32) -> (i32, i32, i32, i32) {
    %c0_i32 = arith.constant 0 : i32
    %c0_i32_0 = arith.constant 0 : i32
    %c0_i32_1 = arith.constant 0 : i32
    %c0_i32_2 = arith.constant 0 : i32
    %c0_i32_3 = arith.constant 0 : i32
    return %c0_i32, %c0_i32_0, %c0_i32_1, %c0_i32_2 : i32, i32, i32, i32
  }
  func.func @transform_4(%arg0: i32) -> (i32, i32, i32, i32) {
    %c0_i32 = arith.constant 0 : i32
    %c0_i32_0 = arith.constant 0 : i32
    %c0_i32_1 = arith.constant 0 : i32
    %c0_i32_2 = arith.constant 0 : i32
    %c0_i32_3 = arith.constant 0 : i32
    return %c0_i32, %c0_i32_0, %c0_i32_1, %c0_i32_2 : i32, i32, i32, i32
  }
  func.func @transform_5(%arg0: i32) -> (i32, i32, i32) {
    %c0_i32 = arith.constant 0 : i32
    %c0_i32_0 = arith.constant 0 : i32
    %c0_i32_1 = arith.constant 0 : i32
    %c0_i32_2 = arith.constant 0 : i32
    return %c0_i32, %c0_i32_0, %c0_i32_1 : i32, i32, i32
  }
  func.func @transform_6(%arg0: i32) -> (i32, i32, i32) {
    %c0_i32 = arith.constant 0 : i32
    %c0_i32_0 = arith.constant 0 : i32
    %c0_i32_1 = arith.constant 0 : i32
    %c0_i32_2 = arith.constant 0 : i32
    return %c0_i32, %c0_i32_0, %c0_i32_1 : i32, i32, i32
  }
  func.func @transform_7(%arg0: i32) -> (i32, i32, i32) {
    %c0_i32 = arith.constant 0 : i32
    %c0_i32_0 = arith.constant 0 : i32
    %c0_i32_1 = arith.constant 0 : i32
    %c0_i32_2 = arith.constant 0 : i32
    return %c0_i32, %c0_i32_0, %c0_i32_1 : i32, i32, i32
  }
  func.func @transform_8(%arg0: i32) -> (i32, i32, i32) {
    %c0_i32 = arith.constant 0 : i32
    %c0_i32_0 = arith.constant 0 : i32
    %c0_i32_1 = arith.constant 0 : i32
    %c0_i32_2 = arith.constant 0 : i32
    return %c0_i32, %c0_i32_0, %c0_i32_1 : i32, i32, i32
  }
  func.func @transform_9(%arg0: i32) -> (i32, i32, i32) {
    %c0_i32 = arith.constant 0 : i32
    %c0_i32_0 = arith.constant 0 : i32
    %c0_i32_1 = arith.constant 0 : i32
    %c0_i32_2 = arith.constant 0 : i32
    return %c0_i32, %c0_i32_0, %c0_i32_1 : i32, i32, i32
  }
  func.func @transform_10(%arg0: i32) -> (i32, i32, i32) {
    %c0_i32 = arith.constant 0 : i32
    %c0_i32_0 = arith.constant 0 : i32
    %c0_i32_1 = arith.constant 0 : i32
    %c0_i32_2 = arith.constant 0 : i32
    return %c0_i32, %c0_i32_0, %c0_i32_1 : i32, i32, i32
  }
  func.func @transform_11(%arg0: i32) -> (i32, i32) {
    %c0_i32 = arith.constant 0 : i32
    %c0_i32_0 = arith.constant 0 : i32
    %c0_i32_1 = arith.constant 0 : i32
    return %c0_i32, %c0_i32_0 : i32, i32
  }
  func.func @transform_12(%arg0: i32) -> (i32, i32) {
    %c0_i32 = arith.constant 0 : i32
    %c0_i32_0 = arith.constant 0 : i32
    return %arg0, %c0_i32 : i32, i32
  }
}

</mosaic_0001>

<bundles_post_ra>
// kernel: tpu_custom_call.1
= control target key start
LH: loop header
LB: loop body
LE: loop exit
PB: predicated region body
PF: predicated region fallthrough
CT: control target
= control target key end

     0   :  { %s7564_s0 = inlined_call_operand.vmem [shape: f32[16,32], index: 0, kind: input, shape index: {}]   ;;  %s7565_s1 = inlined_call_operand.hbm [shape: f32[16,32], index: 1, kind: input, shape index: {}]   ;;  %s7566_s2 = inlined_call_operand.hbm [shape: f32[16,32], index: 2, kind: input, shape index: {}]   ;;  %s7567_s3 = inlined_call_operand.vmem [shape: bf16[2,3,32,32], index: 3, kind: input, shape index: {}]   ;;  %s7568_s4 = inlined_call_operand.hbm [shape: bf16[2,3,32,32], index: 4, kind: input, shape index: {}]   ;;  %s7569_s5 = inlined_call_operand.vmem [shape: bf16[2,32,32], index: 5, kind: input, shape index: {}]   ;;  %s7570_s6 = inlined_call_operand.hbm [shape: bf16[2,32,32], index: 6, kind: input, shape index: {}]   ;;  %s7571_s7 = inlined_call_operand.hbm [shape: bf16[2,32,64], index: 7, kind: input, shape index: {}]   ;;  %s7572_s8 = inlined_call_operand.vmem [shape: bf16[2,64,32], index: 8, kind: input, shape index: {}]   ;;  %s7573_s9 = inlined_call_operand.vmem [shape: f32[2,1,64], index: 9, kind: input, shape index: {}]   ;;  %s7574_s10 = inlined_call_operand.vmem [shape: f32[2,17,32], index: 10, kind: input, shape index: {}]   ;;  %s7575_s11 = inlined_call_operand.vmem [shape: f32[2,32], index: 11, kind: input, shape index: {}]   ;;  %s7576_s12 = inlined_call_operand.hbm [shape: f32[16,32], index: 12, kind: output, shape index: {}]  }
   0x1   :  { %7587 = sst [smem:[#allocation23_spill]] %s7568_s4 }
   0x2   :  { %7588 = sst [smem:[#allocation24_spill]] %s7570_s6 }
   0x3   :  { %7589 = sst [smem:[#allocation25_spill]] %s7571_s7 }
   0x4   :  { %7590 = sst [smem:[#allocation26_spill]] %s7576_s12 }
   0x5   :  { %17 = vsyncpa [#allocation4], 0 }
   0x6   :  { %19 = vsyncpa [#allocation4 + $0x1], 0 }
   0x7   :  { %20 = vsyncpa [#allocation7], 0 }
   0x8   :  { %22 = vsyncpa [#allocation7 + $0x1], 0 }
   0x9   :  { %23 = vsyncpa [#allocation10], 0 }
   0xa   :  { %24 = vsyncpa [#allocation5], 0 }
   0xb   :  { %26 = vsyncpa [#allocation5 + $0x1], 0  ;;  %s6543_s21 = smov 0   ;;  %s6545_s22 = smov 0  }
   0xc   :  { %s6547_s23 = smov 0   ;;  %s6549_s24 = smov 0  }
   0xd LB: > { %7591 = sst [smem:[#allocation18_spill]] %s6448_s21  ;;  %s6564_s25 = sadd.s32 4294967295, %s6460_s24   ;;  %s6460_s24 = sphi %s6549_s24, %s7618_s24   ;;  %s6456_s23 = sphi %s6547_s23, %s7620_s23   ;;  %s6452_s22 = sphi %s6545_s22, %s7622_s22   ;;  %s6448_s21 = sphi %s6543_s21, %s7621_s21  }
   0xe   : > { %7592 = sst [smem:[#allocation19_spill]] %s6456_s23  ;;  %s5085_s26 = sadd.s32 4294967294, %s6460_s24  }
   0xf   : > { %p78_p0 = scmp.ne.s32.totalorder %s6452_s22, %s6448_s21  ;;  %p7577_p1 = scmp.eq.s32.totalorder %s6564_s25, 0 }
  0x10   : > { %p323_p3 = scmp.eq.s32.totalorder %s5085_s26, 1  ;;  %p5086_p5 = scmp.ge.s32.totalorder %s6460_s24, 1 }
  0x11   : > { %p6573_p4 = por %p7577_p1, %p78_p0  ;;  %p330_p7 = scmp.lt.s32.totalorder %s6460_s24, 3 }
  0x12   : > { %p6578_p6 = por %p323_p3, %p78_p0  ;;  %s6462_s30 = smov [#allocation8]  }
  0x13   : > { %s7593_s27 = scalar_select %p6573_p4, 1, 0 }
  0x14   : > { %s7594_s28 = scalar_select %p6578_p6, 1, 0 }
  0x15   : > { %p6583_p8 = pnand %p5086_p5, %p330_p7  ;;  %s345_s13 = sshll.u32 %s6462_s30, 4  ;;  %s346_s13 = int_to_ptr.vmem [resolvable:$true] %s345_s13 }
  0x16   : > { %7595 = sst [smem:[#allocation20_spill]] %s7594_s28  ;;  %s6463_s15 = smov [#allocation9]  }
  0x17   : > { %s7596_s29 = scalar_select %p6583_p8, 1, 0 }
  0x18   : > { %p5895_p9 = pneg %p6583_p8  ;;  %s361_s16 = sshll.u32 %s6463_s15, 4  ;;  %s362_s16 = int_to_ptr.vmem [resolvable:$true] %s361_s16 }
  0x19   : > { %s6464_s17 = smov [#allocation11]   ;;  %s6261_s19 = scalar_lea.vmem %s346_s13, 1536 }
  0x1a   : > { %p6592_p11 = pnand %p5895_p9, %p7577_p1  ;;  %s374_s18 = sshll.u32 %s6464_s17, 4  ;;  %s375_s18 = int_to_ptr.vmem [resolvable:$true] %s374_s18 }
  0x1b   : > { %p6262_p13 = scmp.ne.s32.totalorder %s346_s13, %s6261_s19  ;;  %p6269_p5 = scmp.lt.s32.totalorder %s346_s13, %s346_s13 }
  0x1c   : > { %p6252_p12 = pneg %p6592_p11  ;;  %p6270_p7 = scmp.lt.s32.totalorder %s6261_s19, %s6261_s19 }
  0x1e   : > { %p6264_p0 = pnand %p6262_p13, %p6252_p12  ;;  %p6271_p9 = por %p6270_p7, %p6269_p5 }
  0x20   : > { %p6265_p3 = pneg %p6264_p0 }
  0x22   : > { %p6272_p10 = pnand %p6271_p9, %p6265_p3 }
  0x24   : > { %6275 = shalt.err (!%p6272_p10)
}
  0x25   : > { %s6465_s20 = smov 64   ;;  %s6466_s26 = smov 4  }
  0x26   : > { %s7598_s4 = sld [smem:[#allocation23_spill]]  ;;  %s6287_s17 = scalar_lea.vmem %s362_s16, 512 }
  0x27   : > { %p6288_p1 = scmp.ne.s32.totalorder %s362_s16, %s6287_s17  ;;  %p6295_p2 = scmp.lt.s32.totalorder %s362_s16, %s362_s16 }
  0x28   : > { %p6296_p6 = scmp.lt.s32.totalorder %s6287_s17, %s6287_s17 }
  0x29   : > { %p6290_p13 = pnand %p6288_p1, %p6252_p12 }
  0x2a   : > { %p6297_p5 = por %p6296_p6, %p6295_p2 }
  0x2b   : > { %p6291_p0 = pneg %p6290_p13 }
  0x2c   : > { %5898 = dma.hbm_to_vmem [thread:$0]  (!%p6592_p11), %s7598_s4, 1536, %s346_s13, [#allocation7], %s6465_s20, %s6465_s20, %s6466_s26  }
  0x2d   : > { %p6298_p3 = pnand %p6297_p5, %p6291_p0 }
  0x2f   : > { %6301 = shalt.err (!%p6298_p3)
}
  0x30   : > { %s7599_s6 = sld [smem:[#allocation24_spill]]  ;;  %s6313_s13 = scalar_lea.vmem %s375_s18, 512 }
  0x31   : > { %p6314_p10 = scmp.ne.s32.totalorder %s375_s18, %s6313_s13  ;;  %p6321_p9 = scmp.lt.s32.totalorder %s375_s18, %s375_s18 }
  0x32   : > { %p6322_p13 = scmp.lt.s32.totalorder %s6313_s13, %s6313_s13 }
  0x33   : > { %p6316_p7 = pnand %p6314_p10, %p6252_p12 }
  0x34   : > { %p6323_p4 = por %p6322_p13, %p6321_p9 }
  0x35   : > { %p6317_p1 = pneg %p6316_p7 }
  0x36   : > { %5901 = dma.hbm_to_vmem [thread:$0]  (!%p6592_p11), %s7599_s6, 512, %s362_s16, [#allocation10], %s6465_s20, %s6465_s20, %s6466_s26  }
  0x37   : > { %p6324_p2 = pnand %p6323_p4, %p6317_p1 }
  0x39   : > { %6327 = shalt.err (!%p6324_p2)
}
  0x3a   : > { %s7600_s7 = sld [smem:[#allocation25_spill]]  ;;  %s6623_s28 = sadd.s32 1, %s6460_s24  }
  0x3b   : > { %7601 = sst [smem:[#allocation21_spill]] %s6623_s28  ;;  %s62_s16 = ssub.s32 %s6460_s24, %s6623_s28 }
  0x3c   : > { %s65_s14 = sadd.s32 1, %s6456_s23  ;;  %p63_p4 = scmp.eq.s32.totalorder %s62_s16, 0 }
  0x3d   : > { %p72_p6 = scmp.ne.s32.totalorder %s6456_s23, %s6452_s22  ;;  %p73_p12 = scmp.eq.s32.totalorder %s6460_s24, 0 }
  0x3e   : > { %p5919_p0 = scmp.lt.s32.totalorder %s6460_s24, 2  ;;  %p7603_p3 = scmp.eq.s32.totalorder %s6564_s25, 1 }
  0x3f   : > { %s6633_s17 = scalar_select %p63_p4, %s6456_s23, %s65_s14  }
  0x40   : > { %5904 = dma.hbm_to_vmem [thread:$0]  (!%p6592_p11), %s7600_s7, 512, %s375_s18, [#allocation10], %s6465_s20, %s6465_s20, %s6466_s26  }
  0x41   : > { %7602 = sst [smem:[#allocation22_spill]] %s6633_s17  ;;  %p74_p5 = por %p73_p12, %p72_p6 }
  0x42   : > { %p6637_p10 = por %p7603_p3, %p72_p6  ;;  %s407_s13 = sand.u32 1, %s6456_s23  }
  0x43   : > { %s5092_s30 = sshll.u32 %s6460_s24, 7  ;;  %s6643_s18 = sshll.u32 %s407_s13, 3 }
  0x44   : > { %s7604_s19 = scalar_select %p6637_p10, 1, 0 }
  0x45   : > { %s6648_s15 = scalar_lea.hbm %s7565_s1, %s5092_s30  ;;  %s411_s16 = scalar_lea.vmem [#allocation3], %s6643_s18 }
  0x46   : > { %s418_s14 = sshll.u32 %s411_s16, 4  ;;  %p6651_p11 = pnand %p5919_p0, %p74_p5  ;;  %s419_s14 = int_to_ptr.vmem [resolvable:$true] %s418_s14 }
  0x47   : > { %s6658_s17 = scalar_lea.hbm %s7566_s2, %s5092_s30  ;;  %s408_s20 = scalar_lea.sflag [#allocation4], %s407_s13 }
  0x48   : > { %s6328_s26 = scalar_lea.hbm %s6648_s15, 128  ;;  %p6330_p1 = pneg %p6651_p11 }
  0x49   : > { %p6329_p7 = scmp.ne.s32.totalorder %s6648_s15, %s6328_s26  ;;  %s6333_s28 = scalar_lea.hbm %s7565_s1, 256 }
  0x4a   : > { %p6334_p2 = scmp.lt.s32.totalorder %s6648_s15, %s7565_s1  ;;  %p6335_p4 = scmp.lt.s32.totalorder %s6333_s28, %s6328_s26 }
  0x4b   : > { %p6331_p9 = pnand %p6330_p1, %p6329_p7 }
  0x4c   : > { %p6336_p6 = por %p6335_p4, %p6334_p2 }
  0x4d   : > { %p6332_p13 = pneg %p6331_p9 }
  0x4f   : > { %p6337_p12 = pnand %p6336_p6, %p6332_p13 }
  0x51   : > { %6340 = shalt.err (!%p6337_p12)
}
  0x52   : > { %s6341_s6 = scalar_lea.vmem %s419_s14, 128  ;;  %s6467_s7 = smov [#allocation3]  }
  0x53   : > { %p6342_p0 = scmp.ne.s32.totalorder %s419_s14, %s6341_s6  ;;  %s6346_s13 = sshll.u32 %s6467_s7, 4  ;;  %s6347_s13 = int_to_ptr.vmem [resolvable:$false] %s6346_s13 }
  0x54   : > { %s6348_s23 = scalar_lea.vmem %s6347_s13, 256  ;;  %p6349_p7 = scmp.lt.s32.totalorder %s419_s14, %s6347_s13 }
  0x55   : > { %p6344_p5 = pnand %p6342_p0, %p6330_p1  ;;  %p6350_p9 = scmp.lt.s32.totalorder %s6348_s23, %s6341_s6 }
  0x57   : > { %p6345_p3 = pneg %p6344_p5  ;;  %p6351_p10 = por %p6350_p9, %p6349_p7 }
  0x59   : > { %p6352_p8 = pnand %p6351_p10, %p6345_p3 }
  0x5b   : > { %6355 = shalt.err (!%p6352_p8)
}
  0x5c   : > { %5908 = dma.hbm_to_vmem [thread:$0]  (!%p6651_p11), %s6648_s15, 128, %s419_s14, %s408_s20  }
  0x5d   : > { %s425_s12 = sand.u32 1, %s6460_s24   ;;  %s429_s21 = scalar_lea.vmem [#allocation6], %s6643_s18 }
  0x5e   : > { %s436_s28 = sshll.u32 %s429_s21, 4  ;;  %s426_s30 = scalar_lea.sflag [#allocation7], %s425_s12  ;;  %s437_s28 = int_to_ptr.vmem [resolvable:$true] %s436_s28 }
  0x5f   : > { %s6356_s26 = scalar_lea.hbm %s6658_s17, 128  ;;  %s6361_s7 = scalar_lea.hbm %s7566_s2, 256 }
  0x60   : > { %p6357_p13 = scmp.ne.s32.totalorder %s6658_s17, %s6356_s26  ;;  %p6362_p2 = scmp.lt.s32.totalorder %s6658_s17, %s7566_s2 }
  0x61   : > { %p6363_p4 = scmp.lt.s32.totalorder %s6361_s7, %s6356_s26 }
  0x62   : > { %p6359_p8 = pnand %p6357_p13, %p6330_p1 }
  0x63   : > { %p6364_p6 = por %p6363_p4, %p6362_p2 }
  0x64   : > { %p6360_p10 = pneg %p6359_p8 }
  0x66   : > { %p6365_p12 = pnand %p6364_p6, %p6360_p10 }
  0x68   : > { %6368 = shalt.err (!%p6365_p12)
}
  0x69   : > { %s6369_s18 = scalar_lea.vmem %s437_s28, 128  ;;  %s6468_s15 = smov [#allocation6]  }
  0x6a   : > { %p6370_p0 = scmp.ne.s32.totalorder %s437_s28, %s6369_s18  ;;  %s6374_s14 = sshll.u32 %s6468_s15, 4  ;;  %s6375_s14 = int_to_ptr.vmem [resolvable:$false] %s6374_s14 }
  0x6b   : > { %s6376_s20 = scalar_lea.vmem %s6375_s14, 256  ;;  %p6377_p7 = scmp.lt.s32.totalorder %s437_s28, %s6375_s14 }
  0x6c   : > { %p6372_p5 = pnand %p6370_p0, %p6330_p1  ;;  %p6378_p9 = scmp.lt.s32.totalorder %s6376_s20, %s6369_s18 }
  0x6e   : > { %p6373_p3 = pneg %p6372_p5  ;;  %p6379_p13 = por %p6378_p9, %p6377_p7 }
  0x70   : > { %p6380_p8 = pnand %p6379_p13, %p6373_p3 }
  0x72   : > { %6383 = shalt.err (!%p6380_p8)
}
  0x73   : > { %5911 = dma.hbm_to_vmem [thread:$0]  (!%p6651_p11), %s6658_s17, 128, %s437_s28, %s426_s30  }
  0x74   : > { %p7606_p10 = scmp.ne.s32.totalorder %s7596_s29, 0 }
  0x75   : > { %s6703_s12 = sand.u32 (!%p7606_p10), 1, %s6452_s22   ;;  %p7607_p1 = scmp.ne.s32.totalorder (!%p7606_p10), %s7593_s27, 0 }
  0x76   : > { %445 = sbr.rel (%p7606_p10) target bundleno = 8579 (0x2183), region = 68  ;;  %s6706_s21 = sshll.u32 (!%p7606_p10), %s6703_s12, 3 }
  0x77   : > { %s448_s26 = scalar_lea.sflag (!%p7606_p10), [#allocation4], %s6703_s12  ;;  %s451_s16 = scalar_lea.vmem (!%p7606_p10), [#allocation3], %s6706_s21 }
  0x7b   : > { %6427 = dma.done.wait (%p7607_p1), %s448_s26, 128  }
  0x7c   : > { %6429 = vsyncadd (%p7607_p1), %s448_s26, 4294967168  ;;  %s456_s4 = sand.u32 1, %s6564_s25   ;;  %s460_s17 = scalar_lea.vmem [#allocation6], %s6706_s21 }
  0x7d   : > { %s457_s29 = scalar_lea.sflag [#allocation7], %s456_s4 }
  0x7e   : > { %6431 = dma.done.wait (%p7607_p1), %s457_s29, 128  }
  0x7f   : > { %6433 = vsyncadd (%p7607_p1), %s457_s29, 4294967168  ;;  %p7608_p11 = scmp.eq.s32.totalorder %s6564_s25, 0 }
  0x81   : > { %6435 = dma.done.wait (%p7608_p11), [#allocation7], 1536   ;;  %p7609_p2 = pmov %p7608_p11 }
  0x83   : > { %6437 = vsyncadd (%p7609_p2), [#allocation7], 4294965760  ;;  %p7610_p4 = pmov %p7609_p2 }
  0x84   : > { %p7611_p6 = pmov %p7609_p2 }
  0x85   : > { %6439 = dma.done.wait (%p7610_p4), [#allocation10], 1024  }
  0x86   : > { %6441 = vsyncadd (%p7611_p6), [#allocation10], 4294966272  ;;  %p522_p12 = scmp.lt.s32.totalorder %s6564_s25, 1  ;;  %v6469_v0 = vmov 0.0   ;;  %vm6470_vm0 = vmmov 0   ;;  %v6089_v1 = vld [vmem:[%s7567_s3 + $0x8] sm:$0xff]   ;;  %v543_v12 = vlaneseq }
  0x87   : > { %5421 = vmatprep.subr.bf16.mxu1 %v6469_v0  ;;  %5425 = vmatprep.mubr.msk.bf16.mxu1 %vm6470_vm0, %v6469_v0  ;;  %vm530_vm1 = vcmask 261120   ;;  %v6090_v2 = vld [vmem:[%s7567_s3] sm:$0xff]   ;;  %v6747_v4 = vld [vmem:[%s451_s16] sm:$0xff]  ;;  %v6093_v10 = vld [vmem:[%s7567_s3 + $0x28] sm:$0xff]   ;;  %vm811_vm2 = vcmask 64512   ;;  %s6472_s13 = smov 120  }
  0x88   : > { %s523_s27 = scalar_select %p522_p12, %s6564_s25, 1  ;;  %5437 = vmatprep.subr.bf16.mxu0 %v6469_v0  ;;  %5441 = vmatprep.mubr.msk.bf16.mxu0 %vm6470_vm0, %v6469_v0  ;;  %531 = vst.msk [vmem:[#allocation2 + $0x8] sm:$0xff] %vm530_vm1, %v6747_v4  ;;  %v6091_v5 = vld [vmem:[%s7567_s3 + $0x18] sm:$0xff]   ;;  %v6092_v9 = vld [vmem:[%s7567_s3 + $0x10] sm:$0xff]   ;;  %v6094_v11 = vld [vmem:[%s7567_s3 + $0x20] sm:$0xff]   ;;  %v6780_v13 = vshrl.u32 %v543_v12, 7 }
  0x89   : > { %5422 = vmatpush3.bf16.msra.mxu1 %v6089_v1  ;;  %5438 = vmatpush3.bf16.msra.mxu0 %v6093_v10  ;;  %v6788_v17 = vld [vmem:[%s7574_s10] sm:$0xff]  ;;  %s6473_s23 = smov 104   ;;  %vm1279_vm3 = vcmask 1043456   ;;  %s6474_s14 = smov 8   ;;  %vm1671_vm4 = vcmask 130048   ;;  %vm1674_vm5 = vcmask 195584  }
  0x8a   : > { %s5102_s28 = sshll.u32 %s523_s27, 3  ;;  %5423 = vmatprep.subr.bf16.mxu1 %v6469_v0  ;;  %5439 = vmatprep.subr.bf16.mxu0 %v6469_v0  ;;  %v6783_v15 = vsub.s32 1, %v6780_v13  ;;  %v6793_v20 = vsub.s32 0, %v6780_v13  ;;  %v6818_v61 = vsub.s32 2, %v6780_v13  ;;  %s6475_s16 = smov 16   ;;  %vm2653_vm6 = vcmask 523264  }
  0x8b   : > { %s525_s7 = scalar_lea.vmem %s7564_s0, %s5102_s28  ;;  %s6476_s4 = smov 24  }
  0x8c   : > { %v6745_v3 = vld [vmem:[%s525_s7] sm:$0xff]  ;;  %v611_v19 = vrot.slane %v6788_v17, %v6783_v15  ;;  %v546_v24 = vrot.slane %v6788_v17, %v6793_v20  ;;  %s6471_s7 = smov 112   ;;  %s7612_s29 = sld [smem:[#allocation26_spill]] }
  0x8d   : > { %535 = vst.msk [vmem:[#allocation2] sm:$0xff] %vm530_vm1, %v6745_v3  ;;  %5424 = vmatpush3.bf16.msra.mxu1 %v6090_v2  ;;  %5440 = vmatpush3.bf16.msra.mxu0 %v6094_v11  ;;  %s4939_s28 = scalar_lea.sflag [#allocation5], %s6703_s12  ;;  %p7613_p5 = scmp.ne.s32.totalorder %s7604_s19, 0 }
  0x8e   : > { %5429 = vmatprep.subr.bf16.mxu1 %v6469_v0  ;;  %5451 = vmatprep.subr.bf16.mxu0 %v6469_v0  ;;  %s6477_s6 = smov [#allocation12]  }
  0x8f   : > { %v537_v7 = vld [vmem:[#allocation2 + $0x8] sm:$0xff]  ;;  %s6388_s18 = sshll.u32 %s6477_s6, 4  ;;  %s6389_s18 = int_to_ptr.vmem [resolvable:$false] %s6388_s18 }
  0x94   : > { %v536_v6 = vld [vmem:[#allocation2] sm:$0xff] }
  0x95   : > { %v538_v8 = vpack.c.bf16 %v537_v7, %v536_v6 }
  0x97   : > { %5426 = vmatmul.mubr.msk.bf16.vlgmr.msra.gmra.mxu1 %vm530_vm1, %v538_v8  ;;  %5442 = vmatmul.mubr.msk.bf16.vlgmr.msra.gmra.mxu0 %vm530_vm1, %v538_v8 }
  0x98   : > { %5430 = vmatpush3.bf16.msra.mxu1 %v6091_v5  ;;  %5433 = vmatprep.mubr.msk.bf16.mxu1 %vm6470_vm0, %v6469_v0 }
  0x99   : > { %5431 = vmatprep.subr.bf16.mxu1 %v6469_v0  ;;  %5453 = vmatprep.mubr.msk.bf16.mxu0 %vm6470_vm0, %v6469_v0 }
  0x9c   : > { %5432 = vmatpush3.bf16.msra.mxu1 %v6092_v9 }
  0x9d   : > { %5445 = vmatprep.subr.bf16.mxu1 %v6469_v0 }
  0x9f   : > { %5434 = vmatmul.mubr.msk.bf16.vlgmr.msra.gmra.mxu1 %vm530_vm1, %v538_v8  ;;  %v673_v8 = vrot.slane %v6788_v17, %v6818_v61 }
  0xa0   : > { %5447 = vmatprep.mubr.msk.bf16.mxu1 %vm6470_vm0, %v6469_v0 }
 0x157   : > { %v596_v14 = vpop.f32.mrf.mxu1  ;;  %v720_v39 = vpop.f32.mrf.mxu0 }
 0x158   : > { %v597_v30 = vadd.f32 %v596_v14, %v546_v24  ;;  %v6832_v14 = vadd.f32 %v720_v39, %v673_v8 }
 0x159   : > { %v5427_v16 = vpop.f32.mrf.mxu1  ;;  %v5443_v40 = vpop.f32.mrf.mxu0 }
 0x15a   : > { %v747_v36 = vpack.c.bf16 %v597_v30, %v597_v30 }
 0x15b   : > { %v599_v18 = vpop.f32.mrf.mxu1  ;;  %v723_v41 = vpop.f32.mrf.mxu0 }
 0x15c   : > { %v600_v32 = vadd.f32 %v599_v18, %v546_v24  ;;  %v6834_v16 = vadd.f32 %v723_v41, %v673_v8  ;;  %v803_v24 = vpack.c.bf16 %v6832_v14, %v6832_v14 }
 0x15d   : > { %v5428_v21 = vpop.f32.mrf.mxu1  ;;  %v5444_v42 = vpop.f32.mrf.mxu0 }
 0x15e   : > { %v5984_v37 = vpack.i.bf16 %v600_v32, %v597_v30  ;;  %v748_v38 = vpack.c.bf16 %v600_v32, %v600_v32 }
 0x15f   : > { %v658_v22 = vpop.f32.mrf.mxu1 }
 0x160   : > { %v659_v23 = vadd.f32 %v658_v22, %v611_v19 }
 0x161   : > { %v5435_v25 = vpop.f32.mrf.mxu1 }
 0x162   : > { %v775_v26 = vpack.c.bf16 %v659_v23, %v659_v23  ;;  %v804_v25 = vpack.c.bf16 %v6834_v16, %v6834_v16 }
 0x163   : > { %v661_v27 = vpop.f32.mrf.mxu1 }
 0x164   : > { %v662_v28 = vadd.f32 %v661_v27, %v611_v19  ;;  %v816_v29 = vsel %vm811_vm2, %v775_v26, 0 }
 0x165   : > { %v5436_v31 = vpop.f32.mrf.mxu1  ;;  %5446 = vmatpush3.bf16.xpose.msra.mxu1 %v816_v29  ;;  %v1327_v29 = vsel %vm1279_vm3, %v804_v25, 0 }
 0x166   : > { %v5979_v33 = vpack.i.bf16 %v662_v28, %v659_v23  ;;  %v776_v34 = vpack.c.bf16 %v662_v28, %v662_v28  ;;  %5457 = vmatprep.subr.bf16.mxu1 %v6469_v0  ;;  %v1281_v28 = vsel %vm1279_vm3, %v803_v24, 0 }
 0x168   : > { %5980 = vrot.lane.b32.xlu1 %v5979_v33, %s6471_s7  ;;  %5970 = vrot.lane.b32.xlu0 %v5979_v33, %s6472_s13  ;;  %v862_v35 = vsel %vm811_vm2, %v776_v34, 0 }
 0x169   : > { %5452 = vmatpush3.bf16.xpose.msra.mxu0 %v862_v35 }
 0x16a   : > { %5463 = vmatprep.subr.bf16.mxu0 %v6469_v0 }
 0x16c   : > { %5448 = vmatmul.mubr.msk.bf16.vlgmr.msra.gmra.mxu1 %vm811_vm2, %v747_v36  ;;  %5985 = vrot.lane.b32.xlu1 %v5984_v37, %s6471_s7 }
 0x16d   : > { %5975 = vrot.lane.b32.xlu0 %v5984_v37, %s6472_s13  ;;  %5459 = vmatprep.mubr.msk.bf16.mxu1 %vm6470_vm0, %v6469_v0 }
 0x170   : > { %5995 = vrot.lane.b32.xlu1 %v5984_v37, %s6473_s23  ;;  %5454 = vmatmul.mubr.msk.bf16.vlgmr.msra.gmra.mxu0 %vm811_vm2, %v748_v38 }
 0x171   : > { %5990 = vrot.lane.b32.xlu0 %v5979_v33, %s6473_s23  ;;  %5465 = vmatprep.mubr.msk.bf16.mxu0 %vm6470_vm0, %v6469_v0 }
 0x1da   : > { %v5971_v43 = vpop.permute.xlu0 %5970  ;;  %v5981_v46 = vpop.permute.xlu1 %5980 }
 0x1db   : > { %v5973_v44 = vunpack.i.h.bf16 %v5971_v43  ;;  %v5972_v45 = vunpack.i.l.bf16 %v5971_v43  ;;  %v5983_v49 = vunpack.i.h.bf16 %v5981_v46  ;;  %v5982_v50 = vunpack.i.l.bf16 %v5981_v46 }
 0x1dd   : > { %v778_v47 = vpack.c.bf16 %v5973_v44, %v5973_v44  ;;  %v777_v48 = vpack.c.bf16 %v5972_v45, %v5972_v45  ;;  %v780_v56 = vpack.c.bf16 %v5983_v49, %v5983_v49  ;;  %v779_v57 = vpack.c.bf16 %v5982_v50, %v5982_v50 }
 0x1de   : > { %v5986_v62 = vpop.permute.xlu1 %5985 }
 0x1df   : > { %v5976_v51 = vpop.permute.xlu0 %5975  ;;  %v908_v52 = vsel %vm811_vm2, %v777_v48, 0  ;;  %v954_v53 = vsel %vm811_vm2, %v778_v47, 0  ;;  %v1000_v2 = vsel %vm811_vm2, %v779_v57, 0  ;;  %v1046_v5 = vsel %vm811_vm2, %v780_v56, 0 }
 0x1e0   : > { %5458 = vmatpush3.bf16.xpose.msra.mxu1 %v908_v52  ;;  %5464 = vmatpush3.bf16.xpose.msra.mxu0 %v954_v53  ;;  %v5978_v54 = vunpack.i.h.bf16 %v5976_v51  ;;  %v5977_v55 = vunpack.i.l.bf16 %v5976_v51  ;;  %v5988_v6 = vunpack.i.h.bf16 %v5986_v62  ;;  %v5987_v7 = vunpack.i.l.bf16 %v5986_v62 }
 0x1e1   : > { %5469 = vmatprep.subr.bf16.mxu1 %v6469_v0  ;;  %5475 = vmatprep.subr.bf16.mxu0 %v6469_v0 }
 0x1e2   : > { %v750_v59 = vpack.c.bf16 %v5978_v54, %v5978_v54  ;;  %v749_v60 = vpack.c.bf16 %v5977_v55, %v5977_v55  ;;  %v752_v11 = vpack.c.bf16 %v5988_v6, %v5988_v6  ;;  %v751_v12 = vpack.c.bf16 %v5987_v7, %v5987_v7  ;;  %v5996_v18 = vpop.permute.xlu1 %5995 }
 0x1e3   : > { %v5991_v58 = vpop.permute.xlu0 %5990  ;;  %v5998_v22 = vunpack.i.h.bf16 %v5996_v18  ;;  %v5997_v23 = vunpack.i.l.bf16 %v5996_v18  ;;  %v6870_v18 = vpack.i.bf16 %v6834_v16, %v6832_v14 }
 0x1e4   : > { %v5993_v63 = vunpack.i.h.bf16 %v5991_v58  ;;  %v5992_v1 = vunpack.i.l.bf16 %v5991_v58 }
 0x1e5   : > { %v754_v26 = vpack.c.bf16 %v5998_v22, %v5998_v22  ;;  %v753_v27 = vpack.c.bf16 %v5997_v23, %v5997_v23 }
 0x1e6   : > { %v782_v9 = vpack.c.bf16 %v5993_v63, %v5993_v63  ;;  %v781_v10 = vpack.c.bf16 %v5992_v1, %v5992_v1 }
 0x1e7   : > { %5460 = vmatmul.mubr.msk.bf16.vlgmr.msra.gmra.mxu1 %vm811_vm2, %v749_v60  ;;  %5466 = vmatmul.mubr.msk.bf16.vlgmr.msra.gmra.mxu0 %vm811_vm2, %v750_v59 }
 0x1e8   : > { %5470 = vmatpush3.bf16.xpose.msra.mxu1 %v1000_v2  ;;  %5476 = vmatpush3.bf16.xpose.msra.mxu0 %v1046_v5  ;;  %v1092_v19 = vsel %vm811_vm2, %v781_v10, 0  ;;  %v1138_v21 = vsel %vm811_vm2, %v782_v9, 0 }
 0x1e9   : > { %5471 = vmatprep.mubr.msk.bf16.mxu1 %vm6470_vm0, %v6469_v0  ;;  %5477 = vmatprep.mubr.msk.bf16.mxu0 %vm6470_vm0, %v6469_v0 }
 0x1ea   : > { %5481 = vmatprep.subr.bf16.mxu1 %v6469_v0  ;;  %5487 = vmatprep.subr.bf16.mxu0 %v6469_v0 }
 0x1ef   : > { %5472 = vmatmul.mubr.msk.bf16.vlgmr.msra.gmra.mxu1 %vm811_vm2, %v751_v12  ;;  %5478 = vmatmul.mubr.msk.bf16.vlgmr.msra.gmra.mxu0 %vm811_vm2, %v752_v11 }
 0x1f0   : > { %5482 = vmatpush3.bf16.xpose.msra.mxu1 %v1092_v19  ;;  %5488 = vmatpush3.bf16.xpose.msra.mxu0 %v1138_v21 }
 0x1f1   : > { %5483 = vmatprep.mubr.msk.bf16.mxu1 %vm6470_vm0, %v6469_v0  ;;  %5489 = vmatprep.mubr.msk.bf16.mxu0 %vm6470_vm0, %v6469_v0 }
 0x1f2   : > { %5493 = vmatprep.subr.bf16.mxu1 %v6469_v0  ;;  %5499 = vmatprep.subr.bf16.mxu0 %v6469_v0 }
 0x1f7   : > { %5484 = vmatmul.mubr.msk.bf16.vlgmr.msra.gmra.mxu1 %vm811_vm2, %v753_v27  ;;  %5490 = vmatmul.mubr.msk.bf16.vlgmr.msra.gmra.mxu0 %vm811_vm2, %v754_v26 }
 0x1f8   : > { %5494 = vmatpush3.bf16.msra.mxu1 %v1281_v28  ;;  %5500 = vmatpush3.bf16.msra.mxu0 %v1327_v29 }
 0x1f9   : > { %5501 = vmatprep.mubr.msk.bf16.mxu0 %vm6470_vm0, %v6469_v0  ;;  %5511 = vmatprep.subr.bf16.mxu0 %v6469_v0 }
 0x1fa   : > { %5495 = vmatprep.mubr.msk.bf16.mxu1 %vm6470_vm0, %v6469_v0  ;;  %5505 = vmatprep.subr.bf16.mxu1 %v6469_v0 }
 0x22c   : > { %v852_v30 = vpop.f32.mrf.mxu1 }
 0x22d   : > { %v1180_v31 = vsel %vm811_vm2, %v852_v30, -inf }
 0x22e   : > { %1181 = vmax.xlane.f32.xlu0 %v1180_v31  ;;  %v5449_v32 = vpop.f32.mrf.mxu1 }
 0x230   : > { %v855_v33 = vpop.f32.mrf.mxu1  ;;  %v898_v34 = vpop.f32.mrf.mxu0 }
 0x231   : > { %v1183_v35 = vsel %vm811_vm2, %v898_v34, -inf }
 0x232   : > { %1184 = vmax.xlane.f32.xlu1 %v1183_v35  ;;  %v5450_v36 = vpop.f32.mrf.mxu1  ;;  %v5455_v37 = vpop.f32.mrf.mxu0 }
 0x234   : > { %v901_v38 = vpop.f32.mrf.mxu0 }
 0x236   : > { %v5456_v39 = vpop.f32.mrf.mxu0 }
 0x2a7   : > { %v944_v40 = vpop.f32.mrf.mxu1  ;;  %v990_v41 = vpop.f32.mrf.mxu0 }
 0x2a8   : > { %v1186_v42 = vsel %vm811_vm2, %v944_v40, -inf  ;;  %v1189_v47 = vsel %vm811_vm2, %v990_v41, -inf }
 0x2a9   : > { %v5467_v43 = vpop.f32.mrf.mxu0  ;;  %1187 = vmax.xlane.f32.xlu0 %v1186_v42  ;;  %v5461_v44 = vpop.f32.mrf.mxu1 }
 0x2ab   : > { %v947_v45 = vpop.f32.mrf.mxu1  ;;  %v993_v46 = vpop.f32.mrf.mxu0 }
 0x2ad   : > { %v5468_v48 = vpop.f32.mrf.mxu0  ;;  %1190 = vmax.xlane.f32.xlu0 %v1189_v47  ;;  %v5462_v49 = vpop.f32.mrf.mxu1 }
 0x2af   : > { %v1036_v50 = vpop.f32.mrf.mxu1  ;;  %v1082_v51 = vpop.f32.mrf.mxu0 }
 0x2b0   : > { %v1195_v52 = vsel %vm811_vm2, %v1082_v51, -inf  ;;  %v1192_v53 = vsel %vm811_vm2, %v1036_v50, -inf }
 0x2b1   : > { %v5479_v54 = vpop.f32.mrf.mxu0  ;;  %1196 = vmax.xlane.f32.xlu0 %v1195_v52  ;;  %1193 = vmax.xlane.f32.xlu1 %v1192_v53  ;;  %v5473_v55 = vpop.f32.mrf.mxu1 }
 0x2b3   : > { %v1039_v56 = vpop.f32.mrf.mxu1  ;;  %v1085_v57 = vpop.f32.mrf.mxu0 }
 0x2b5   : > { %v5474_v58 = vpop.f32.mrf.mxu1  ;;  %v5480_v59 = vpop.f32.mrf.mxu0 }
 0x2b7   : > { %v1174_v60 = vpop.f32.mrf.mxu0  ;;  %v1128_v62 = vpop.f32.mrf.mxu1 }
 0x2b8   : > { %v1201_v63 = vsel %vm811_vm2, %v1174_v60, -inf  ;;  %v1198_v2 = vsel %vm811_vm2, %v1128_v62, -inf  ;;  %v1182_v22 = vpop.xlane.xlu0 %1181 }
 0x2b9   : > { %v5491_v1 = vpop.f32.mrf.mxu0  ;;  %1202 = vmax.xlane.f32.xlu0 %v1201_v63  ;;  %1199 = vmax.xlane.f32.xlu1 %v1198_v2  ;;  %v5485_v5 = vpop.f32.mrf.mxu1  ;;  %v1204_v23 = vsub.f32 %v852_v30, %v1182_v22 }
 0x2bb   : > { %v1185_v6 = vpop.xlane.xlu1 %1184  ;;  %v1177_v7 = vpop.f32.mrf.mxu0  ;;  %v1212_v24 = vmul.f32 1.442695, %v1204_v23 }
 0x2bc   : > { %v1205_v8 = vsub.f32 %v898_v34, %v1185_v6  ;;  %v1131_v9 = vpop.f32.mrf.mxu1 }
 0x2bd   : > { %v5492_v10 = vpop.f32.mrf.mxu0 }
 0x2be   : > { %v1214_v11 = vmul.f32 1.442695, %v1205_v8  ;;  %v5486_v12 = vpop.f32.mrf.mxu1 }
 0x2c0   : > { %6133 = vpow2.f32 %v1214_v11 }
 0x2c1   : > { %6135 = vpow2.f32 %v1212_v24 }
 0x2ca   : > { %6000 = vrot.lane.b32.xlu1 %v6870_v18, %s6472_s13 }
 0x2cd   : > { %v6134_v19 = vpop.eup %6133 }
 0x2ce   : > { %v1231_v21 = vsel %vm811_vm2, %v6134_v19, 0.0  ;;  %v6875_v25 = vpop.eup %6135 }
 0x2cf   : > { %1232 = vadd.xlane.f32.xlu0 %v1231_v21  ;;  %v1228_v26 = vsel %vm811_vm2, %v6875_v25, 0.0 }
 0x2ee   : > { %1229 = vadd.xlane.f32.xlu1 %v1228_v26 }
 0x332   : > { %v1188_v27 = vpop.xlane.xlu0 %1187 }
 0x333   : > { %v1206_v14 = vsub.f32 %v944_v40, %v1188_v27 }
 0x335   : > { %v1216_v16 = vmul.f32 1.442695, %v1206_v14 }
 0x336   : > { %v1191_v28 = vpop.xlane.xlu0 %1190 }
 0x337   : > { %6137 = vpow2.f32 %v1216_v16  ;;  %v1207_v29 = vsub.f32 %v990_v41, %v1191_v28 }
 0x339   : > { %v1218_v31 = vmul.f32 1.442695, %v1207_v29 }
 0x33a   : > { %v1197_v32 = vpop.xlane.xlu0 %1196  ;;  %v1194_v33 = vpop.xlane.xlu1 %1193 }
 0x33b   : > { %6139 = vpow2.f32 %v1218_v31  ;;  %v1209_v34 = vsub.f32 %v1082_v51, %v1197_v32  ;;  %v1208_v30 = vsub.f32 %v1036_v50, %v1194_v33 }
 0x33d   : > { %v1222_v35 = vmul.f32 1.442695, %v1209_v34  ;;  %v1220_v36 = vmul.f32 1.442695, %v1208_v30 }
 0x33f   : > { %6141 = vpow2.f32 %v1222_v35 }
 0x340   : > { %6143 = vpow2.f32 %v1220_v36 }
 0x342   : > { %v1203_v37 = vpop.xlane.xlu0 %1202  ;;  %v1200_v39 = vpop.xlane.xlu1 %1199 }
 0x343   : > { %v1211_v38 = vsub.f32 %v1174_v60, %v1203_v37  ;;  %v1210_v43 = vsub.f32 %v1128_v62, %v1200_v39 }
 0x344   : > { %v6138_v42 = vpop.eup %6137 }
 0x345   : > { %v1226_v40 = vmul.f32 1.442695, %v1211_v38  ;;  %v1234_v44 = vsel %vm811_vm2, %v6138_v42, 0.0  ;;  %v1224_v45 = vmul.f32 1.442695, %v1210_v43 }
 0x346   : > { %1235 = vadd.xlane.f32.xlu1 %v1234_v44  ;;  %v6001_v56 = vpop.permute.xlu1 %6000 }
 0x347   : > { %6145 = vpow2.f32 %v1226_v40  ;;  %v6003_v57 = vunpack.i.h.bf16 %v6001_v56  ;;  %v6002_v2 = vunpack.i.l.bf16 %v6001_v56 }
 0x348   : > { %v6140_v41 = vpop.eup %6139  ;;  %6147 = vpow2.f32 %v1224_v45 }
 0x349   : > { %v1237_v46 = vsel %vm811_vm2, %v6140_v41, 0.0  ;;  %v806_v59 = vpack.c.bf16 %v6003_v57, %v6003_v57  ;;  %v805_v6 = vpack.c.bf16 %v6002_v2, %v6002_v2  ;;  %v6095_v2 = vld [vmem:[%s7569_s5 + $0x8] sm:$0xff]  }
 0x34a   : > { %1238 = vadd.xlane.f32.xlu0 %v1237_v46 }
 0x34b   : > { %v1419_v63 = vsel %vm1279_vm3, %v806_v59, 0  ;;  %v1373_v9 = vsel %vm1279_vm3, %v805_v6, 0 }
 0x34c   : > { %v6881_v47 = vpop.eup %6141 }
 0x34d   : > { %v6883_v48 = vpop.eup %6143  ;;  %v1243_v49 = vsel %vm811_vm2, %v6881_v47, 0.0 }
 0x34e   : > { %1244 = vadd.xlane.f32.xlu0 %v1243_v49  ;;  %v1240_v50 = vsel %vm811_vm2, %v6883_v48, 0.0 }
 0x34f   : > { %1241 = vadd.xlane.f32.xlu1 %v1240_v50 }
 0x354   : > { %v6889_v51 = vpop.eup %6145 }
 0x355   : > { %v6891_v52 = vpop.eup %6147  ;;  %v1249_v53 = vsel %vm811_vm2, %v6889_v51, 0.0 }
 0x356   : > { %1250 = vadd.xlane.f32.xlu0 %v1249_v53  ;;  %v1246_v54 = vsel %vm811_vm2, %v6891_v52, 0.0 }
 0x357   : > { %1247 = vadd.xlane.f32.xlu1 %v1246_v54 }
 0x358   : > { %v1233_v55 = vpop.xlane.xlu0 %1232 }
 0x359   : > { %6149 = vrcp.f32 %v1233_v55 }
 0x366   : > { %v6150_v58 = vpop.eup %6149 }
 0x367   : > { %v1261_v60 = vmul.f32 %v6150_v58, %v6134_v19 }
 0x368   : > { %6010 = vrot.lane.b32.xlu1 %v6870_v18, %s6473_s23 }
 0x369   : > { %v1269_v62 = vpack.c.bf16 %v1261_v60, %v1261_v60 }
 0x36b   : > { %5502 = vmatmul.mubr.msk.bf16.vlgmr.msra.gmra.mxu0 %vm811_vm2, %v1269_v62 }
 0x36c   : > { %5512 = vmatpush3.bf16.msra.mxu0 %v1419_v63  ;;  %6005 = vrot.lane.b32.xlu0 %v6870_v18, %s6471_s7 }
 0x36d   : > { %5513 = vmatprep.mubr.msk.bf16.mxu0 %vm6470_vm0, %v6469_v0  ;;  %5523 = vmatprep.subr.bf16.mxu0 %v6469_v0 }
 0x377   : > { %v1230_v1 = vpop.xlane.xlu1 %1229 }
 0x378   : > { %6151 = vrcp.f32 %v1230_v1 }
 0x385   : > { %v6152_v5 = vpop.eup %6151 }
 0x386   : > { %v1260_v7 = vmul.f32 %v6152_v5, %v6875_v25 }
 0x388   : > { %v1268_v8 = vpack.c.bf16 %v1260_v7, %v1260_v7 }
 0x38a   : > { %5496 = vmatmul.mubr.msk.bf16.vlgmr.msra.gmra.mxu1 %vm811_vm2, %v1268_v8 }
 0x38b   : > { %5506 = vmatpush3.bf16.msra.mxu1 %v1373_v9  ;;  %5507 = vmatprep.mubr.msk.bf16.mxu1 %vm6470_vm0, %v6469_v0 }
 0x38c   : > { %5517 = vmatprep.subr.bf16.mxu1 %v6469_v0 }
 0x3cf   : > { %v1236_v10 = vpop.xlane.xlu1 %1235 }
 0x3d0   : > { %6153 = vrcp.f32 %v1236_v10 }
 0x3d3   : > { %v1239_v11 = vpop.xlane.xlu0 %1238 }
 0x3d4   : > { %6155 = vrcp.f32 %v1239_v11 }
 0x3d7   : > { %v1245_v12 = vpop.xlane.xlu0 %1244 }
 0x3d8   : > { %6157 = vrcp.f32 %v1245_v12  ;;  %v1242_v18 = vpop.xlane.xlu1 %1241 }
 0x3d9   : > { %6159 = vrcp.f32 %v1242_v18  ;;  %v6096_v18 = vld [vmem:[%s7569_s5] sm:$0xff]  }
 0x3dd   : > { %v6154_v19 = vpop.eup %6153 }
 0x3de   : > { %v1262_v21 = vmul.f32 %v6154_v19, %v6138_v42 }
 0x3df   : > { %v1251_v22 = vpop.xlane.xlu0 %1250 }
 0x3e0   : > { %6161 = vrcp.f32 %v1251_v22  ;;  %v1248_v23 = vpop.xlane.xlu1 %1247  ;;  %v1270_v24 = vpack.c.bf16 %v1262_v21, %v1262_v21 }
 0x3e1   : > { %v6156_v25 = vpop.eup %6155  ;;  %6163 = vrcp.f32 %v1248_v23 }
 0x3e2   : > { %5508 = vmatmul.mubr.msk.bf16.vlgmr.msra.gmra.mxu1 %vm811_vm2, %v1270_v24  ;;  %v1263_v26 = vmul.f32 %v6156_v25, %v6140_v41 }
 0x3e3   : > { %v6006_v27 = vpop.permute.xlu0 %6005  ;;  %5519 = vmatprep.mubr.msk.bf16.mxu1 %vm6470_vm0, %v6469_v0 }
 0x3e4   : > { %v6008_v14 = vunpack.i.h.bf16 %v6006_v27  ;;  %v6007_v16 = vunpack.i.l.bf16 %v6006_v27  ;;  %v6011_v28 = vpop.permute.xlu1 %6010  ;;  %v1271_v29 = vpack.c.bf16 %v1263_v26, %v1263_v26 }
 0x3e5   : > { %v6158_v31 = vpop.eup %6157  ;;  %v6012_v32 = vunpack.i.l.bf16 %v6011_v28  ;;  %v6013_v35 = vunpack.i.h.bf16 %v6011_v28 }
 0x3e6   : > { %v6160_v33 = vpop.eup %6159  ;;  %v808_v34 = vpack.c.bf16 %v6008_v14, %v6008_v14  ;;  %v807_v30 = vpack.c.bf16 %v6007_v16, %v6007_v16  ;;  %5514 = vmatmul.mubr.msk.bf16.vlgmr.msra.gmra.mxu0 %vm811_vm2, %v1271_v29  ;;  %v1265_v42 = vmul.f32 %v6158_v31, %v6881_v47 }
 0x3e7   : > { %v1264_v36 = vmul.f32 %v6160_v33, %v6883_v48  ;;  %5525 = vmatprep.mubr.msk.bf16.mxu0 %vm6470_vm0, %v6469_v0  ;;  %v809_v37 = vpack.c.bf16 %v6012_v32, %v6012_v32  ;;  %v810_v43 = vpack.c.bf16 %v6013_v35, %v6013_v35 }
 0x3e8   : > { %v1465_v38 = vsel %vm1279_vm3, %v807_v30, 0  ;;  %v1511_v39 = vsel %vm1279_vm3, %v808_v34, 0  ;;  %v1273_v45 = vpack.c.bf16 %v1265_v42, %v1265_v42 }
 0x3e9   : > { %5518 = vmatpush3.bf16.msra.mxu1 %v1465_v38  ;;  %5524 = vmatpush3.bf16.msra.mxu0 %v1511_v39  ;;  %v1272_v40 = vpack.c.bf16 %v1264_v36, %v1264_v36  ;;  %v1557_v44 = vsel %vm1279_vm3, %v809_v37, 0  ;;  %v1603_v47 = vsel %vm1279_vm3, %v810_v43, 0 }
 0x3ea   : > { %5529 = vmatprep.subr.bf16.mxu1 %v6469_v0  ;;  %5535 = vmatprep.subr.bf16.mxu0 %v6469_v0 }
 0x3ec   : > { %5520 = vmatmul.mubr.msk.bf16.vlgmr.msra.gmra.mxu1 %vm811_vm2, %v1272_v40 }
 0x3ed   : > { %v6162_v41 = vpop.eup %6161  ;;  %5530 = vmatpush3.bf16.msra.mxu1 %v1557_v44  ;;  %5531 = vmatprep.mubr.msk.bf16.mxu1 %vm6470_vm0, %v6469_v0 }
 0x3ee   : > { %v6164_v46 = vpop.eup %6163  ;;  %5526 = vmatmul.mubr.msk.bf16.vlgmr.msra.gmra.mxu0 %vm811_vm2, %v1273_v45  ;;  %5541 = vmatprep.subr.bf16.mxu1 %v6469_v0  ;;  %v1267_v49 = vmul.f32 %v6162_v41, %v6889_v51 }
 0x3ef   : > { %5536 = vmatpush3.bf16.msra.mxu0 %v1603_v47  ;;  %v1266_v48 = vmul.f32 %v6164_v46, %v6891_v52  ;;  %5537 = vmatprep.mubr.msk.bf16.mxu0 %vm6470_vm0, %v6469_v0 }
 0x3f0   : > { %5549 = vmatprep.subr.bf16.mxu0 %v6469_v0  ;;  %v1275_v53 = vpack.c.bf16 %v1267_v49, %v1267_v49  ;;  %v6963_v49 = vsub.s32 3, %v6780_v13 }
 0x3f1   : > { %v1274_v50 = vpack.c.bf16 %v1266_v48, %v1266_v48 }
 0x3f4   : > { %5532 = vmatmul.mubr.msk.bf16.vlgmr.msra.gmra.mxu1 %vm811_vm2, %v1274_v50  ;;  %v1685_v50 = vrot.slane %v6788_v17, %v6963_v49 }
 0x3f5   : > { %5545 = vmatprep.mubr.msk.bf16.mxu1 %vm6470_vm0, %v6469_v0  ;;  %5542 = vmatpush3.bf16.msra.mxu1 %v6095_v2 }
 0x3f6   : > { %5538 = vmatmul.mubr.msk.bf16.vlgmr.msra.gmra.mxu0 %vm811_vm2, %v1275_v53  ;;  %5543 = vmatprep.subr.bf16.mxu1 %v6469_v0 }
 0x3f7   : > { %5553 = vmatprep.mubr.msk.bf16.mxu0 %vm6470_vm0, %v6469_v0 }
 0x3f9   : > { %5544 = vmatpush3.bf16.msra.mxu1 %v6096_v18  ;;  %v6099_v18 = vld [vmem:[#allocation8 + $0x10] sm:$0xff]  }
 0x3fa   : > { %5557 = vmatprep.subr.bf16.mxu1 %v6469_v0 }
 0x42b   : > { %v1363_v52 = vpop.f32.mrf.mxu0 }
 0x42d   : > { %v5503_v54 = vpop.f32.mrf.mxu0 }
 0x42f   : > { %v1366_v55 = vpop.f32.mrf.mxu0 }
 0x431   : > { %v5504_v56 = vpop.f32.mrf.mxu0 }
 0x44a   : > { %v1317_v57 = vpop.f32.mrf.mxu1 }
 0x44c   : > { %v5497_v51 = vpop.f32.mrf.mxu1 }
 0x44e   : > { %v1320_v58 = vpop.f32.mrf.mxu1 }
 0x450   : > { %v5498_v59 = vpop.f32.mrf.mxu1 }
 0x4a2   : > { %v1409_v60 = vpop.f32.mrf.mxu1 }
 0x4a4   : > { %v5509_v62 = vpop.f32.mrf.mxu1 }
 0x4a6   : > { %v1412_v63 = vpop.f32.mrf.mxu1  ;;  %v1455_v1 = vpop.f32.mrf.mxu0 }
 0x4a7   : > { %v6014_v5 = vpack.i.bf16 %v1455_v1, %v1409_v60 }
 0x4a8   : > { %v5510_v6 = vpop.f32.mrf.mxu1  ;;  %v5515_v7 = vpop.f32.mrf.mxu0 }
 0x4a9   : > { %6015 = vrot.lane.b32.xlu1 %v6014_v5, %s6474_s14 }
 0x4aa   : > { %v1458_v8 = vpop.f32.mrf.mxu0 }
 0x4ac   : > { %v5516_v9 = vpop.f32.mrf.mxu0  ;;  %v1501_v10 = vpop.f32.mrf.mxu1 }
 0x4ae   : > { %v5521_v11 = vpop.f32.mrf.mxu1  ;;  %v1547_v12 = vpop.f32.mrf.mxu0 }
 0x4af   : > { %v6019_v19 = vpack.i.bf16 %v1547_v12, %v1501_v10  ;;  %v6097_v11 = vld [vmem:[#allocation8 + $0x18] sm:$0xff]   ;;  %v6098_v12 = vld [vmem:[#allocation8 + $0x8] sm:$0xff]  }
 0x4b0   : > { %v1504_v21 = vpop.f32.mrf.mxu1  ;;  %v5527_v22 = vpop.f32.mrf.mxu0  ;;  %5550 = vmatpush3.bf16.msra.mxu0 %v6098_v12 }
 0x4b1   : > { %6020 = vrot.lane.b32.xlu0 %v6019_v19, %s6475_s16  ;;  %5551 = vmatprep.subr.bf16.mxu0 %v6469_v0  ;;  %v6100_v19 = vld [vmem:[#allocation8] sm:$0xff]  }
 0x4b2   : > { %v5522_v23 = vpop.f32.mrf.mxu1  ;;  %v1550_v24 = vpop.f32.mrf.mxu0 }
 0x4b4   : > { %v5528_v25 = vpop.f32.mrf.mxu0  ;;  %v1593_v26 = vpop.f32.mrf.mxu1  ;;  %5552 = vmatpush3.bf16.msra.mxu0 %v6100_v19 }
 0x4b5   : > { %5565 = vmatprep.subr.bf16.mxu0 %v6469_v0 }
 0x4b6   : > { %v5533_v27 = vpop.f32.mrf.mxu1  ;;  %v1639_v14 = vpop.f32.mrf.mxu0 }
 0x4b7   : > { %v6024_v16 = vpack.i.bf16 %v1639_v14, %v1593_v26  ;;  %v6980_v27 = vld [vmem:[%s7574_s10 + $0x8] sm:$0xff]  ;;  %v6983_v14 = vsub.s32 4, %v6780_v13 }
 0x4b8   : > { %v1596_v28 = vpop.f32.mrf.mxu1  ;;  %v5539_v29 = vpop.f32.mrf.mxu0 }
 0x4b9   : > { %6025 = vrot.lane.b32.xlu1 %v6024_v16, %s6476_s4  ;;  %v1784_v16 = vrot.slane %v6980_v27, %v6963_v49 }
 0x4ba   : > { %v5534_v31 = vpop.f32.mrf.mxu1  ;;  %v1642_v32 = vpop.f32.mrf.mxu0 }
 0x4bb   : > { %v1789_v31 = vrot.slane %v6980_v27, %v6983_v14 }
 0x4bc   : > { %v5540_v33 = vpop.f32.mrf.mxu0 }
 0x4bd   : > { %v1760_v33 = vrot.slane %v6980_v27, %v6783_v15 }
 0x51b   : > { %v6016_v34 = vpop.permute.xlu1 %6015 }
 0x51c   : > { %v6018_v35 = vunpack.i.h.bf16 %v6016_v34  ;;  %v6017_v36 = vunpack.i.l.bf16 %v6016_v34 }
 0x51e   : > { %v1670_v42 = vsel %vm811_vm2, %v1363_v52, %v6018_v35  ;;  %v1669_v43 = vsel %vm811_vm2, %v1317_v57, %v6017_v36 }
 0x523   : > { %v6021_v30 = vpop.permute.xlu0 %6020 }
 0x524   : > { %v6023_v37 = vunpack.i.h.bf16 %v6021_v30  ;;  %v6022_v38 = vunpack.i.l.bf16 %v6021_v30  ;;  %v529_v30 = vld [vmem:[%s460_s17] sm:$0xff] }
 0x526   : > { %v1673_v45 = vsel %vm1671_vm4, %v1670_v42, %v6023_v37  ;;  %v1672_v41 = vsel %vm1671_vm4, %v1669_v43, %v6022_v38  ;;  %v1765_v37 = vrot.slane %v6980_v27, %v6818_v61 }
 0x52b   : > { %v6026_v39 = vpop.permute.xlu1 %6025 }
 0x52c   : > { %v6028_v40 = vunpack.i.h.bf16 %v6026_v39  ;;  %v6027_v44 = vunpack.i.l.bf16 %v6026_v39 }
 0x52e   : > { %v1676_v46 = vsel %vm1674_vm5, %v1673_v45, %v6028_v40  ;;  %v1675_v47 = vsel %vm1674_vm5, %v1672_v41, %v6027_v44  ;;  %v6101_v44 = vld [vmem:[#allocation8 + $0x28] sm:$0xff]   ;;  %v6102_v41 = vld [vmem:[#allocation8 + $0x20] sm:$0xff]  }
 0x52f   : > { %v1677_v48 = vpack.c.bf16 %v1676_v46, %v1675_v47  ;;  %v7011_v47 = vsub.s32 5, %v6780_v13 }
 0x531   : > { %5546 = vmatmul.mubr.msk.bf16.vlgmr.msra.gmra.mxu1 %vm530_vm1, %v1677_v48  ;;  %v1866_v48 = vrot.slane %v6788_v17, %v7011_v47 }
 0x532   : > { %5561 = vmatprep.mubr.msk.bf16.mxu1 %vm6470_vm0, %v6469_v0  ;;  %5558 = vmatpush3.bf16.msra.mxu1 %v6097_v11 }
 0x533   : > { %5559 = vmatprep.subr.bf16.mxu1 %v6469_v0 }
 0x536   : > { %5560 = vmatpush3.bf16.msra.mxu1 %v6099_v18 }
 0x537   : > { %5573 = vmatprep.subr.bf16.mxu1 %v6469_v0 }
 0x5f1   : > { %v1735_v53 = vpop.f32.mrf.mxu1 }
 0x5f2   : > { %v1736_v52 = vadd.f32 %v1735_v53, %v1685_v50 }
 0x5f3   : > { %v5547_v54 = vpop.f32.mrf.mxu1 }
 0x5f4   : > { %v1742_v55 = vadd.f32 %v1736_v52, %v6745_v3  ;;  %v1801_v52 = vrot.slane %v6788_v17, %v6983_v14 }
 0x5f5   : > { %v1738_v56 = vpop.f32.mrf.mxu1 }
 0x5f6   : > { %v1739_v57 = vadd.f32 %v1738_v56, %v1685_v50  ;;  %v1743_v51 = vsel %vm530_vm1, %v1742_v55, 0.0 }
 0x5f7   : > { %1744 = vadd.xlane.f32.xlu1 %v1743_v51  ;;  %v5548_v58 = vpop.f32.mrf.mxu1 }
 0x5f8   : > { %v1767_v59 = vadd.f32 %v1739_v57, %v6747_v4 }
 0x5fa   : > { %v1768_v60 = vsel %vm530_vm1, %v1767_v59, 0.0 }
 0x5fb   : > { %1769 = vadd.xlane.f32.xlu0 %v1768_v60 }
 0x680   : > { %v1745_v62 = vpop.xlane.xlu1 %1744 }
 0x681   : > { %v1747_v63 = vmul.f32 0.03125, %v1745_v62 }
 0x683   : > { %v1748_v5 = vsub.f32 %v1742_v55, %v1747_v63 }
 0x684   : > { %v1770_v1 = vpop.xlane.xlu0 %1769 }
 0x685   : > { %v1771_v2 = vmul.f32 0.03125, %v1770_v1  ;;  %v1749_v9 = vmul.f32 %v1748_v5, %v1748_v5 }
 0x687   : > { %v1772_v6 = vsub.f32 %v1767_v59, %v1771_v2  ;;  %v1750_v10 = vsel %vm530_vm1, %v1749_v9, 0.0 }
 0x689   : > { %v1773_v7 = vmul.f32 %v1772_v6, %v1772_v6 }
 0x68b   : > { %v1774_v8 = vsel %vm530_vm1, %v1773_v7, 0.0 }
 0x68c   : > { %1775 = vadd.xlane.f32.xlu0 %v1774_v8  ;;  %v7029_v8 = vsub.s32 6, %v6780_v13 }
 0x68e   : > { %v1931_v9 = vrot.slane %v6788_v17, %v7029_v8 }
 0x690   : > { %1751 = vadd.xlane.f32.xlu0 %v1750_v10 }
 0x715   : > { %v1776_v21 = vpop.xlane.xlu0 %1775 }
 0x716   : > { %v1777_v22 = vmul.f32 0.03125, %v1776_v21 }
 0x718   : > { %v1778_v23 = vadd.f32 1e-05, %v1777_v22 }
 0x719   : > { %v1752_v24 = vpop.xlane.xlu0 %1751 }
 0x71a   : > { %6165 = vrsqrt.f32 %v1778_v23  ;;  %v1753_v25 = vmul.f32 0.03125, %v1752_v24 }
 0x71c   : > { %v1754_v26 = vadd.f32 1e-05, %v1753_v25 }
 0x71e   : > { %6167 = vrsqrt.f32 %v1754_v26 }
 0x727   : > { %v6166_v28 = vpop.eup %6165 }
 0x728   : > { %v1780_v29 = vmul.f32 %v6166_v28, %v1772_v6 }
 0x72a   : > { %v1785_v32 = vmul.f32 %v1784_v16, %v1780_v29 }
 0x72b   : > { %v6168_v34 = vpop.eup %6167 }
 0x72c   : > { %v1756_v35 = vmul.f32 %v6168_v34, %v1748_v5  ;;  %v1790_v36 = vadd.f32 %v1789_v31, %v1785_v32 }
 0x72e   : > { %v1792_v38 = vadd.f32 %v1790_v36, %v529_v30  ;;  %v1761_v39 = vmul.f32 %v1760_v33, %v1756_v35  ;;  %v1922_v46 = vpack.c.bf16 %v1790_v36, %v1790_v36 }
 0x730   : > { %v1857_v42 = vpack.c.bf16 %v1792_v38, %v1792_v38  ;;  %v6995_v43 = vadd.f32 %v1765_v37, %v1761_v39 }
 0x732   : > { %5562 = vmatmul.mubr.msk.bf16.vlgmr.msra.gmra.mxu1 %vm530_vm1, %v1857_v42  ;;  %v1791_v40 = vadd.f32 %v6995_v43, %v6745_v3 }
 0x733   : > { %5575 = vmatprep.mubr.msk.bf16.mxu1 %vm6470_vm0, %v6469_v0 }
 0x734   : > { %v1793_v45 = vpack.c.bf16 %v1791_v40, %v1791_v40 }
 0x736   : > { %5554 = vmatmul.mubr.msk.bf16.vlgmr.msra.gmra.mxu0 %vm530_vm1, %v1793_v45 }
 0x737   : > { %5566 = vmatpush3.bf16.msra.mxu0 %v6101_v44  ;;  %5569 = vmatprep.mubr.msk.bf16.mxu0 %vm6470_vm0, %v6469_v0 }
 0x738   : > { %5567 = vmatprep.subr.bf16.mxu0 %v6469_v0 }
 0x73b   : > { %5568 = vmatpush3.bf16.msra.mxu0 %v6102_v41 }
 0x73c   : > { %5579 = vmatprep.subr.bf16.mxu0 %v6469_v0 }
 0x73e   : > { %5570 = vmatmul.mubr.msk.bf16.vlgmr.msra.gmra.mxu0 %vm530_vm1, %v1922_v46 }
 0x73f   : > { %5581 = vmatprep.mubr.msk.bf16.mxu0 %vm6470_vm0, %v6469_v0 }
 0x7f2   : > { %v1916_v50 = vpop.f32.mrf.mxu1 }
 0x7f3   : > { %v1917_v53 = vadd.f32 %v1916_v50, %v1866_v48 }
 0x7f4   : > { %v5563_v54 = vpop.f32.mrf.mxu1 }
 0x7f5   : > { %2005 = vrot.lane.b32.xlu0 %v1917_v53, %s6471_s7  ;;  %2002 = vrot.lane.b32.xlu1 %v1917_v53, %s6472_s13  ;;  %v2011_v55 = vpack.c.bf16 %v1917_v53, %v1917_v53 }
 0x7f6   : > { %v1851_v56 = vpop.f32.mrf.mxu0  ;;  %v1919_v57 = vpop.f32.mrf.mxu1 }
 0x7f7   : > { %v1852_v51 = vadd.f32 %v1851_v56, %v1801_v52  ;;  %v2033_v58 = vsel %vm811_vm2, %v2011_v55, 0 }
 0x7f8   : > { %v5555_v59 = vpop.f32.mrf.mxu0  ;;  %v5564_v60 = vpop.f32.mrf.mxu1  ;;  %5574 = vmatpush3.bf16.xpose.msra.mxu1 %v2033_v58 }
 0x7f9   : > { %1991 = vrot.lane.b32.xlu0 %v1852_v51, %s6471_s7  ;;  %1988 = vrot.lane.b32.xlu1 %v1852_v51, %s6472_s13  ;;  %v1997_v1 = vpack.c.bf16 %v1852_v51, %v1852_v51 }
 0x7fa   : > { %v1854_v62 = vpop.f32.mrf.mxu0  ;;  %5585 = vmatprep.subr.bf16.mxu1 %v6469_v0 }
 0x7fc   : > { %v5556_v63 = vpop.f32.mrf.mxu0 }
 0x7fd   : > { %2008 = vrot.lane.b32.xlu1 %v1917_v53, %s6473_s23 }
 0x7fe   : > { %v1981_v2 = vpop.f32.mrf.mxu0 }
 0x7ff   : > { %5576 = vmatmul.mubr.msk.bf16.vlgmr.msra.gmra.mxu1 %vm811_vm2, %v1997_v1  ;;  %v7033_v19 = vadd.f32 %v1981_v2, %v1931_v9 }
 0x800   : > { %v5571_v5 = vpop.f32.mrf.mxu0  ;;  %5587 = vmatprep.mubr.msk.bf16.mxu1 %vm6470_vm0, %v6469_v0 }
 0x801   : > { %1994 = vrot.lane.b32.xlu1 %v1852_v51, %s6473_s23  ;;  %v2025_v17 = vpack.c.bf16 %v7033_v19, %v7033_v19 }
 0x802   : > { %v1984_v6 = vpop.f32.mrf.mxu0 }
 0x803   : > { %v2265_v31 = vsel %vm1279_vm3, %v2025_v17, 0 }
 0x804   : > { %v5572_v7 = vpop.f32.mrf.mxu0 }
 0x867   : > { %v2006_v10 = vpop.permute.xlu0 %2005  ;;  %v2003_v11 = vpop.permute.xlu1 %2002 }
 0x868   : > { %v2013_v12 = vpack.c.bf16 %v2006_v10, %v2006_v10  ;;  %v2012_v18 = vpack.c.bf16 %v2003_v11, %v2003_v11 }
 0x86a   : > { %v2125_v21 = vsel %vm811_vm2, %v2013_v12, 0  ;;  %v2079_v22 = vsel %vm811_vm2, %v2012_v18, 0 }
 0x86b   : > { %5580 = vmatpush3.bf16.xpose.msra.mxu0 %v2079_v22  ;;  %v1989_v23 = vpop.permute.xlu1 %1988  ;;  %5586 = vmatpush3.bf16.xpose.msra.mxu1 %v2125_v21  ;;  %v1992_v24 = vpop.permute.xlu0 %1991 }
 0x86c   : > { %5591 = vmatprep.subr.bf16.mxu0 %v6469_v0  ;;  %5597 = vmatprep.subr.bf16.mxu1 %v6469_v0  ;;  %v1999_v26 = vpack.c.bf16 %v1992_v24, %v1992_v24  ;;  %v1998_v16 = vpack.c.bf16 %v1989_v23, %v1989_v23 }
 0x86f   : > { %v2009_v25 = vpop.permute.xlu1 %2008 }
 0x870   : > { %v2014_v28 = vpack.c.bf16 %v2009_v25, %v2009_v25 }
 0x872   : > { %v2171_v29 = vsel %vm811_vm2, %v2014_v28, 0  ;;  %5582 = vmatmul.mubr.msk.bf16.vlgmr.msra.gmra.mxu0 %vm811_vm2, %v1998_v16  ;;  %5588 = vmatmul.mubr.msk.bf16.vlgmr.msra.gmra.mxu1 %vm811_vm2, %v1999_v26 }
 0x873   : > { %5592 = vmatpush3.bf16.xpose.msra.mxu0 %v2171_v29  ;;  %5598 = vmatpush3.bf16.msra.mxu1 %v2265_v31  ;;  %v1995_v32 = vpop.permute.xlu1 %1994 }
 0x874   : > { %5593 = vmatprep.mubr.msk.bf16.mxu0 %vm6470_vm0, %v6469_v0  ;;  %5603 = vmatprep.subr.bf16.mxu0 %v6469_v0  ;;  %v2000_v33 = vpack.c.bf16 %v1995_v32, %v1995_v32 }
 0x875   : > { %5599 = vmatprep.mubr.msk.bf16.mxu1 %vm6470_vm0, %v6469_v0  ;;  %5609 = vmatprep.subr.bf16.mxu1 %v6469_v0 }
 0x87a   : > { %5594 = vmatmul.mubr.msk.bf16.vlgmr.msra.gmra.mxu0 %vm811_vm2, %v2000_v33 }
 0x87b   : > { %5605 = vmatprep.mubr.msk.bf16.mxu0 %vm6470_vm0, %v6469_v0 }
 0x8bf   : > { %v2069_v34 = vpop.f32.mrf.mxu1 }
 0x8c0   : > { %v2213_v30 = vsel %vm811_vm2, %v2069_v34, -inf }
 0x8c1   : > { %2214 = vmax.xlane.f32.xlu0 %v2213_v30  ;;  %v5577_v35 = vpop.f32.mrf.mxu1 }
 0x8c3   : > { %v2072_v36 = vpop.f32.mrf.mxu1 }
 0x8c5   : > { %v5578_v37 = vpop.f32.mrf.mxu1 }
 0x932   : > { %v2115_v38 = vpop.f32.mrf.mxu0  ;;  %v2161_v39 = vpop.f32.mrf.mxu1 }
 0x933   : > { %v2216_v42 = vsel %vm811_vm2, %v2115_v38, -inf  ;;  %v2219_v40 = vsel %vm811_vm2, %v2161_v39, -inf }
 0x934   : > { %2217 = vmax.xlane.f32.xlu1 %v2216_v42  ;;  %v5583_v44 = vpop.f32.mrf.mxu0  ;;  %2220 = vmax.xlane.f32.xlu0 %v2219_v40  ;;  %v5589_v45 = vpop.f32.mrf.mxu1 }
 0x936   : > { %v2118_v41 = vpop.f32.mrf.mxu0  ;;  %v2164_v46 = vpop.f32.mrf.mxu1 }
 0x938   : > { %v5584_v48 = vpop.f32.mrf.mxu0  ;;  %v5590_v50 = vpop.f32.mrf.mxu1 }
 0x93a   : > { %v2207_v53 = vpop.f32.mrf.mxu0 }
 0x93b   : > { %v2222_v52 = vsel %vm811_vm2, %v2207_v53, -inf }
 0x93c   : > { %v5595_v54 = vpop.f32.mrf.mxu0  ;;  %2223 = vmax.xlane.f32.xlu0 %v2222_v52 }
 0x93e   : > { %v2210_v55 = vpop.f32.mrf.mxu0 }
 0x93f   : > { %v6103_v55 = vld [vmem:[#allocation9 + $0x8] sm:$0xff]  }
 0x940   : > { %v5596_v56 = vpop.f32.mrf.mxu0 }
 0x941   : > { %v6104_v56 = vld [vmem:[#allocation9] sm:$0xff]  }
 0x945   : > { %2016 = vrot.lane.b32.xlu1 %v7033_v19, %s6472_s13 }
 0x94a   : > { %v2215_v57 = vpop.xlane.xlu0 %2214 }
 0x94b   : > { %v2225_v51 = vsub.f32 %v2069_v34, %v2215_v57 }
 0x94d   : > { %v2229_v58 = vmul.f32 1.442695, %v2225_v51 }
 0x94f   : > { %6169 = vpow2.f32 %v2229_v58 }
 0x95c   : > { %v6170_v59 = vpop.eup %6169 }
 0x95d   : > { %v2237_v60 = vsel %vm811_vm2, %v6170_v59, 0.0 }
 0x969   : > { %2238 = vadd.xlane.f32.xlu1 %v2237_v60 }
 0x9bd   : > { %v2218_v62 = vpop.xlane.xlu1 %2217  ;;  %v2221_v63 = vpop.xlane.xlu0 %2220 }
 0x9be   : > { %v2226_v1 = vsub.f32 %v2115_v38, %v2218_v62  ;;  %v2227_v2 = vsub.f32 %v2161_v39, %v2221_v63 }
 0x9c0   : > { %v2231_v5 = vmul.f32 1.442695, %v2226_v1  ;;  %v2233_v6 = vmul.f32 1.442695, %v2227_v2 }
 0x9c1   : > { %v2017_v7 = vpop.permute.xlu1 %2016 }
 0x9c2   : > { %6171 = vpow2.f32 %v2231_v5  ;;  %v2026_v9 = vpack.c.bf16 %v2017_v7, %v2017_v7 }
 0x9c3   : > { %6173 = vpow2.f32 %v2233_v6 }
 0x9c4   : > { %v2311_v10 = vsel %vm1279_vm3, %v2026_v9, 0 }
 0x9c5   : > { %5604 = vmatpush3.bf16.msra.mxu0 %v2311_v10  ;;  %v2224_v11 = vpop.xlane.xlu0 %2223 }
 0x9c6   : > { %v2228_v12 = vsub.f32 %v2207_v53, %v2224_v11  ;;  %5615 = vmatprep.subr.bf16.mxu0 %v6469_v0 }
 0x9c8   : > { %v2235_v18 = vmul.f32 1.442695, %v2228_v12 }
 0x9ca   : > { %6175 = vpow2.f32 %v2235_v18 }
 0x9cf   : > { %v6172_v21 = vpop.eup %6171 }
 0x9d0   : > { %v6174_v22 = vpop.eup %6173  ;;  %v2240_v23 = vsel %vm811_vm2, %v6172_v21, 0.0 }
 0x9d1   : > { %2241 = vadd.xlane.f32.xlu0 %v2240_v23  ;;  %v2243_v24 = vsel %vm811_vm2, %v6174_v22, 0.0  ;;  %v7098_v23 = vsub.s32 7, %v6780_v13 }
 0x9d2   : > { %2244 = vadd.xlane.f32.xlu1 %v2243_v24  ;;  %v6247_v24 = vld [vmem:[%s7574_s10] sm:$0xff] }
 0x9d7   : > { %v6176_v17 = vpop.eup %6175 }
 0x9d8   : > { %v2246_v25 = vsel %vm811_vm2, %v6176_v17, 0.0 }
 0x9d9   : > { %2247 = vadd.xlane.f32.xlu0 %v2246_v25 }
 0x9e3   : > { %2022 = vrot.lane.b32.xlu1 %v7033_v19, %s6473_s23 }
 0x9ef   : > { %2019 = vrot.lane.b32.xlu0 %v7033_v19, %s6471_s7 }
 0x9f2   : > { %v2239_v26 = vpop.xlane.xlu1 %2238 }
 0x9f3   : > { %6177 = vrcp.f32 %v2239_v26 }
 0xa00   : > { %v6178_v16 = vpop.eup %6177 }
 0xa01   : > { %v2253_v28 = vmul.f32 %v6178_v16, %v6170_v59 }
 0xa03   : > { %v2257_v29 = vpack.c.bf16 %v2253_v28, %v2253_v28 }
 0xa05   : > { %5600 = vmatmul.mubr.msk.bf16.vlgmr.msra.gmra.mxu1 %vm811_vm2, %v2257_v29 }
 0xa06   : > { %5611 = vmatprep.mubr.msk.bf16.mxu1 %vm6470_vm0, %v6469_v0 }
 0xa5a   : > { %v2242_v31 = vpop.xlane.xlu0 %2241 }
 0xa5b   : > { %v2245_v32 = vpop.xlane.xlu1 %2244  ;;  %6179 = vrcp.f32 %v2242_v31 }
 0xa5c   : > { %6181 = vrcp.f32 %v2245_v32 }
 0xa5f   : > { %v2023_v34 = vpop.permute.xlu1 %2022 }
 0xa60   : > { %v2028_v37 = vpack.c.bf16 %v2023_v34, %v2023_v34 }
 0xa62   : > { %v2248_v33 = vpop.xlane.xlu0 %2247  ;;  %v2403_v45 = vsel %vm1279_vm3, %v2028_v37, 0  ;;  %v6108_v37 = vld [vmem:[%s7572_s8 + $0x10] sm:$0xff]  }
 0xa63   : > { %6183 = vrcp.f32 %v2248_v33 }
 0xa66   : > { %v2020_v30 = vpop.permute.xlu0 %2019 }
 0xa67   : > { %v2027_v35 = vpack.c.bf16 %v2020_v30, %v2020_v30 }
 0xa68   : > { %v6180_v19 = vpop.eup %6179 }
 0xa69   : > { %v6182_v36 = vpop.eup %6181  ;;  %v2357_v38 = vsel %vm1279_vm3, %v2027_v35, 0  ;;  %v2254_v39 = vmul.f32 %v6180_v19, %v6172_v21  ;;  %v6105_v19 = vld [vmem:[#allocation11 + $0x8] sm:$0xff]  }
 0xa6a   : > { %5610 = vmatpush3.bf16.msra.mxu1 %v2357_v38  ;;  %v2255_v42 = vmul.f32 %v6182_v36, %v6174_v22  ;;  %v6106_v36 = vld [vmem:[#allocation11] sm:$0xff]  }
 0xa6b   : > { %v2258_v40 = vpack.c.bf16 %v2254_v39, %v2254_v39  ;;  %5621 = vmatprep.subr.bf16.mxu1 %v6469_v0 }
 0xa6c   : > { %v2259_v44 = vpack.c.bf16 %v2255_v42, %v2255_v42 }
 0xa6d   : > { %5606 = vmatmul.mubr.msk.bf16.vlgmr.msra.gmra.mxu0 %vm811_vm2, %v2258_v40  ;;  %v2541_v40 = vrot.slane %v6980_v27, %v7011_v47 }
 0xa6e   : > { %5612 = vmatmul.mubr.msk.bf16.vlgmr.msra.gmra.mxu1 %vm811_vm2, %v2259_v44  ;;  %5616 = vmatpush3.bf16.msra.mxu0 %v2403_v45 }
 0xa6f   : > { %5617 = vmatprep.mubr.msk.bf16.mxu0 %vm6470_vm0, %v6469_v0  ;;  %5625 = vmatprep.mubr.msk.bf16.mxu1 %vm6470_vm0, %v6469_v0 }
 0xa70   : > { %v6184_v41 = vpop.eup %6183  ;;  %5629 = vmatprep.subr.bf16.mxu0 %v6469_v0  ;;  %5622 = vmatpush3.bf16.msra.mxu1 %v6103_v55 }
 0xa71   : > { %v2256_v46 = vmul.f32 %v6184_v41, %v6176_v17  ;;  %5623 = vmatprep.subr.bf16.mxu1 %v6469_v0  ;;  %v2468_v17 = vrot.slane %v6247_v24, %v7098_v23  ;;  %v2546_v41 = vrot.slane %v6980_v27, %v7029_v8  ;;  %v6112_v24 = vld [vmem:[%s7567_s3 + $0x58] sm:$0xff]  }
 0xa73   : > { %v2260_v48 = vpack.c.bf16 %v2256_v46, %v2256_v46 }
 0xa74   : > { %5624 = vmatpush3.bf16.msra.mxu1 %v6104_v56 }
 0xa75   : > { %5618 = vmatmul.mubr.msk.bf16.vlgmr.msra.gmra.mxu0 %vm811_vm2, %v2260_v48  ;;  %5637 = vmatprep.subr.bf16.mxu1 %v6469_v0 }
 0xa76   : > { %5633 = vmatprep.mubr.msk.bf16.mxu0 %vm6470_vm0, %v6469_v0  ;;  %5630 = vmatpush3.bf16.msra.mxu0 %v6105_v19  ;;  %v6115_v19 = vld [vmem:[%s7567_s3 + $0x48] sm:$0xff]  }
 0xa77   : > { %5631 = vmatprep.subr.bf16.mxu0 %v6469_v0 }
 0xa7a   : > { %5632 = vmatpush3.bf16.msra.mxu0 %v6106_v36 }
 0xa7b   : > { %5649 = vmatprep.subr.bf16.mxu0 %v6469_v0 }
 0xac5   : > { %v2301_v50 = vpop.f32.mrf.mxu1 }
 0xac7   : > { %v5601_v53 = vpop.f32.mrf.mxu1 }
 0xac8   : > { %v6109_v53 = vld [vmem:[%s7572_s8 + $0x8] sm:$0xff]  }
 0xac9   : > { %v2304_v52 = vpop.f32.mrf.mxu1 }
 0xaca   : > { %v6110_v52 = vld [vmem:[%s7572_s8] sm:$0xff]  }
 0xacb   : > { %v5602_v54 = vpop.f32.mrf.mxu1 }
 0xacc   : > { %v5159_v54 = vld [vmem:[%s7573_s9] ss:$0 sm:$0xff] }
 0xb2d   : > { %v2347_v57 = vpop.f32.mrf.mxu0 }
 0xb2e   : > { %v2393_v51 = vpop.f32.mrf.mxu1  ;;  %2446 = vrot.lane.b32.xlu1 %v2347_v57, %s6474_s14 }
 0xb2f   : > { %2450 = vrot.lane.b32.xlu0 %v2393_v51, %s6475_s16  ;;  %v5607_v58 = vpop.f32.mrf.mxu0 }
 0xb30   : > { %v5613_v59 = vpop.f32.mrf.mxu1 }
 0xb31   : > { %v2350_v60 = vpop.f32.mrf.mxu0 }
 0xb32   : > { %v2396_v62 = vpop.f32.mrf.mxu1 }
 0xb33   : > { %v5608_v63 = vpop.f32.mrf.mxu0  ;;  %v2628_v62 = vrot.slane %v6980_v27, %v6793_v20 }
 0xb34   : > { %v5614_v1 = vpop.f32.mrf.mxu1 }
 0xb35   : > { %v2439_v2 = vpop.f32.mrf.mxu0 }
 0xb36   : > { %2454 = vrot.lane.b32.xlu1 %v2439_v2, %s6476_s4 }
 0xb37   : > { %v5619_v5 = vpop.f32.mrf.mxu0 }
 0xb39   : > { %v2442_v6 = vpop.f32.mrf.mxu0 }
 0xb3b   : > { %v5620_v7 = vpop.f32.mrf.mxu0 }
 0xba0   : > { %v2447_v9 = vpop.permute.xlu1 %2446 }
 0xba1   : > { %v2457_v10 = vsel %vm811_vm2, %v2301_v50, %v2447_v9  ;;  %v2451_v11 = vpop.permute.xlu0 %2450 }
 0xba2   : > { %v2458_v12 = vsel %vm1671_vm4, %v2457_v10, %v2451_v11 }
 0xba8   : > { %v2455_v18 = vpop.permute.xlu1 %2454 }
 0xba9   : > { %v2459_v21 = vsel %vm1674_vm5, %v2458_v12, %v2455_v18 }
 0xbaa   : > { %v2460_v22 = vpack.c.bf16 %v2459_v21, %v2459_v21 }
 0xbac   : > { %5626 = vmatmul.mubr.msk.bf16.vlgmr.msra.gmra.mxu1 %vm530_vm1, %v2460_v22  ;;  %v6111_v22 = vld [vmem:[%s7567_s3 + $0x38] sm:$0xff]  }
 0xbad   : > { %5645 = vmatprep.mubr.msk.bf16.mxu1 %vm6470_vm0, %v6469_v0 }
 0xc6c   : > { %v2518_v25 = vpop.f32.mrf.mxu1 }
 0xc6d   : > { %v2519_v26 = vadd.f32 %v2518_v25, %v2468_v17  ;;  %v6113_v17 = vld [vmem:[%s7567_s3 + $0x30] sm:$0xff]  }
 0xc6e   : > { %v5627_v16 = vpop.f32.mrf.mxu1  ;;  %v6114_v25 = vld [vmem:[%s7567_s3 + $0x50] sm:$0xff]  }
 0xc6f   : > { %v2524_v28 = vadd.f32 %v2519_v26, %v6995_v43  ;;  %v6107_v43 = vld [vmem:[%s7572_s8 + $0x18] sm:$0xff]  }
 0xc70   : > { %v2521_v29 = vpop.f32.mrf.mxu1  ;;  %5638 = vmatpush3.bf16.msra.mxu1 %v6107_v43  ;;  %v7187_v43 = vld [vmem:[%s7574_s10 + $0x18] sm:$0xff] }
 0xc71   : > { %v2525_v31 = vsel %vm530_vm1, %v2524_v28, 0.0  ;;  %5639 = vmatprep.subr.bf16.mxu1 %v6469_v0  ;;  %v2714_v29 = vrot.slane %v6980_v27, %v7098_v23  ;;  %v6116_v27 = vld [vmem:[%s7567_s3 + $0x40] sm:$0xff]  }
 0xc72   : > { %2526 = vadd.xlane.f32.xlu0 %v2525_v31  ;;  %v5628_v32 = vpop.f32.mrf.mxu1 }
 0xc74   : > { %5640 = vmatpush3.bf16.msra.mxu1 %v6108_v37 }
 0xc75   : > { %5641 = vmatprep.subr.bf16.mxu1 %v6469_v0 }
 0xc78   : > { %5642 = vmatpush3.bf16.msra.mxu1 %v6109_v53  ;;  %v2802_v53 = vrot.slane %v7187_v43, %v6783_v15 }
 0xc79   : > { %5643 = vmatprep.subr.bf16.mxu1 %v6469_v0 }
 0xc7c   : > { %5644 = vmatpush3.bf16.msra.mxu1 %v6110_v52 }
 0xc7d   : > { %5665 = vmatprep.subr.bf16.mxu1 %v6469_v0 }
 0xcfb   : > { %v2527_v33 = vpop.xlane.xlu0 %2526 }
 0xcfc   : > { %v2528_v34 = vmul.f32 0.03125, %v2527_v33  ;;  %v5168_v33 = vld [vmem:[%s7574_s10 + $0x10] ss:$0 sm:$0xff] }
 0xcfe   : > { %v2529_v13 = vsub.f32 %v2524_v28, %v2528_v34 }
 0xd00   : > { %v2530_v30 = vmul.f32 %v2529_v13, %v2529_v13 }
 0xd02   : > { %v2531_v35 = vsel %vm530_vm1, %v2530_v30, 0.0  ;;  %v2727_v30 = vld [vmem:[#allocation2 + $0x8] sm:$0xff] }
 0xd03   : > { %2532 = vadd.xlane.f32.xlu1 %v2531_v35 }
 0xd8c   : > { %v2533_v38 = vpop.xlane.xlu1 %2532 }
 0xd8d   : > { %v2534_v39 = vmul.f32 0.03125, %v2533_v38 }
 0xd8f   : > { %v2535_v42 = vadd.f32 1e-05, %v2534_v39  ;;  %v2737_v39 = vrot.slane %v7187_v43, %v6793_v20 }
 0xd91   : > { %6185 = vrsqrt.f32 %v2535_v42  ;;  %v2864_v42 = vrot.slane %v7187_v43, %v6818_v61 }
 0xd9e   : > { %v6186_v44 = vpop.eup %6185 }
 0xd9f   : > { %v2537_v45 = vmul.f32 %v6186_v44, %v2529_v13 }
 0xda1   : > { %v2542_v46 = vmul.f32 %v2541_v40, %v2537_v45 }
 0xda3   : > { %v2547_v48 = vadd.f32 %v2546_v41, %v2542_v46 }
 0xda5   : > { %v2548_v50 = vpack.c.bf16 %v2547_v48, %v2547_v48 }
 0xda7   : > { %5634 = vmatmul.mubr.msk.bf16.vlgmr.msra.gmra.mxu0 %vm530_vm1, %v2548_v50 }
 0xda8   : > { %5653 = vmatprep.mubr.msk.bf16.mxu0 %vm6470_vm0, %v6469_v0  ;;  %5650 = vmatpush3.bf16.msra.mxu0 %v6111_v22 }
 0xda9   : > { %5651 = vmatprep.subr.bf16.mxu0 %v6469_v0 }
 0xdac   : > { %5652 = vmatpush3.bf16.msra.mxu0 %v6113_v17 }
 0xdad   : > { %5657 = vmatprep.subr.bf16.mxu0 %v6469_v0 }
 0xe67   : > { %v2609_v55 = vpop.f32.mrf.mxu0 }
 0xe68   : > { %v2610_v56 = vadd.f32 %v5159_v54, %v2609_v55 }
 0xe69   : > { %v5635_v57 = vpop.f32.mrf.mxu0 }
 0xe6a   : > { %v2615_v51 = vmax.f32 %v2610_v56, 0.0 }
 0xe6b   : > { %v2612_v58 = vpop.f32.mrf.mxu0 }
 0xe6c   : > { %v2616_v59 = vpack.c.bf16 %v2615_v51, %v2615_v51 }
 0xe6d   : > { %v5636_v60 = vpop.f32.mrf.mxu0 }
 0xe6e   : > { %5646 = vmatmul.mubr.msk.bf16.vlgmr.msra.gmra.mxu1 %vm2653_vm6, %v2616_v59 }
 0xe6f   : > { %5669 = vmatprep.mubr.msk.bf16.mxu1 %vm6470_vm0, %v6469_v0  ;;  %5666 = vmatpush3.bf16.msra.mxu1 %v6112_v24 }
 0xe70   : > { %5667 = vmatprep.subr.bf16.mxu1 %v6469_v0 }
 0xe73   : > { %5668 = vmatpush3.bf16.msra.mxu1 %v6114_v25 }
 0xe74   : > { %5679 = vmatprep.subr.bf16.mxu1 %v6469_v0 }
 0xf2e   : > { %v2691_v63 = vpop.f32.mrf.mxu1 }
 0xf2f   : > { %v2692_v1 = vadd.f32 %v2691_v63, %v2628_v62 }
 0xf30   : > { %v5647_v2 = vpop.f32.mrf.mxu1 }
 0xf31   : > { %v2697_v5 = vadd.f32 %v2692_v1, %v2547_v48 }
 0xf32   : > { %v2694_v6 = vpop.f32.mrf.mxu1 }
 0xf33   : > { %v2698_v7 = vsel %vm530_vm1, %v2697_v5, 0.0 }
 0xf34   : > { %2699 = vadd.xlane.f32.xlu0 %v2698_v7  ;;  %v5648_v9 = vpop.f32.mrf.mxu1 }
 0xfbd   : > { %v2700_v10 = vpop.xlane.xlu0 %2699 }
 0xfbe   : > { %v2701_v11 = vmul.f32 0.03125, %v2700_v10 }
 0xfc0   : > { %v2702_v12 = vsub.f32 %v2697_v5, %v2701_v11 }
 0xfc2   : > { %v2703_v18 = vmul.f32 %v2702_v12, %v2702_v12 }
 0xfc4   : > { %v2704_v21 = vsel %vm530_vm1, %v2703_v18, 0.0 }
 0xfc5   : > { %2705 = vadd.xlane.f32.xlu0 %v2704_v21 }
0x104e   : > { %v2706_v26 = vpop.xlane.xlu0 %2705 }
0x104f   : > { %v2707_v16 = vmul.f32 0.03125, %v2706_v26 }
0x1051   : > { %v2708_v28 = vadd.f32 1e-05, %v2707_v16 }
0x1053   : > { %6187 = vrsqrt.f32 %v2708_v28 }
0x1060   : > { %v6188_v31 = vpop.eup %6187 }
0x1061   : > { %v2710_v32 = vmul.f32 %v6188_v31, %v2702_v12 }
0x1063   : > { %v2715_v34 = vmul.f32 %v2714_v29, %v2710_v32 }
0x1065   : > { %v7163_v13 = vadd.f32 %v5168_v33, %v2715_v34 }
0x1067   : > { %2725 = vst.msk [vmem:[#allocation2] sm:$0xff] %vm530_vm1, %v7163_v13 }
0x106e   : > { %v2726_v35 = vld [vmem:[#allocation2] sm:$0xff] }
0x106f   : > { %v2728_v36 = vpack.c.bf16 %v2727_v30, %v2726_v35 }
0x1071   : > { %5654 = vmatmul.mubr.msk.bf16.vlgmr.msra.gmra.mxu0 %vm530_vm1, %v2728_v36  ;;  %5670 = vmatmul.mubr.msk.bf16.vlgmr.msra.gmra.mxu1 %vm530_vm1, %v2728_v36 }
0x1072   : > { %5658 = vmatpush3.bf16.msra.mxu0 %v6115_v19  ;;  %5661 = vmatprep.mubr.msk.bf16.mxu0 %vm6470_vm0, %v6469_v0 }
0x1073   : > { %5659 = vmatprep.subr.bf16.mxu0 %v6469_v0  ;;  %5681 = vmatprep.mubr.msk.bf16.mxu1 %vm6470_vm0, %v6469_v0 }
0x1076   : > { %5660 = vmatpush3.bf16.msra.mxu0 %v6116_v27 }
0x1077   : > { %5673 = vmatprep.subr.bf16.mxu0 %v6469_v0 }
0x1079   : > { %5662 = vmatmul.mubr.msk.bf16.vlgmr.msra.gmra.mxu0 %vm530_vm1, %v2728_v36 }
0x107a   : > { %5675 = vmatprep.mubr.msk.bf16.mxu0 %vm6470_vm0, %v6469_v0 }
0x1131   : > { %v2787_v37 = vpop.f32.mrf.mxu0  ;;  %v2911_v38 = vpop.f32.mrf.mxu1 }
0x1132   : > { %v2788_v46 = vadd.f32 %v2787_v37, %v2737_v39  ;;  %v7197_v52 = vadd.f32 %v2911_v38, %v2864_v42 }
0x1133   : > { %v5655_v40 = vpop.f32.mrf.mxu0  ;;  %v5671_v44 = vpop.f32.mrf.mxu1 }
0x1134   : > { %v2938_v9 = vpack.c.bf16 %v2788_v46, %v2788_v46 }
0x1135   : > { %v2790_v45 = vpop.f32.mrf.mxu0  ;;  %v2914_v41 = vpop.f32.mrf.mxu1 }
0x1136   : > { %v2791_v48 = vadd.f32 %v2790_v45, %v2737_v39  ;;  %v7193_v50 = vadd.f32 %v2914_v41, %v2864_v42 }
0x1137   : > { %v5656_v54 = vpop.f32.mrf.mxu0  ;;  %v5672_v55 = vpop.f32.mrf.mxu1 }
0x1138   : > { %v6034_v56 = vpack.i.bf16 %v2791_v48, %v2788_v46  ;;  %v7201_v51 = vpack.i.bf16 %v7193_v50, %v7197_v52  ;;  %v2939_v10 = vpack.c.bf16 %v2791_v48, %v2791_v48 }
0x1139   : > { %v2849_v57 = vpop.f32.mrf.mxu0 }
0x113a   : > { %v2850_v58 = vadd.f32 %v2849_v57, %v2802_v53  ;;  %6035 = vrot.lane.b32.xlu0 %v6034_v56, %s6472_s13  ;;  %v2995_v57 = vpack.c.bf16 %v7193_v50, %v7193_v50 }
0x113b   : > { %v5663_v59 = vpop.f32.mrf.mxu0 }
0x113c   : > { %v2966_v60 = vpack.c.bf16 %v2850_v58, %v2850_v58 }
0x113d   : > { %v2852_v62 = vpop.f32.mrf.mxu0 }
0x113e   : > { %v2853_v63 = vadd.f32 %v2852_v62, %v2802_v53  ;;  %v3006_v1 = vsel %vm811_vm2, %v2966_v60, 0  ;;  %v3516_v62 = vsel %vm1279_vm3, %v2995_v57, 0 }
0x113f   : > { %v5664_v2 = vpop.f32.mrf.mxu0  ;;  %5674 = vmatpush3.bf16.xpose.msra.mxu0 %v3006_v1 }
0x1140   : > { %v6049_v5 = vpack.i.bf16 %v2853_v63, %v2850_v58  ;;  %v2967_v6 = vpack.c.bf16 %v2853_v63, %v2853_v63  ;;  %5685 = vmatprep.subr.bf16.mxu0 %v6469_v0 }
0x1142   : > { %6050 = vrot.lane.b32.xlu0 %v6049_v5, %s6473_s23  ;;  %6030 = vrot.lane.b32.xlu1 %v6049_v5, %s6472_s13  ;;  %v3052_v7 = vsel %vm811_vm2, %v2967_v6, 0 }
0x1143   : > { %5680 = vmatpush3.bf16.xpose.msra.mxu1 %v3052_v7 }
0x1144   : > { %5691 = vmatprep.subr.bf16.mxu1 %v6469_v0 }
0x1146   : > { %5676 = vmatmul.mubr.msk.bf16.vlgmr.msra.gmra.mxu0 %vm811_vm2, %v2938_v9  ;;  %6040 = vrot.lane.b32.xlu1 %v6049_v5, %s6471_s7 }
0x1147   : > { %5687 = vmatprep.mubr.msk.bf16.mxu0 %vm6470_vm0, %v6469_v0 }
0x114a   : > { %6045 = vrot.lane.b32.xlu1 %v6034_v56, %s6471_s7  ;;  %5682 = vmatmul.mubr.msk.bf16.vlgmr.msra.gmra.mxu1 %vm811_vm2, %v2939_v10 }
0x114b   : > { %5693 = vmatprep.mubr.msk.bf16.mxu1 %vm6470_vm0, %v6469_v0 }
0x114e   : > { %6055 = vrot.lane.b32.xlu1 %v6034_v56, %s6473_s23  ;;  %v2994_v56 = vpack.c.bf16 %v7197_v52, %v7197_v52 }
0x1150   : > { %v3470_v60 = vsel %vm1279_vm3, %v2994_v56, 0 }
0x11ac   : > { %v6036_v24 = vpop.permute.xlu0 %6035 }
0x11ad   : > { %v6038_v29 = vunpack.i.h.bf16 %v6036_v24  ;;  %v6037_v31 = vunpack.i.l.bf16 %v6036_v24 }
0x11af   : > { %v2941_v30 = vpack.c.bf16 %v6038_v29, %v6038_v29  ;;  %v2940_v35 = vpack.c.bf16 %v6037_v31, %v6037_v31 }
0x11b4   : > { %v6031_v11 = vpop.permute.xlu1 %6030  ;;  %v6051_v34 = vpop.permute.xlu0 %6050 }
0x11b5   : > { %v6033_v12 = vunpack.i.h.bf16 %v6031_v11  ;;  %v6032_v18 = vunpack.i.l.bf16 %v6031_v11  ;;  %v6053_v36 = vunpack.i.h.bf16 %v6051_v34  ;;  %v6052_v27 = vunpack.i.l.bf16 %v6051_v34 }
0x11b7   : > { %v2969_v21 = vpack.c.bf16 %v6033_v12, %v6033_v12  ;;  %v2968_v22 = vpack.c.bf16 %v6032_v18, %v6032_v18  ;;  %v2973_v40 = vpack.c.bf16 %v6053_v36, %v6053_v36  ;;  %v2972_v44 = vpack.c.bf16 %v6052_v27, %v6052_v27 }
0x11b8   : > { %v6041_v17 = vpop.permute.xlu1 %6040 }
0x11b9   : > { %v6043_v25 = vunpack.i.h.bf16 %v6041_v17  ;;  %v6042_v26 = vunpack.i.l.bf16 %v6041_v17  ;;  %v3098_v16 = vsel %vm811_vm2, %v2968_v22, 0  ;;  %v3144_v28 = vsel %vm811_vm2, %v2969_v21, 0 }
0x11ba   : > { %5686 = vmatpush3.bf16.xpose.msra.mxu0 %v3098_v16  ;;  %5692 = vmatpush3.bf16.xpose.msra.mxu1 %v3144_v28  ;;  %v3282_v48 = vsel %vm811_vm2, %v2972_v44, 0  ;;  %v3328_v53 = vsel %vm811_vm2, %v2973_v40, 0 }
0x11bb   : > { %5697 = vmatprep.subr.bf16.mxu0 %v6469_v0  ;;  %5703 = vmatprep.subr.bf16.mxu1 %v6469_v0  ;;  %v2971_v32 = vpack.c.bf16 %v6043_v25, %v6043_v25  ;;  %v2970_v33 = vpack.c.bf16 %v6042_v26, %v6042_v26 }
0x11bc   : > { %v6046_v19 = vpop.permute.xlu1 %6045 }
0x11bd   : > { %v3190_v37 = vsel %vm811_vm2, %v2970_v33, 0  ;;  %v3236_v38 = vsel %vm811_vm2, %v2971_v32, 0  ;;  %v6048_v39 = vunpack.i.h.bf16 %v6046_v19  ;;  %v6047_v42 = vunpack.i.l.bf16 %v6046_v19 }
0x11bf   : > { %v2943_v45 = vpack.c.bf16 %v6048_v39, %v6048_v39  ;;  %v2942_v41 = vpack.c.bf16 %v6047_v42, %v6047_v42 }
0x11c0   : > { %v6056_v46 = vpop.permute.xlu1 %6055 }
0x11c1   : > { %5688 = vmatmul.mubr.msk.bf16.vlgmr.msra.gmra.mxu0 %vm811_vm2, %v2940_v35  ;;  %5694 = vmatmul.mubr.msk.bf16.vlgmr.msra.gmra.mxu1 %vm811_vm2, %v2941_v30  ;;  %v6058_v54 = vunpack.i.h.bf16 %v6056_v46  ;;  %v6057_v55 = vunpack.i.l.bf16 %v6056_v46 }
0x11c2   : > { %5698 = vmatpush3.bf16.xpose.msra.mxu0 %v3190_v37  ;;  %5704 = vmatpush3.bf16.xpose.msra.mxu1 %v3236_v38 }
0x11c3   : > { %5699 = vmatprep.mubr.msk.bf16.mxu0 %vm6470_vm0, %v6469_v0  ;;  %5705 = vmatprep.mubr.msk.bf16.mxu1 %vm6470_vm0, %v6469_v0  ;;  %v2945_v58 = vpack.c.bf16 %v6058_v54, %v6058_v54  ;;  %v2944_v59 = vpack.c.bf16 %v6057_v55, %v6057_v55 }
0x11c4   : > { %5709 = vmatprep.subr.bf16.mxu0 %v6469_v0  ;;  %5715 = vmatprep.subr.bf16.mxu1 %v6469_v0 }
0x11c9   : > { %5700 = vmatmul.mubr.msk.bf16.vlgmr.msra.gmra.mxu0 %vm811_vm2, %v2942_v41  ;;  %5706 = vmatmul.mubr.msk.bf16.vlgmr.msra.gmra.mxu1 %vm811_vm2, %v2943_v45 }
0x11ca   : > { %5710 = vmatpush3.bf16.xpose.msra.mxu0 %v3282_v48  ;;  %5716 = vmatpush3.bf16.xpose.msra.mxu1 %v3328_v53 }
0x11cb   : > { %5711 = vmatprep.mubr.msk.bf16.mxu0 %vm6470_vm0, %v6469_v0  ;;  %5717 = vmatprep.mubr.msk.bf16.mxu1 %vm6470_vm0, %v6469_v0 }
0x11cc   : > { %5721 = vmatprep.subr.bf16.mxu0 %v6469_v0  ;;  %5727 = vmatprep.subr.bf16.mxu1 %v6469_v0 }
0x11d1   : > { %5712 = vmatmul.mubr.msk.bf16.vlgmr.msra.gmra.mxu0 %vm811_vm2, %v2944_v59  ;;  %5718 = vmatmul.mubr.msk.bf16.vlgmr.msra.gmra.mxu1 %vm811_vm2, %v2945_v58 }
0x11d2   : > { %5722 = vmatpush3.bf16.msra.mxu0 %v3470_v60  ;;  %5728 = vmatpush3.bf16.msra.mxu1 %v3516_v62 }
0x11d3   : > { %5729 = vmatprep.mubr.msk.bf16.mxu1 %vm6470_vm0, %v6469_v0  ;;  %5739 = vmatprep.subr.bf16.mxu1 %v6469_v0 }
0x11d4   : > { %5723 = vmatprep.mubr.msk.bf16.mxu0 %vm6470_vm0, %v6469_v0  ;;  %5733 = vmatprep.subr.bf16.mxu0 %v6469_v0 }
0x1206   : > { %v3042_v50 = vpop.f32.mrf.mxu0 }
0x1207   : > { %v3370_v52 = vsel %vm811_vm2, %v3042_v50, -inf }
0x1208   : > { %3371 = vmax.xlane.f32.xlu0 %v3370_v52  ;;  %v5677_v63 = vpop.f32.mrf.mxu0 }
0x120a   : > { %v3045_v1 = vpop.f32.mrf.mxu0  ;;  %v3088_v2 = vpop.f32.mrf.mxu1 }
0x120b   : > { %v3373_v5 = vsel %vm811_vm2, %v3088_v2, -inf }
0x120c   : > { %v5678_v6 = vpop.f32.mrf.mxu0  ;;  %3374 = vmax.xlane.f32.xlu1 %v3373_v5  ;;  %v5683_v7 = vpop.f32.mrf.mxu1 }
0x120e   : > { %v3091_v9 = vpop.f32.mrf.mxu1 }
0x1210   : > { %v5684_v10 = vpop.f32.mrf.mxu1 }
0x1281   : > { %v3134_v11 = vpop.f32.mrf.mxu0  ;;  %v3180_v12 = vpop.f32.mrf.mxu1 }
0x1282   : > { %v3376_v18 = vsel %vm811_vm2, %v3134_v11, -inf  ;;  %v3379_v25 = vsel %vm811_vm2, %v3180_v12, -inf }
0x1283   : > { %3377 = vmax.xlane.f32.xlu0 %v3376_v18  ;;  %v5689_v21 = vpop.f32.mrf.mxu0  ;;  %v5695_v22 = vpop.f32.mrf.mxu1 }
0x1285   : > { %v3137_v24 = vpop.f32.mrf.mxu0  ;;  %v3183_v17 = vpop.f32.mrf.mxu1 }
0x1287   : > { %v5690_v26 = vpop.f32.mrf.mxu0  ;;  %3380 = vmax.xlane.f32.xlu0 %v3379_v25  ;;  %v5696_v16 = vpop.f32.mrf.mxu1 }
0x1289   : > { %v3226_v28 = vpop.f32.mrf.mxu0  ;;  %v3272_v29 = vpop.f32.mrf.mxu1 }
0x128a   : > { %v3382_v31 = vsel %vm811_vm2, %v3226_v28, -inf  ;;  %v3385_v32 = vsel %vm811_vm2, %v3272_v29, -inf }
0x128b   : > { %v5701_v33 = vpop.f32.mrf.mxu0  ;;  %3383 = vmax.xlane.f32.xlu1 %v3382_v31  ;;  %3386 = vmax.xlane.f32.xlu0 %v3385_v32  ;;  %v5707_v34 = vpop.f32.mrf.mxu1 }
0x128d   : > { %v3229_v30 = vpop.f32.mrf.mxu0  ;;  %v3275_v35 = vpop.f32.mrf.mxu1 }
0x128f   : > { %v5702_v19 = vpop.f32.mrf.mxu0  ;;  %v5708_v36 = vpop.f32.mrf.mxu1 }
0x1291   : > { %v3318_v27 = vpop.f32.mrf.mxu0  ;;  %v3364_v37 = vpop.f32.mrf.mxu1 }
0x1292   : > { %v3388_v38 = vsel %vm811_vm2, %v3318_v27, -inf  ;;  %v3391_v42 = vsel %vm811_vm2, %v3364_v37, -inf  ;;  %v3372_v57 = vpop.xlane.xlu0 %3371 }
0x1293   : > { %v5713_v39 = vpop.f32.mrf.mxu0  ;;  %3389 = vmax.xlane.f32.xlu1 %v3388_v38  ;;  %3392 = vmax.xlane.f32.xlu0 %v3391_v42  ;;  %v5719_v40 = vpop.f32.mrf.mxu1  ;;  %v3394_v58 = vsub.f32 %v3042_v50, %v3372_v57 }
0x1295   : > { %v3321_v44 = vpop.f32.mrf.mxu0  ;;  %v3375_v45 = vpop.xlane.xlu1 %3374  ;;  %v3402_v59 = vmul.f32 1.442695, %v3394_v58 }
0x1296   : > { %v3395_v41 = vsub.f32 %v3088_v2, %v3375_v45  ;;  %v3367_v46 = vpop.f32.mrf.mxu1 }
0x1297   : > { %v5714_v48 = vpop.f32.mrf.mxu0 }
0x1298   : > { %v3404_v53 = vmul.f32 1.442695, %v3395_v41  ;;  %v5720_v54 = vpop.f32.mrf.mxu1 }
0x129a   : > { %6189 = vpow2.f32 %v3404_v53 }
0x129b   : > { %6191 = vpow2.f32 %v3402_v59 }
0x12a4   : > { %6060 = vrot.lane.b32.xlu1 %v7201_v51, %s6472_s13 }
0x12a7   : > { %v6190_v55 = vpop.eup %6189 }
0x12a8   : > { %v3421_v56 = vsel %vm811_vm2, %v6190_v55, 0.0  ;;  %v7268_v60 = vpop.eup %6191 }
0x12a9   : > { %3422 = vadd.xlane.f32.xlu0 %v3421_v56  ;;  %v3418_v62 = vsel %vm811_vm2, %v7268_v60, 0.0 }
0x12c8   : > { %3419 = vadd.xlane.f32.xlu1 %v3418_v62 }
0x130c   : > { %v3378_v52 = vpop.xlane.xlu0 %3377 }
0x130d   : > { %v3396_v63 = vsub.f32 %v3134_v11, %v3378_v52 }
0x130f   : > { %v3406_v1 = vmul.f32 1.442695, %v3396_v63 }
0x1310   : > { %v3381_v2 = vpop.xlane.xlu0 %3380 }
0x1311   : > { %6193 = vpow2.f32 %v3406_v1  ;;  %v3397_v5 = vsub.f32 %v3180_v12, %v3381_v2 }
0x1313   : > { %v3408_v6 = vmul.f32 1.442695, %v3397_v5 }
0x1314   : > { %v3384_v7 = vpop.xlane.xlu1 %3383  ;;  %v3387_v9 = vpop.xlane.xlu0 %3386 }
0x1315   : > { %6195 = vpow2.f32 %v3408_v6  ;;  %v3398_v10 = vsub.f32 %v3226_v28, %v3384_v7  ;;  %v3399_v50 = vsub.f32 %v3272_v29, %v3387_v9 }
0x1317   : > { %v3410_v18 = vmul.f32 1.442695, %v3398_v10  ;;  %v3412_v21 = vmul.f32 1.442695, %v3399_v50 }
0x1319   : > { %6197 = vpow2.f32 %v3410_v18 }
0x131a   : > { %6199 = vpow2.f32 %v3412_v21 }
0x131c   : > { %v3390_v22 = vpop.xlane.xlu1 %3389  ;;  %v3393_v17 = vpop.xlane.xlu0 %3392 }
0x131d   : > { %v3400_v24 = vsub.f32 %v3318_v27, %v3390_v22  ;;  %v3401_v26 = vsub.f32 %v3364_v37, %v3393_v17 }
0x131e   : > { %v6194_v25 = vpop.eup %6193 }
0x131f   : > { %v3414_v11 = vmul.f32 1.442695, %v3400_v24  ;;  %v3424_v16 = vsel %vm811_vm2, %v6194_v25, 0.0  ;;  %v3416_v31 = vmul.f32 1.442695, %v3401_v26 }
0x1320   : > { %3425 = vadd.xlane.f32.xlu1 %v3424_v16  ;;  %v6061_v37 = vpop.permute.xlu1 %6060 }
0x1321   : > { %6201 = vpow2.f32 %v3414_v11  ;;  %v6063_v38 = vunpack.i.h.bf16 %v6061_v37  ;;  %v6062_v46 = vunpack.i.l.bf16 %v6061_v37 }
0x1322   : > { %v6196_v12 = vpop.eup %6195  ;;  %6203 = vpow2.f32 %v3416_v31 }
0x1323   : > { %v3427_v28 = vsel %vm811_vm2, %v6196_v12, 0.0  ;;  %v2997_v42 = vpack.c.bf16 %v6063_v38, %v6063_v38  ;;  %v2996_v53 = vpack.c.bf16 %v6062_v46, %v6062_v46 }
0x1324   : > { %3428 = vadd.xlane.f32.xlu0 %v3427_v28 }
0x1325   : > { %v3608_v45 = vsel %vm1279_vm3, %v2997_v42, 0  ;;  %v3562_v56 = vsel %vm1279_vm3, %v2996_v53, 0 }
0x1326   : > { %v7274_v29 = vpop.eup %6197 }
0x1327   : > { %v7276_v32 = vpop.eup %6199  ;;  %v3430_v33 = vsel %vm811_vm2, %v7274_v29, 0.0 }
0x1328   : > { %3431 = vadd.xlane.f32.xlu1 %v3430_v33  ;;  %v3433_v34 = vsel %vm811_vm2, %v7276_v32, 0.0 }
0x1329   : > { %3434 = vadd.xlane.f32.xlu0 %v3433_v34 }
0x132e   : > { %v7282_v30 = vpop.eup %6201 }
0x132f   : > { %v7284_v35 = vpop.eup %6203  ;;  %v3436_v19 = vsel %vm811_vm2, %v7282_v30, 0.0 }
0x1330   : > { %3437 = vadd.xlane.f32.xlu1 %v3436_v19  ;;  %v3439_v36 = vsel %vm811_vm2, %v7284_v35, 0.0 }
0x1331   : > { %3440 = vadd.xlane.f32.xlu0 %v3439_v36 }
0x1332   : > { %v3423_v27 = vpop.xlane.xlu0 %3422 }
0x1333   : > { %6205 = vrcp.f32 %v3423_v27 }
0x1340   : > { %v6206_v39 = vpop.eup %6205 }
0x1341   : > { %6070 = vrot.lane.b32.xlu1 %v7201_v51, %s6473_s23  ;;  %v3451_v40 = vmul.f32 %v6206_v39, %v6190_v55 }
0x1343   : > { %v3459_v44 = vpack.c.bf16 %v3451_v40, %v3451_v40 }
0x1345   : > { %5730 = vmatmul.mubr.msk.bf16.vlgmr.msra.gmra.mxu1 %vm811_vm2, %v3459_v44 }
0x1346   : > { %5740 = vmatpush3.bf16.msra.mxu1 %v3608_v45  ;;  %5741 = vmatprep.mubr.msk.bf16.mxu1 %vm6470_vm0, %v6469_v0 }
0x1347   : > { %6065 = vrot.lane.b32.xlu0 %v7201_v51, %s6471_s7  ;;  %5751 = vmatprep.subr.bf16.mxu1 %v6469_v0 }
0x1351   : > { %v3420_v41 = vpop.xlane.xlu1 %3419 }
0x1352   : > { %6207 = vrcp.f32 %v3420_v41 }
0x135f   : > { %v6208_v48 = vpop.eup %6207 }
0x1360   : > { %v3450_v54 = vmul.f32 %v6208_v48, %v7268_v60 }
0x1362   : > { %v3458_v55 = vpack.c.bf16 %v3450_v54, %v3450_v54 }
0x1364   : > { %5724 = vmatmul.mubr.msk.bf16.vlgmr.msra.gmra.mxu0 %vm811_vm2, %v3458_v55 }
0x1365   : > { %5734 = vmatpush3.bf16.msra.mxu0 %v3562_v56  ;;  %5735 = vmatprep.mubr.msk.bf16.mxu0 %vm6470_vm0, %v6469_v0  ;;  %v6117_v56 = vld [vmem:[%s7569_s5 + $0x18] sm:$0xff]  }
0x1366   : > { %5745 = vmatprep.subr.bf16.mxu0 %v6469_v0 }
0x13a9   : > { %v3426_v51 = vpop.xlane.xlu1 %3425 }
0x13aa   : > { %6209 = vrcp.f32 %v3426_v51 }
0x13ad   : > { %v3429_v57 = vpop.xlane.xlu0 %3428 }
0x13ae   : > { %6211 = vrcp.f32 %v3429_v57 }
0x13b1   : > { %v3432_v58 = vpop.xlane.xlu1 %3431 }
0x13b2   : > { %6213 = vrcp.f32 %v3432_v58  ;;  %v3435_v59 = vpop.xlane.xlu0 %3434 }
0x13b3   : > { %6215 = vrcp.f32 %v3435_v59 }
0x13b7   : > { %v6210_v60 = vpop.eup %6209 }
0x13b8   : > { %v3452_v62 = vmul.f32 %v6210_v60, %v6194_v25 }
0x13b9   : > { %v3438_v52 = vpop.xlane.xlu1 %3437 }
0x13ba   : > { %6217 = vrcp.f32 %v3438_v52  ;;  %v3441_v63 = vpop.xlane.xlu0 %3440  ;;  %v3460_v1 = vpack.c.bf16 %v3452_v62, %v3452_v62 }
0x13bb   : > { %v6212_v2 = vpop.eup %6211  ;;  %6219 = vrcp.f32 %v3441_v63  ;;  %v6118_v63 = vld [vmem:[%s7569_s5 + $0x10] sm:$0xff]  }
0x13bc   : > { %5736 = vmatmul.mubr.msk.bf16.vlgmr.msra.gmra.mxu0 %vm811_vm2, %v3460_v1  ;;  %v3453_v5 = vmul.f32 %v6212_v2, %v6196_v12 }
0x13bd   : > { %v6071_v6 = vpop.permute.xlu1 %6070  ;;  %5747 = vmatprep.mubr.msk.bf16.mxu0 %vm6470_vm0, %v6469_v0 }
0x13be   : > { %v6066_v7 = vpop.permute.xlu0 %6065  ;;  %v3461_v9 = vpack.c.bf16 %v3453_v5, %v3453_v5  ;;  %v6072_v50 = vunpack.i.l.bf16 %v6071_v6  ;;  %v6073_v24 = vunpack.i.h.bf16 %v6071_v6 }
0x13bf   : > { %v6214_v10 = vpop.eup %6213  ;;  %v6068_v18 = vunpack.i.h.bf16 %v6066_v7  ;;  %v6067_v21 = vunpack.i.l.bf16 %v6066_v7 }
0x13c0   : > { %v6216_v22 = vpop.eup %6215  ;;  %5742 = vmatmul.mubr.msk.bf16.vlgmr.msra.gmra.mxu1 %vm811_vm2, %v3461_v9  ;;  %v3454_v26 = vmul.f32 %v6214_v10, %v7274_v29  ;;  %v3000_v16 = vpack.c.bf16 %v6072_v50, %v6072_v50  ;;  %v3001_v28 = vpack.c.bf16 %v6073_v24, %v6073_v24 }
0x13c1   : > { %v2999_v17 = vpack.c.bf16 %v6068_v18, %v6068_v18  ;;  %v2998_v25 = vpack.c.bf16 %v6067_v21, %v6067_v21  ;;  %5753 = vmatprep.mubr.msk.bf16.mxu1 %vm6470_vm0, %v6469_v0  ;;  %v3455_v11 = vmul.f32 %v6216_v22, %v7276_v32 }
0x13c2   : > { %v3462_v33 = vpack.c.bf16 %v3454_v26, %v3454_v26  ;;  %v3746_v19 = vsel %vm1279_vm3, %v3000_v16, 0  ;;  %v3792_v36 = vsel %vm1279_vm3, %v3001_v28, 0 }
0x13c3   : > { %v3654_v31 = vsel %vm1279_vm3, %v2998_v25, 0  ;;  %v3700_v12 = vsel %vm1279_vm3, %v2999_v17, 0  ;;  %v3463_v34 = vpack.c.bf16 %v3455_v11, %v3455_v11 }
0x13c4   : > { %5746 = vmatpush3.bf16.msra.mxu0 %v3654_v31  ;;  %5752 = vmatpush3.bf16.msra.mxu1 %v3700_v12 }
0x13c5   : > { %5757 = vmatprep.subr.bf16.mxu0 %v6469_v0  ;;  %5763 = vmatprep.subr.bf16.mxu1 %v6469_v0 }
0x13c7   : > { %v6218_v29 = vpop.eup %6217  ;;  %5748 = vmatmul.mubr.msk.bf16.vlgmr.msra.gmra.mxu0 %vm811_vm2, %v3462_v33 }
0x13c8   : > { %v6220_v32 = vpop.eup %6219  ;;  %5758 = vmatpush3.bf16.msra.mxu0 %v3746_v19  ;;  %5754 = vmatmul.mubr.msk.bf16.vlgmr.msra.gmra.mxu1 %vm811_vm2, %v3463_v34  ;;  %v3456_v27 = vmul.f32 %v6218_v29, %v7282_v30 }
0x13c9   : > { %5764 = vmatpush3.bf16.msra.mxu1 %v3792_v36  ;;  %5759 = vmatprep.mubr.msk.bf16.mxu0 %vm6470_vm0, %v6469_v0  ;;  %v3457_v37 = vmul.f32 %v6220_v32, %v7284_v35 }
0x13ca   : > { %5765 = vmatprep.mubr.msk.bf16.mxu1 %vm6470_vm0, %v6469_v0  ;;  %5769 = vmatprep.subr.bf16.mxu0 %v6469_v0  ;;  %v3464_v38 = vpack.c.bf16 %v3456_v27, %v3456_v27 }
0x13cb   : > { %5777 = vmatprep.subr.bf16.mxu1 %v6469_v0  ;;  %v3465_v39 = vpack.c.bf16 %v3457_v37, %v3457_v37 }
0x13cf   : > { %5760 = vmatmul.mubr.msk.bf16.vlgmr.msra.gmra.mxu0 %vm811_vm2, %v3464_v38 }
0x13d0   : > { %5766 = vmatmul.mubr.msk.bf16.vlgmr.msra.gmra.mxu1 %vm811_vm2, %v3465_v39  ;;  %5773 = vmatprep.mubr.msk.bf16.mxu0 %vm6470_vm0, %v6469_v0 }
0x13d1   : > { %5781 = vmatprep.mubr.msk.bf16.mxu1 %vm6470_vm0, %v6469_v0  ;;  %5770 = vmatpush3.bf16.msra.mxu0 %v6117_v56 }
0x13d2   : > { %5771 = vmatprep.subr.bf16.mxu0 %v6469_v0 }
0x13d5   : > { %5772 = vmatpush3.bf16.msra.mxu0 %v6118_v63 }
0x13d6   : > { %5785 = vmatprep.subr.bf16.mxu0 %v6469_v0 }
0x1405   : > { %v3552_v30 = vpop.f32.mrf.mxu1 }
0x1407   : > { %v5731_v42 = vpop.f32.mrf.mxu1 }
0x1409   : > { %v3555_v40 = vpop.f32.mrf.mxu1 }
0x140b   : > { %v5732_v35 = vpop.f32.mrf.mxu1 }
0x1424   : > { %v3506_v44 = vpop.f32.mrf.mxu0 }
0x1426   : > { %v5725_v45 = vpop.f32.mrf.mxu0 }
0x1428   : > { %v3509_v41 = vpop.f32.mrf.mxu0 }
0x142a   : > { %v5726_v46 = vpop.f32.mrf.mxu0 }
0x147c   : > { %v3598_v48 = vpop.f32.mrf.mxu0 }
0x147e   : > { %v5737_v53 = vpop.f32.mrf.mxu0 }
0x1480   : > { %v3601_v54 = vpop.f32.mrf.mxu0  ;;  %v3644_v55 = vpop.f32.mrf.mxu1 }
0x1481   : > { %v6074_v51 = vpack.i.bf16 %v3644_v55, %v3598_v48 }
0x1482   : > { %v5738_v57 = vpop.f32.mrf.mxu0  ;;  %v5743_v58 = vpop.f32.mrf.mxu1 }
0x1483   : > { %6075 = vrot.lane.b32.xlu1 %v6074_v51, %s6474_s14 }
0x1484   : > { %v3647_v59 = vpop.f32.mrf.mxu1 }
0x1486   : > { %v5744_v60 = vpop.f32.mrf.mxu1 }
0x1487   : > { %v3690_v62 = vpop.f32.mrf.mxu0 }
0x1488   : > { %v3736_v52 = vpop.f32.mrf.mxu1 }
0x1489   : > { %v5749_v1 = vpop.f32.mrf.mxu0  ;;  %v6079_v2 = vpack.i.bf16 %v3736_v52, %v3690_v62 }
0x148a   : > { %v5755_v5 = vpop.f32.mrf.mxu1 }
0x148b   : > { %v3693_v6 = vpop.f32.mrf.mxu0  ;;  %6080 = vrot.lane.b32.xlu0 %v6079_v2, %s6475_s16  ;;  %v6119_v2 = vld [vmem:[#allocation8 + $0x48] sm:$0xff]   ;;  %v6120_v5 = vld [vmem:[#allocation8 + $0x38] sm:$0xff]  }
0x148c   : > { %v3739_v7 = vpop.f32.mrf.mxu1  ;;  %5778 = vmatpush3.bf16.msra.mxu1 %v6120_v5  ;;  %v6122_v6 = vld [vmem:[#allocation8 + $0x30] sm:$0xff]  }
0x148d   : > { %v5750_v9 = vpop.f32.mrf.mxu0  ;;  %5779 = vmatprep.subr.bf16.mxu1 %v6469_v0 }
0x148e   : > { %v5756_v10 = vpop.f32.mrf.mxu1 }
0x148f   : > { %v3782_v50 = vpop.f32.mrf.mxu0 }
0x1490   : > { %v3828_v18 = vpop.f32.mrf.mxu1  ;;  %5780 = vmatpush3.bf16.msra.mxu1 %v6122_v6 }
0x1491   : > { %v5761_v21 = vpop.f32.mrf.mxu0  ;;  %v6084_v22 = vpack.i.bf16 %v3828_v18, %v3782_v50  ;;  %5793 = vmatprep.subr.bf16.mxu1 %v6469_v0 }
0x1492   : > { %v5767_v24 = vpop.f32.mrf.mxu1 }
0x1493   : > { %v3785_v17 = vpop.f32.mrf.mxu0  ;;  %6085 = vrot.lane.b32.xlu1 %v6084_v22, %s6476_s4  ;;  %v7370_v22 = vld [vmem:[%s7574_s10 + $0x20] sm:$0xff] }
0x1494   : > { %v3831_v25 = vpop.f32.mrf.mxu1  ;;  %v3971_v24 = vrot.slane %v7370_v22, %v6963_v49 }
0x1495   : > { %v5762_v26 = vpop.f32.mrf.mxu0 }
0x1496   : > { %v5768_v11 = vpop.f32.mrf.mxu1  ;;  %v3976_v26 = vrot.slane %v7370_v22, %v6983_v14 }
0x14f5   : > { %v6076_v16 = vpop.permute.xlu1 %6075 }
0x14f6   : > { %v6078_v12 = vunpack.i.h.bf16 %v6076_v16  ;;  %v6077_v28 = vunpack.i.l.bf16 %v6076_v16  ;;  %v3947_v16 = vrot.slane %v7370_v22, %v6783_v15 }
0x14f8   : > { %v3859_v19 = vsel %vm811_vm2, %v3552_v30, %v6078_v12  ;;  %v3858_v32 = vsel %vm811_vm2, %v3506_v44, %v6077_v28  ;;  %v3873_v30 = vrot.slane %v7187_v43, %v6963_v49 }
0x14fd   : > { %v6081_v31 = vpop.permute.xlu0 %6080 }
0x14fe   : > { %v6083_v33 = vunpack.i.h.bf16 %v6081_v31  ;;  %v6082_v34 = vunpack.i.l.bf16 %v6081_v31 }
0x1500   : > { %v3861_v37 = vsel %vm1671_vm4, %v3859_v19, %v6083_v33  ;;  %v3860_v38 = vsel %vm1671_vm4, %v3858_v32, %v6082_v34  ;;  %v3952_v33 = vrot.slane %v7370_v22, %v6818_v61  ;;  %v6248_v34 = vld [vmem:[%s460_s17] sm:$0xff] }
0x1501   : > { %v6124_v61 = vld [vmem:[#allocation8 + $0x50] sm:$0xff]  }
0x1505   : > { %v6086_v29 = vpop.permute.xlu1 %6085 }
0x1506   : > { %v6088_v36 = vunpack.i.h.bf16 %v6086_v29  ;;  %v6087_v27 = vunpack.i.l.bf16 %v6086_v29 }
0x1508   : > { %v3863_v39 = vsel %vm1674_vm5, %v3861_v37, %v6088_v36  ;;  %v3862_v42 = vsel %vm1674_vm5, %v3860_v38, %v6087_v27  ;;  %v6123_v27 = vld [vmem:[#allocation8 + $0x58] sm:$0xff]  }
0x1509   : > { %v3864_v40 = vpack.c.bf16 %v3863_v39, %v3862_v42  ;;  %v3989_v42 = vrot.slane %v7187_v43, %v6983_v14 }
0x150b   : > { %5774 = vmatmul.mubr.msk.bf16.vlgmr.msra.gmra.mxu0 %vm530_vm1, %v3864_v40 }
0x150c   : > { %5789 = vmatprep.mubr.msk.bf16.mxu0 %vm6470_vm0, %v6469_v0  ;;  %5786 = vmatpush3.bf16.msra.mxu0 %v6119_v2 }
0x150d   : > { %5787 = vmatprep.subr.bf16.mxu0 %v6469_v0 }
0x15cb   : > { %v3923_v35 = vpop.f32.mrf.mxu0 }
0x15cc   : > { %v3924_v44 = vadd.f32 %v3923_v35, %v3873_v30 }
0x15cd   : > { %v5775_v45 = vpop.f32.mrf.mxu0 }
0x15ce   : > { %v3930_v41 = vadd.f32 %v3924_v44, %v7163_v13 }
0x15cf   : > { %v3926_v46 = vpop.f32.mrf.mxu0 }
0x15d0   : > { %v3927_v48 = vadd.f32 %v3926_v46, %v3873_v30  ;;  %v3931_v53 = vsel %vm530_vm1, %v3930_v41, 0.0 }
0x15d1   : > { %3932 = vadd.xlane.f32.xlu1 %v3931_v53  ;;  %v5776_v54 = vpop.f32.mrf.mxu0 }
0x15d2   : > { %v3954_v55 = vadd.f32 %v3927_v48, %v6747_v4  ;;  %v6121_v4 = vld [vmem:[#allocation8 + $0x40] sm:$0xff]  }
0x15d3   : > { %5788 = vmatpush3.bf16.msra.mxu0 %v6121_v4 }
0x15d4   : > { %v3955_v56 = vsel %vm530_vm1, %v3954_v55, 0.0  ;;  %5801 = vmatprep.subr.bf16.mxu0 %v6469_v0 }
0x15d5   : > { %3956 = vadd.xlane.f32.xlu0 %v3955_v56 }
0x165a   : > { %v3933_v51 = vpop.xlane.xlu1 %3932 }
0x165b   : > { %v3934_v57 = vmul.f32 0.03125, %v3933_v51 }
0x165d   : > { %v3935_v60 = vsub.f32 %v3930_v41, %v3934_v57 }
0x165e   : > { %v3957_v58 = vpop.xlane.xlu0 %3956 }
0x165f   : > { %v3958_v59 = vmul.f32 0.03125, %v3957_v58  ;;  %v3936_v63 = vmul.f32 %v3935_v60, %v3935_v60  ;;  %v4119_v58 = vrot.slane %v7187_v43, %v7029_v8 }
0x1661   : > { %v3959_v62 = vsub.f32 %v3954_v55, %v3958_v59  ;;  %v3937_v1 = vsel %vm530_vm1, %v3936_v63, 0.0 }
0x1663   : > { %v3960_v52 = vmul.f32 %v3959_v62, %v3959_v62 }
0x1665   : > { %v3961_v13 = vsel %vm530_vm1, %v3960_v52, 0.0 }
0x1666   : > { %3962 = vadd.xlane.f32.xlu0 %v3961_v13 }
0x166a   : > { %3938 = vadd.xlane.f32.xlu0 %v3937_v1 }
0x16ef   : > { %v3963_v7 = vpop.xlane.xlu0 %3962 }
0x16f0   : > { %v3964_v9 = vmul.f32 0.03125, %v3963_v7 }
0x16f2   : > { %v3965_v10 = vadd.f32 1e-05, %v3964_v9 }
0x16f3   : > { %v3939_v50 = vpop.xlane.xlu0 %3938 }
0x16f4   : > { %6221 = vrsqrt.f32 %v3965_v10  ;;  %v3940_v18 = vmul.f32 0.03125, %v3939_v50 }
0x16f6   : > { %v3941_v21 = vadd.f32 1e-05, %v3940_v18 }
0x16f8   : > { %6223 = vrsqrt.f32 %v3941_v21 }
0x1701   : > { %v6222_v17 = vpop.eup %6221 }
0x1702   : > { %v3967_v25 = vmul.f32 %v6222_v17, %v3959_v62 }
0x1704   : > { %v3972_v11 = vmul.f32 %v3971_v24, %v3967_v25 }
0x1705   : > { %v6224_v31 = vpop.eup %6223 }
0x1706   : > { %v3943_v12 = vmul.f32 %v6224_v31, %v3935_v60  ;;  %v3977_v28 = vadd.f32 %v3976_v26, %v3972_v11 }
0x1708   : > { %v3979_v29 = vadd.f32 %v6248_v34, %v3977_v28  ;;  %v3948_v19 = vmul.f32 %v3947_v16, %v3943_v12  ;;  %v4110_v37 = vpack.c.bf16 %v3977_v28, %v3977_v28 }
0x170a   : > { %v4045_v49 = vpack.c.bf16 %v3979_v29, %v3979_v29  ;;  %v7382_v32 = vadd.f32 %v3952_v33, %v3948_v19 }
0x170c   : > { %5790 = vmatmul.mubr.msk.bf16.vlgmr.msra.gmra.mxu0 %vm530_vm1, %v4045_v49  ;;  %v3978_v36 = vadd.f32 %v7382_v32, %v6745_v3  ;;  %v4054_v3 = vrot.slane %v7187_v43, %v7011_v47 }
0x170d   : > { %5803 = vmatprep.mubr.msk.bf16.mxu0 %vm6470_vm0, %v6469_v0 }
0x170e   : > { %v3980_v15 = vpack.c.bf16 %v3978_v36, %v3978_v36 }
0x1710   : > { %5782 = vmatmul.mubr.msk.bf16.vlgmr.msra.gmra.mxu1 %vm530_vm1, %v3980_v15 }
0x1711   : > { %5794 = vmatpush3.bf16.msra.mxu1 %v6123_v27  ;;  %5797 = vmatprep.mubr.msk.bf16.mxu1 %vm6470_vm0, %v6469_v0 }
0x1712   : > { %5795 = vmatprep.subr.bf16.mxu1 %v6469_v0 }
0x1715   : > { %5796 = vmatpush3.bf16.msra.mxu1 %v6124_v61 }
0x1716   : > { %5807 = vmatprep.subr.bf16.mxu1 %v6469_v0 }
0x1718   : > { %5798 = vmatmul.mubr.msk.bf16.vlgmr.msra.gmra.mxu1 %vm530_vm1, %v4110_v37 }
0x1719   : > { %5809 = vmatprep.mubr.msk.bf16.mxu1 %vm6470_vm0, %v6469_v0 }
0x17cc   : > { %v4104_v38 = vpop.f32.mrf.mxu0 }
0x17cd   : > { %v4105_v39 = vadd.f32 %v4104_v38, %v4054_v3 }
0x17ce   : > { %v5791_v40 = vpop.f32.mrf.mxu0 }
0x17cf   : > { %4193 = vrot.lane.b32.xlu0 %v4105_v39, %s6471_s7  ;;  %4190 = vrot.lane.b32.xlu1 %v4105_v39, %s6472_s13  ;;  %v4199_v30 = vpack.c.bf16 %v4105_v39, %v4105_v39 }
0x17d0   : > { %v4039_v35 = vpop.f32.mrf.mxu1  ;;  %v4107_v44 = vpop.f32.mrf.mxu0 }
0x17d1   : > { %v4040_v45 = vadd.f32 %v4039_v35, %v3989_v42  ;;  %v4221_v41 = vsel %vm811_vm2, %v4199_v30, 0 }
0x17d2   : > { %v5783_v46 = vpop.f32.mrf.mxu1  ;;  %v5792_v48 = vpop.f32.mrf.mxu0  ;;  %5802 = vmatpush3.bf16.xpose.msra.mxu0 %v4221_v41 }
0x17d3   : > { %4179 = vrot.lane.b32.xlu0 %v4040_v45, %s6471_s7  ;;  %4176 = vrot.lane.b32.xlu1 %v4040_v45, %s6472_s13  ;;  %v4185_v54 = vpack.c.bf16 %v4040_v45, %v4040_v45 }
0x17d4   : > { %v4042_v53 = vpop.f32.mrf.mxu1  ;;  %5813 = vmatprep.subr.bf16.mxu0 %v6469_v0 }
0x17d6   : > { %v5784_v14 = vpop.f32.mrf.mxu1 }
0x17d7   : > { %4196 = vrot.lane.b32.xlu1 %v4105_v39, %s6473_s23 }
0x17d8   : > { %v4169_v55 = vpop.f32.mrf.mxu1 }
0x17d9   : > { %5804 = vmatmul.mubr.msk.bf16.vlgmr.msra.gmra.mxu0 %vm811_vm2, %v4185_v54  ;;  %v7414_v13 = vadd.f32 %v4169_v55, %v4119_v58 }
0x17da   : > { %v5799_v56 = vpop.f32.mrf.mxu1  ;;  %5815 = vmatprep.mubr.msk.bf16.mxu0 %vm6470_vm0, %v6469_v0 }
0x17db   : > { %4182 = vrot.lane.b32.xlu1 %v4040_v45, %s6473_s23  ;;  %v4213_v43 = vpack.c.bf16 %v7414_v13, %v7414_v13 }
0x17dc   : > { %v4172_v51 = vpop.f32.mrf.mxu1 }
0x17dd   : > { %v4453_v50 = vsel %vm1279_vm3, %v4213_v43, 0 }
0x17de   : > { %v5800_v57 = vpop.f32.mrf.mxu1 }
0x1841   : > { %v4194_v59 = vpop.permute.xlu0 %4193  ;;  %v4191_v60 = vpop.permute.xlu1 %4190 }
0x1842   : > { %v4201_v62 = vpack.c.bf16 %v4194_v59, %v4194_v59  ;;  %v4200_v52 = vpack.c.bf16 %v4191_v60, %v4191_v60 }
0x1844   : > { %v4313_v63 = vsel %vm811_vm2, %v4201_v62, 0  ;;  %v4267_v1 = vsel %vm811_vm2, %v4200_v52, 0 }
0x1845   : > { %5808 = vmatpush3.bf16.xpose.msra.mxu1 %v4267_v1  ;;  %v4177_v2 = vpop.permute.xlu1 %4176  ;;  %5814 = vmatpush3.bf16.xpose.msra.mxu0 %v4313_v63  ;;  %v4180_v5 = vpop.permute.xlu0 %4179 }
0x1846   : > { %5819 = vmatprep.subr.bf16.mxu1 %v6469_v0  ;;  %5825 = vmatprep.subr.bf16.mxu0 %v6469_v0  ;;  %v4187_v6 = vpack.c.bf16 %v4180_v5, %v4180_v5  ;;  %v4186_v7 = vpack.c.bf16 %v4177_v2, %v4177_v2 }
0x1849   : > { %v4197_v4 = vpop.permute.xlu1 %4196 }
0x184a   : > { %v4202_v9 = vpack.c.bf16 %v4197_v4, %v4197_v4 }
0x184c   : > { %v4359_v10 = vsel %vm811_vm2, %v4202_v9, 0  ;;  %5810 = vmatmul.mubr.msk.bf16.vlgmr.msra.gmra.mxu1 %vm811_vm2, %v4186_v7  ;;  %5816 = vmatmul.mubr.msk.bf16.vlgmr.msra.gmra.mxu0 %vm811_vm2, %v4187_v6 }
0x184d   : > { %5820 = vmatpush3.bf16.xpose.msra.mxu1 %v4359_v10  ;;  %5826 = vmatpush3.bf16.msra.mxu0 %v4453_v50  ;;  %v4183_v18 = vpop.permute.xlu1 %4182 }
0x184e   : > { %5821 = vmatprep.mubr.msk.bf16.mxu1 %vm6470_vm0, %v6469_v0  ;;  %5831 = vmatprep.subr.bf16.mxu1 %v6469_v0  ;;  %v4188_v21 = vpack.c.bf16 %v4183_v18, %v4183_v18 }
0x184f   : > { %5827 = vmatprep.mubr.msk.bf16.mxu0 %vm6470_vm0, %v6469_v0  ;;  %5837 = vmatprep.subr.bf16.mxu0 %v6469_v0 }
0x1854   : > { %5822 = vmatmul.mubr.msk.bf16.vlgmr.msra.gmra.mxu1 %vm811_vm2, %v4188_v21 }
0x1855   : > { %5833 = vmatprep.mubr.msk.bf16.mxu1 %vm6470_vm0, %v6469_v0 }
0x1899   : > { %v4257_v24 = vpop.f32.mrf.mxu0 }
0x189a   : > { %v4401_v17 = vsel %vm811_vm2, %v4257_v24, -inf }
0x189b   : > { %4402 = vmax.xlane.f32.xlu0 %v4401_v17  ;;  %v5805_v25 = vpop.f32.mrf.mxu0 }
0x189d   : > { %v4260_v26 = vpop.f32.mrf.mxu0 }
0x189f   : > { %v5806_v11 = vpop.f32.mrf.mxu0 }
0x190c   : > { %v4303_v16 = vpop.f32.mrf.mxu1  ;;  %v4349_v31 = vpop.f32.mrf.mxu0 }
0x190d   : > { %v4407_v12 = vsel %vm811_vm2, %v4349_v31, -inf  ;;  %v4404_v28 = vsel %vm811_vm2, %v4303_v16, -inf }
0x190e   : > { %4408 = vmax.xlane.f32.xlu0 %v4407_v12  ;;  %v5817_v33 = vpop.f32.mrf.mxu0  ;;  %4405 = vmax.xlane.f32.xlu1 %v4404_v28  ;;  %v5811_v34 = vpop.f32.mrf.mxu1 }
0x1910   : > { %v4306_v29 = vpop.f32.mrf.mxu1  ;;  %v4352_v19 = vpop.f32.mrf.mxu0 }
0x1911   : > { %v6125_v19 = vld [vmem:[#allocation9 + $0x18] sm:$0xff]  }
0x1912   : > { %v5812_v49 = vpop.f32.mrf.mxu1  ;;  %v5818_v36 = vpop.f32.mrf.mxu0 }
0x1913   : > { %v6126_v49 = vld [vmem:[#allocation9 + $0x10] sm:$0xff]  }
0x1914   : > { %v4395_v27 = vpop.f32.mrf.mxu1 }
0x1915   : > { %v4410_v15 = vsel %vm811_vm2, %v4395_v27, -inf }
0x1916   : > { %4411 = vmax.xlane.f32.xlu0 %v4410_v15  ;;  %v5823_v61 = vpop.f32.mrf.mxu1 }
0x1918   : > { %v4398_v37 = vpop.f32.mrf.mxu1 }
0x191a   : > { %v5824_v3 = vpop.f32.mrf.mxu1 }
0x191f   : > { %4204 = vrot.lane.b32.xlu1 %v7414_v13, %s6472_s13  ;;  %s5258_s13 = sshll.u32 %s6564_s25, 7  ;;  %s6390_s25 = scalar_lea.vmem %s6389_s18, 256 }
0x1920   : > { %s4950_s27 = scalar_lea.hbm %s7612_s29, %s5258_s13 }
0x1924   : > { %v4403_v38 = vpop.xlane.xlu0 %4402 }
0x1925   : > { %v4413_v39 = vsub.f32 %v4257_v24, %v4403_v38 }
0x1927   : > { %v4417_v42 = vmul.f32 1.442695, %v4413_v39 }
0x1929   : > { %6225 = vpow2.f32 %v4417_v42 }
0x1936   : > { %v6226_v40 = vpop.eup %6225 }
0x1937   : > { %v4425_v30 = vsel %vm811_vm2, %v6226_v40, 0.0 }
0x1943   : > { %4426 = vadd.xlane.f32.xlu1 %v4425_v30 }
0x1997   : > { %v4409_v35 = vpop.xlane.xlu0 %4408  ;;  %v4406_v44 = vpop.xlane.xlu1 %4405 }
0x1998   : > { %v4415_v45 = vsub.f32 %v4349_v31, %v4409_v35  ;;  %v4414_v41 = vsub.f32 %v4303_v16, %v4406_v44 }
0x199a   : > { %v4421_v46 = vmul.f32 1.442695, %v4415_v45  ;;  %v4419_v48 = vmul.f32 1.442695, %v4414_v41 }
0x199b   : > { %v4205_v53 = vpop.permute.xlu1 %4204 }
0x199c   : > { %6227 = vpow2.f32 %v4421_v46  ;;  %v4214_v14 = vpack.c.bf16 %v4205_v53, %v4205_v53 }
0x199d   : > { %6229 = vpow2.f32 %v4419_v48 }
0x199e   : > { %v4499_v54 = vsel %vm1279_vm3, %v4214_v14, 0 }
0x199f   : > { %5832 = vmatpush3.bf16.msra.mxu1 %v4499_v54  ;;  %v4412_v55 = vpop.xlane.xlu0 %4411  ;;  %v6249_v54 = vld [vmem:[%s7574_s10 + $0x18] sm:$0xff] }
0x19a0   : > { %v4416_v56 = vsub.f32 %v4395_v27, %v4412_v55  ;;  %5843 = vmatprep.subr.bf16.mxu1 %v6469_v0  ;;  %v4657_v55 = vrot.slane %v6249_v54, %v7098_v23 }
0x19a2   : > { %v4423_v51 = vmul.f32 1.442695, %v4416_v56 }
0x19a4   : > { %6231 = vpow2.f32 %v4423_v51 }
0x19a9   : > { %v6228_v57 = vpop.eup %6227 }
0x19aa   : > { %v6230_v58 = vpop.eup %6229  ;;  %v4431_v59 = vsel %vm811_vm2, %v6228_v57, 0.0 }
0x19ab   : > { %4432 = vadd.xlane.f32.xlu1 %v4431_v59  ;;  %v4428_v60 = vsel %vm811_vm2, %v6230_v58, 0.0 }
0x19ac   : > { %4429 = vadd.xlane.f32.xlu0 %v4428_v60 }
0x19b1   : > { %v6232_v62 = vpop.eup %6231 }
0x19b2   : > { %v4434_v52 = vsel %vm811_vm2, %v6232_v62, 0.0 }
0x19b3   : > { %4435 = vadd.xlane.f32.xlu0 %v4434_v52 }
0x19bc   : > { %4210 = vrot.lane.b32.xlu1 %v7414_v13, %s6473_s23  ;;  %s521_s23 = scalar_lea.vmem [#allocation12], %s6706_s21 }
0x19c9   : > { %4207 = vrot.lane.b32.xlu0 %v7414_v13, %s6471_s7 }
0x19cc   : > { %v4427_v63 = vpop.xlane.xlu1 %4426 }
0x19cd   : > { %6233 = vrcp.f32 %v4427_v63 }
0x19da   : > { %v6234_v1 = vpop.eup %6233 }
0x19db   : > { %v4441_v2 = vmul.f32 %v6234_v1, %v6226_v40 }
0x19dd   : > { %v4445_v5 = vpack.c.bf16 %v4441_v2, %v4441_v2 }
0x19df   : > { %5828 = vmatmul.mubr.msk.bf16.vlgmr.msra.gmra.mxu0 %vm811_vm2, %v4445_v5 }
0x19e0   : > { %5839 = vmatprep.mubr.msk.bf16.mxu0 %vm6470_vm0, %v6469_v0 }
0x1a34   : > { %v4433_v43 = vpop.xlane.xlu1 %4432 }
0x1a35   : > { %6235 = vrcp.f32 %v4433_v43  ;;  %v4430_v4 = vpop.xlane.xlu0 %4429  ;;  %v6127_v43 = vld [vmem:[#allocation11 + $0x18] sm:$0xff]  }
0x1a36   : > { %6237 = vrcp.f32 %v4430_v4  ;;  %v6128_v4 = vld [vmem:[#allocation11 + $0x10] sm:$0xff]  }
0x1a38   : > { %v4211_v9 = vpop.permute.xlu1 %4210 }
0x1a39   : > { %v4216_v17 = vpack.c.bf16 %v4211_v9, %v4211_v9 }
0x1a3b   : > { %v4591_v11 = vsel %vm1279_vm3, %v4216_v17, 0 }
0x1a3c   : > { %v4436_v6 = vpop.xlane.xlu0 %4435 }
0x1a3d   : > { %6239 = vrcp.f32 %v4436_v6  ;;  %v6130_v6 = vld [vmem:[%s7572_s8 + $0x30] sm:$0xff]  }
0x1a40   : > { %v4208_v7 = vpop.permute.xlu0 %4207 }
0x1a41   : > { %v4215_v10 = vpack.c.bf16 %v4208_v7, %v4208_v7 }
0x1a42   : > { %v6236_v13 = vpop.eup %6235 }
0x1a43   : > { %v6238_v50 = vpop.eup %6237  ;;  %v4443_v18 = vmul.f32 %v6236_v13, %v6228_v57  ;;  %v4545_v21 = vsel %vm1279_vm3, %v4215_v10, 0  ;;  %v4730_v13 = vrot.slane %v7370_v22, %v7011_v47  ;;  %v6132_v47 = vld [vmem:[%s7572_s8 + $0x20] sm:$0xff]  }
0x1a44   : > { %v4442_v24 = vmul.f32 %v6238_v50, %v6230_v58  ;;  %5838 = vmatpush3.bf16.msra.mxu0 %v4545_v21 }
0x1a45   : > { %v4447_v25 = vpack.c.bf16 %v4443_v18, %v4443_v18  ;;  %5849 = vmatprep.subr.bf16.mxu0 %v6469_v0  ;;  %v4735_v18 = vrot.slane %v7370_v22, %v7029_v8  ;;  %v5237_v8 = vld [vmem:[%s7573_s9 + $0x1] ss:$0 sm:$0xff] }
0x1a46   : > { %v4446_v26 = vpack.c.bf16 %v4442_v24, %v4442_v24 }
0x1a47   : > { %5840 = vmatmul.mubr.msk.bf16.vlgmr.msra.gmra.mxu0 %vm811_vm2, %v4447_v25 }
0x1a48   : > { %5834 = vmatmul.mubr.msk.bf16.vlgmr.msra.gmra.mxu1 %vm811_vm2, %v4446_v26  ;;  %5853 = vmatprep.mubr.msk.bf16.mxu0 %vm6470_vm0, %v6469_v0  ;;  %v6131_v26 = vld [vmem:[%s7572_s8 + $0x28] sm:$0xff]  }
0x1a49   : > { %5844 = vmatpush3.bf16.msra.mxu1 %v4591_v11  ;;  %5845 = vmatprep.mubr.msk.bf16.mxu1 %vm6470_vm0, %v6469_v0 }
0x1a4a   : > { %v6240_v16 = vpop.eup %6239  ;;  %5857 = vmatprep.subr.bf16.mxu1 %v6469_v0  ;;  %5850 = vmatpush3.bf16.msra.mxu0 %v6125_v19 }
0x1a4b   : > { %v4444_v31 = vmul.f32 %v6240_v16, %v6232_v62  ;;  %5851 = vmatprep.subr.bf16.mxu0 %v6469_v0 }
0x1a4d   : > { %v4448_v12 = vpack.c.bf16 %v4444_v31, %v4444_v31 }
0x1a4e   : > { %5852 = vmatpush3.bf16.msra.mxu0 %v6126_v49 }
0x1a4f   : > { %5865 = vmatprep.subr.bf16.mxu0 %v6469_v0 }
0x1a50   : > { %5846 = vmatmul.mubr.msk.bf16.vlgmr.msra.gmra.mxu1 %vm811_vm2, %v4448_v12 }
0x1a51   : > { %5861 = vmatprep.mubr.msk.bf16.mxu1 %vm6470_vm0, %v6469_v0  ;;  %5858 = vmatpush3.bf16.msra.mxu1 %v6127_v43 }
0x1a52   : > { %5859 = vmatprep.subr.bf16.mxu1 %v6469_v0 }
0x1a55   : > { %5860 = vmatpush3.bf16.msra.mxu1 %v6128_v4 }
0x1a9f   : > { %v4489_v28 = vpop.f32.mrf.mxu0 }
0x1aa1   : > { %v5829_v33 = vpop.f32.mrf.mxu0 }
0x1aa3   : > { %v4492_v34 = vpop.f32.mrf.mxu0 }
0x1aa5   : > { %v5830_v29 = vpop.f32.mrf.mxu0 }
0x1b07   : > { %v4581_v36 = vpop.f32.mrf.mxu0 }
0x1b08   : > { %v4535_v27 = vpop.f32.mrf.mxu1  ;;  %4638 = vrot.lane.b32.xlu0 %v4581_v36, %s6475_s16 }
0x1b09   : > { %4634 = vrot.lane.b32.xlu1 %v4535_v27, %s6474_s14  ;;  %v5841_v15 = vpop.f32.mrf.mxu0  ;;  %s4952_s14 = sshll.u32 %s521_s23, 4  ;;  %s4953_s14 = int_to_ptr.vmem [resolvable:$true] %s4952_s14 }
0x1b0a   : > { %v5835_v61 = vpop.f32.mrf.mxu1  ;;  %s6384_s30 = scalar_lea.vmem %s4953_s14, 128  ;;  %p6391_p9 = scmp.lt.s32.totalorder %s4953_s14, %s6389_s18 }
0x1b0b   : > { %v4584_v37 = vpop.f32.mrf.mxu0  ;;  %p6385_p0 = scmp.ne.s32.totalorder %s4953_s14, %s6384_s30  ;;  %p6392_p13 = scmp.lt.s32.totalorder %s6390_s25, %s6384_s30 }
0x1b0c   : > { %v4538_v3 = vpop.f32.mrf.mxu1 }
0x1b0d   : > { %v5842_v38 = vpop.f32.mrf.mxu0  ;;  %p6386_p3 = pnand %p6385_p0, %p7613_p5  ;;  %p6393_p8 = por %p6392_p13, %p6391_p9 }
0x1b0e   : > { %v5836_v39 = vpop.f32.mrf.mxu1 }
0x1b0f   : > { %p6387_p7 = pneg %p6386_p3 }
0x1b10   : > { %v4627_v42 = vpop.f32.mrf.mxu1 }
0x1b11   : > { %4642 = vrot.lane.b32.xlu1 %v4627_v42, %s6476_s4  ;;  %p6394_p10 = pnand %p6393_p8, %p6387_p7 }
0x1b12   : > { %v5847_v40 = vpop.f32.mrf.mxu1 }
0x1b14   : > { %v4630_v30 = vpop.f32.mrf.mxu1 }
0x1b16   : > { %v5848_v35 = vpop.f32.mrf.mxu1 }
0x1b7a   : > { %v4639_v45 = vpop.permute.xlu0 %4638 }
0x1b7b   : > { %v4635_v44 = vpop.permute.xlu1 %4634 }
0x1b7c   : > { %v4645_v41 = vsel %vm811_vm2, %v4489_v28, %v4635_v44 }
0x1b7d   : > { %v4646_v46 = vsel %vm1671_vm4, %v4645_v41, %v4639_v45  ;;  %v5254_v41 = vld [vmem:[%s7574_s10 + $0x28] ss:$0 sm:$0xff] }
0x1b83   : > { %v4643_v48 = vpop.permute.xlu1 %4642 }
0x1b84   : > { %v4647_v53 = vsel %vm1674_vm5, %v4646_v46, %v4643_v48 }
0x1b85   : > { %v4648_v14 = vpack.c.bf16 %v4647_v53, %v4647_v53 }
0x1b87   : > { %5854 = vmatmul.mubr.msk.bf16.vlgmr.msra.gmra.mxu0 %vm530_vm1, %v4648_v14 }
0x1b88   : > { %5873 = vmatprep.mubr.msk.bf16.mxu0 %vm6470_vm0, %v6469_v0 }
0x1c47   : > { %v4707_v56 = vpop.f32.mrf.mxu0 }
0x1c48   : > { %v4708_v51 = vadd.f32 %v4707_v56, %v4657_v55 }
0x1c49   : > { %v5855_v57 = vpop.f32.mrf.mxu0 }
0x1c4a   : > { %v4713_v58 = vadd.f32 %v4708_v51, %v7382_v32  ;;  %v6129_v32 = vld [vmem:[%s7572_s8 + $0x38] sm:$0xff]  }
0x1c4b   : > { %v4710_v59 = vpop.f32.mrf.mxu0  ;;  %5866 = vmatpush3.bf16.msra.mxu0 %v6129_v32 }
0x1c4c   : > { %v4714_v60 = vsel %vm530_vm1, %v4713_v58, 0.0  ;;  %5867 = vmatprep.subr.bf16.mxu0 %v6469_v0  ;;  %v5255_v59 = vld [vmem:[%s7575_s11] ss:$0 sm:$0xff] }
0x1c4d   : > { %4715 = vadd.xlane.f32.xlu0 %v4714_v60  ;;  %v5856_v62 = vpop.f32.mrf.mxu0 }
0x1c4e   : > { %v5256_v62 = vld [vmem:[%s7575_s11 + $0x1] ss:$0 sm:$0xff] }
0x1c4f   : > { %5868 = vmatpush3.bf16.msra.mxu0 %v6130_v6 }
0x1c50   : > { %5869 = vmatprep.subr.bf16.mxu0 %v6469_v0 }
0x1c53   : > { %5870 = vmatpush3.bf16.msra.mxu0 %v6131_v26 }
0x1c54   : > { %5871 = vmatprep.subr.bf16.mxu0 %v6469_v0  ;;  %v4820_v0 = vrot.slane %v7370_v22, %v6793_v20  ;;  %v4905_v20 = vrot.slane %v7370_v22, %v7098_v23 }
0x1c57   : > { %5872 = vmatpush3.bf16.msra.mxu0 %v6132_v47 }
0x1cd6   : > { %v4716_v52 = vpop.xlane.xlu0 %4715 }
0x1cd7   : > { %v4717_v63 = vmul.f32 0.03125, %v4716_v52 }
0x1cd9   : > { %v4718_v1 = vsub.f32 %v4713_v58, %v4717_v63 }
0x1cdb   : > { %v4719_v2 = vmul.f32 %v4718_v1, %v4718_v1 }
0x1cdd   : > { %v4720_v5 = vsel %vm530_vm1, %v4719_v2, 0.0 }
0x1cde   : > { %4721 = vadd.xlane.f32.xlu1 %v4720_v5 }
0x1d67   : > { %v4722_v7 = vpop.xlane.xlu1 %4721 }
0x1d68   : > { %v4723_v9 = vmul.f32 0.03125, %v4722_v7 }
0x1d6a   : > { %v4724_v10 = vadd.f32 1e-05, %v4723_v9 }
0x1d6c   : > { %6241 = vrsqrt.f32 %v4724_v10 }
0x1d79   : > { %v6242_v50 = vpop.eup %6241 }
0x1d7a   : > { %v4726_v21 = vmul.f32 %v6242_v50, %v4718_v1 }
0x1d7c   : > { %v4731_v24 = vmul.f32 %v4730_v13, %v4726_v21 }
0x1d7e   : > { %v4736_v17 = vadd.f32 %v4735_v18, %v4731_v24 }
0x1d80   : > { %v4737_v25 = vpack.c.bf16 %v4736_v17, %v4736_v17 }
0x1d82   : > { %5862 = vmatmul.mubr.msk.bf16.vlgmr.msra.gmra.mxu1 %vm530_vm1, %v4737_v25 }
0x1e42   : > { %v4800_v11 = vpop.f32.mrf.mxu1 }
0x1e43   : > { %v4801_v16 = vadd.f32 %v5237_v8, %v4800_v11 }
0x1e44   : > { %v5863_v31 = vpop.f32.mrf.mxu1 }
0x1e45   : > { %v4806_v12 = vmax.f32 %v4801_v16, 0.0 }
0x1e46   : > { %v4803_v28 = vpop.f32.mrf.mxu1 }
0x1e47   : > { %v4807_v33 = vpack.c.bf16 %v4806_v12, %v4806_v12 }
0x1e48   : > { %v5864_v34 = vpop.f32.mrf.mxu1 }
0x1e49   : > { %5874 = vmatmul.mubr.msk.bf16.vlgmr.msra.gmra.mxu0 %vm2653_vm6, %v4807_v33 }
0x1f09   : > { %v4882_v29 = vpop.f32.mrf.mxu0 }
0x1f0a   : > { %v4883_v19 = vadd.f32 %v4882_v29, %v4820_v0 }
0x1f0b   : > { %v5875_v49 = vpop.f32.mrf.mxu0 }
0x1f0c   : > { %v4888_v36 = vadd.f32 %v4883_v19, %v4736_v17 }
0x1f0d   : > { %v4885_v27 = vpop.f32.mrf.mxu0 }
0x1f0e   : > { %v4889_v15 = vsel %vm530_vm1, %v4888_v36, 0.0 }
0x1f0f   : > { %4890 = vadd.xlane.f32.xlu0 %v4889_v15  ;;  %v5876_v61 = vpop.f32.mrf.mxu0 }
0x1f98   : > { %v4891_v37 = vpop.xlane.xlu0 %4890 }
0x1f99   : > { %v4892_v3 = vmul.f32 0.03125, %v4891_v37 }
0x1f9b   : > { %v4893_v38 = vsub.f32 %v4888_v36, %v4892_v3 }
0x1f9d   : > { %v4894_v39 = vmul.f32 %v4893_v38, %v4893_v38 }
0x1f9f   : > { %v4895_v42 = vsel %vm530_vm1, %v4894_v39, 0.0 }
0x1fa0   : > { %4896 = vadd.xlane.f32.xlu0 %v4895_v42 }
0x2029   : > { %v4897_v40 = vpop.xlane.xlu0 %4896 }
0x202a   : > { %v4898_v30 = vmul.f32 0.03125, %v4897_v40 }
0x202c   : > { %v4899_v35 = vadd.f32 1e-05, %v4898_v30 }
0x202e   : > { %6243 = vrsqrt.f32 %v4899_v35 }
0x203b   : > { %v6244_v44 = vpop.eup %6243 }
0x203c   : > { %v4901_v45 = vmul.f32 %v6244_v44, %v4893_v38 }
0x203e   : > { %v4906_v46 = vmul.f32 %v4905_v20, %v4901_v45 }
0x2040   : > { %v4911_v48 = vadd.f32 %v5254_v41, %v4906_v46 }
0x2042   : > { %v4914_v53 = vsel %vm530_vm1, %v4911_v48, 0.0 }
0x2043   : > { %4915 = vadd.xlane.f32.xlu1 %v4914_v53 }
0x20cc   : > { %v4916_v14 = vpop.xlane.xlu1 %4915 }
0x20cd   : > { %v4917_v54 = vmul.f32 0.03125, %v4916_v14 }
0x20cf   : > { %v4918_v55 = vsub.f32 %v4911_v48, %v4917_v54 }
0x20d1   : > { %v4919_v56 = vmul.f32 %v4918_v55, %v4918_v55 }
0x20d3   : > { %v4920_v51 = vsel %vm530_vm1, %v4919_v56, 0.0 }
0x20d4   : > { %4921 = vadd.xlane.f32.xlu0 %v4920_v51 }
0x215d   : > { %v4922_v23 = vpop.xlane.xlu0 %4921 }
0x215e   : > { %v4923_v22 = vmul.f32 0.03125, %v4922_v23 }
0x2160   : > { %v4924_v57 = vadd.f32 1e-05, %v4923_v22 }
0x2162   : > { %6245 = vrsqrt.f32 %v4924_v57 }
0x216f   : > { %v6246_v58 = vpop.eup %6245 }
0x2170   : > { %v4926_v60 = vmul.f32 %v6246_v58, %v4918_v55 }
0x2172   : > { %v4931_v52 = vmul.f32 %v5255_v59, %v4926_v60 }
0x2174   : > { %v4936_v63 = vadd.f32 %v5256_v62, %v4931_v52 }
0x2176   : > { %4937 = vst.msk [vmem:[%s521_s23] sm:$0xff] %vm530_vm1, %v4936_v63 }
0x2177   : > { %6397 = shalt.err (!%p6394_p10)
}
0x2178   : > { %s6398_s21 = scalar_lea.hbm %s4950_s27, 128  ;;  %s6402_s20 = scalar_lea.hbm %s7612_s29, 256 }
0x2179   : > { %p6399_p1 = scmp.ne.s32.totalorder %s4950_s27, %s6398_s21  ;;  %p6403_p4 = scmp.lt.s32.totalorder %s4950_s27, %s7612_s29 }
0x217a   : > { %p6404_p6 = scmp.lt.s32.totalorder %s6402_s20, %s6398_s21 }
0x217b   : > { %p6400_p11 = pnand %p6399_p1, %p7613_p5 }
0x217c   : > { %p6405_p12 = por %p6404_p6, %p6403_p4 }
0x217d   : > { %p6401_p2 = pneg %p6400_p11 }
0x217f   : > { %p6406_p0 = pnand %p6405_p12, %p6401_p2 }
0x2181   : > { %6409 = shalt.err (!%p6406_p0)
}
0x2182   : > { %5893 = dma.vmem_to_hbm [thread:$0]  (%p7613_p5), %s4953_s14, 128, %s4950_s27, %s4939_s28  }
0x2183 PF: > { %s7614_s7 = sld [smem:[#allocation18_spill]]  ;;  %p7617_p7 = scmp.ge.s32.totalorder %s6460_s24, 2 }
0x2184   : > { %s7615_s13 = sld [smem:[#allocation20_spill]] }
0x2189   : > { %s4964_s23 = sand.u32 1, %s7614_s7  }
0x218a   : > { %p7616_p3 = scmp.ne.s32.totalorder %s7615_s13, 0  ;;  %s4965_s16 = scalar_lea.sflag [#allocation5], %s4964_s23 }
0x218c   : > { %p5913_p9 = pnand %p7617_p7, %p7616_p3 }
0x218e   : > { %p5914_p13 = pneg %p5913_p9 }
0x2190   : > { %6443 = dma.done.wait (%p5914_p13), %s4965_s16, 128  }
0x2191   : > { %6445 = vsyncadd (%p5914_p13), %s4965_s16, 4294967168  ;;  %s7618_s24 = sld [smem:[#allocation21_spill]]  ;;  %s7621_s21 = smov %s6452_s22 }
0x2192   : > { %s7619_s4 = sld [smem:[#allocation19_spill]] }
0x2193   : > { %s7620_s23 = sld [smem:[#allocation22_spill]] }
0x2197   : > { %p29_p8 = scmp.ge.s32.totalorder %s7618_s24, 4  }
0x2198   : > { %s7622_s22 = smov %s7619_s4 }
0x2199   :  { %31 = sbr.rel (!%p29_p8) target bundleno = 13 (0xd), region = 157 }
0x219e   :  { %4970 = vsyncpa [#allocation4], 1 }
0x219f   :  { %4972 = vsyncpa [#allocation4 + $0x1], 1 }
0x21a0   :  { %4973 = vsyncpa [#allocation7], 1 }
0x21a1   :  { %4975 = vsyncpa [#allocation7 + $0x1], 1 }
0x21a2   :  { %4976 = vsyncpa [#allocation10], 1 }
0x21a3   :  { %4977 = vsyncpa [#allocation5], 1 }
0x21a4   :  { %4979 = vsyncpa [#allocation5 + $0x1], 1 }

</bundles_post_ra>
